<compile_context>
chip_gen: v5e
topology: v5e:2x2
jax: 0.10.0
libtpu: 0.0.40
codegen_flags: <defaults>
</compile_context>

<pallas_src>
import functools

import jax
import jax.numpy as jnp
from jax.experimental import pallas as pl
from jax.experimental.pallas import tpu as pltpu

jax.config.update("jax_default_matmul_precision", "highest")


# ----------------------------------------------------------------------------
# Pallas kernel: fused bidirectional LSTM recurrence, T timesteps per grid step
# ----------------------------------------------------------------------------
def _bilstm_kernel(gxf_ref, gxb_ref, whh_ref, len_ref,
                   outf_ref, outb_ref, hnf_ref, hnb_ref,
                   hf_sc, cf_sc, hb_sc, cb_sc, *, T, H):
    """One grid step == T timesteps of BOTH directions of one LSTM layer.

    gxf_ref: (T, B, 4H)  precomputed x@W_ih^T + b, forward dir, times [kT, kT+T)
    gxb_ref: (T, B, 4H)  same, backward dir, original times [(nb-1-k)T, ...+T)
    whh_ref: (H, 8H)     hidden->gates weights for both dirs, grid-invariant
    len_ref: (B, 1)      int32 sequence lengths, grid-invariant
    outf/outb_ref: (T, B, H)  per-timestep outputs (zero at padded positions)
    hnf/hnb_ref:   (B, H)     final hidden states (written on last grid step only)
    *_sc: VMEM scratch carrying (h, c) per direction across grid steps.
    """
    k = pl.program_id(0)
    nb = pl.num_programs(0)
    s_pad = nb * T

    @pl.when(k == 0)
    def _init():
        hf_sc[...] = jnp.zeros_like(hf_sc)
        cf_sc[...] = jnp.zeros_like(cf_sc)
        hb_sc[...] = jnp.zeros_like(hb_sc)
        cb_sc[...] = jnp.zeros_like(cb_sc)

    lens = len_ref[...]                 # (B, 1) int32
    whh_f = whh_ref[:, :4 * H]          # (H, 4H)
    whh_b = whh_ref[:, 4 * H:]          # (H, 4H)

    # Carry state in vregs across the unrolled inner loop: one scratch
    # read/write per grid step instead of per timestep.
    h_f = hf_sc[...]
    c_f = cf_sc[...]
    h_b = hb_sc[...]
    c_b = cb_sc[...]

    def cell(gates, c_prev):
        # NOTE: with H=32 the gate slices are sub-vreg (demo size); for real
        # model sizes pick H as a multiple of 128 so each gate is whole vregs.
        i = jax.nn.sigmoid(gates[:, 0 * H:1 * H])
        f = jax.nn.sigmoid(gates[:, 1 * H:2 * H])
        g = jnp.tanh(gates[:, 2 * H:3 * H])
        o = jax.nn.sigmoid(gates[:, 3 * H:4 * H])
        c_new = f * c_prev + i * g
        h_new = o * jnp.tanh(c_new)
        return h_new, c_new

    # Statically unrolled inner loop over T timesteps (static ref indices).
    for j in range(T):
        # ---------------- forward direction: global time t_f ----------------
        t_f = k * T + j
        gates_f = gxf_ref[j] + jnp.dot(h_f, whh_f,
                                       preferred_element_type=jnp.float32)
        h_new, c_new = cell(gates_f, c_f)
        m = (t_f < lens).astype(jnp.float32)          # (B, 1)
        h_f = m * h_new + (1.0 - m) * h_f             # freeze state at t >= len
        c_f = m * c_new + (1.0 - m) * c_f
        outf_ref[j] = m * h_f                         # zero-fill padding

        # -------------- backward direction: original time t_b ---------------
        t_b = s_pad - 1 - t_f
        gates_b = gxb_ref[T - 1 - j] + jnp.dot(h_b, whh_b,
                                               preferred_element_type=jnp.float32)
        h_new, c_new = cell(gates_b, c_b)
        m = (t_b < lens).astype(jnp.float32)
        h_b = m * h_new + (1.0 - m) * h_b
        c_b = m * c_new + (1.0 - m) * c_b
        outb_ref[T - 1 - j] = m * h_b

    # Single scratch writeback per grid step.
    hf_sc[...] = h_f
    cf_sc[...] = c_f
    hb_sc[...] = h_b
    cb_sc[...] = c_b

    @pl.when(k == nb - 1)
    def _finalize():
        hnf_ref[...] = h_f
        hnb_ref[...] = h_b


# ----------------------------------------------------------------------------
# Wrappers
# ----------------------------------------------------------------------------
def bilstm_layer(gx_both, whh_both_t, lengths, *, time_block=4):
    """Run both directions of one LSTM layer over the whole sequence.

    gx_both:    (S, B, 8H) precomputed input projection, [fwd 4H | bwd 4H].
    whh_both_t: (H, 8H)    hidden->gate weights, [fwd 4H | bwd 4H].
    """
    S, B, G2 = gx_both.shape
    H = G2 // 8
    T = min(time_block, S)
    nb = pl.cdiv(S, T)
    s_pad = nb * T
    if s_pad != S:
        gx_both = jnp.pad(gx_both, ((0, s_pad - S), (0, 0), (0, 0)))
    len2d = lengths.astype(jnp.int32).reshape(B, 1)

    kernel = functools.partial(_bilstm_kernel, T=T, H=H)
    out_f, out_b, hn_f, hn_b = pl.pallas_call(
        kernel,
        out_shape=(jax.ShapeDtypeStruct((s_pad, B, H), jnp.float32),
                   jax.ShapeDtypeStruct((s_pad, B, H), jnp.float32),
                   jax.ShapeDtypeStruct((B, H), jnp.float32),
                   jax.ShapeDtypeStruct((B, H), jnp.float32)),
        grid_spec=pltpu.PrefetchScalarGridSpec(
            num_scalar_prefetch=0,
            grid=(nb,),
            in_specs=[
                # Forward gates: time block k, first 4H lanes.
                pl.BlockSpec((T, B, 4 * H), lambda k: (k, 0, 0)),
                # Backward gates: time-reversed block, second 4H lanes.
                pl.BlockSpec((T, B, 4 * H), lambda k, nb=nb: (nb - 1 - k, 0, 1)),
                pl.BlockSpec((H, 8 * H), lambda k: (0, 0)),
                pl.BlockSpec((B, 1), lambda k: (0, 0)),
            ],
            out_specs=[
                pl.BlockSpec((T, B, H), lambda k: (k, 0, 0)),
                pl.BlockSpec((T, B, H), lambda k, nb=nb: (nb - 1 - k, 0, 0)),
                pl.BlockSpec((B, H), lambda k: (0, 0)),
                pl.BlockSpec((B, H), lambda k: (0, 0)),
            ],
            scratch_shapes=[pltpu.VMEM((B, H), jnp.float32)] * 4,
        ),
        compiler_params=pltpu.CompilerParams(
            dimension_semantics=("arbitrary",)),
    )(gx_both, gx_both, whh_both_t, len2d)

    if s_pad != S:
        out_f = out_f[:S]
        out_b = out_b[:S]
    return out_f, out_b, hn_f, hn_b


def _input_projection(x_parts, w_ih_t, b):
    """concat(x_parts, -1) @ W_ih^T + b, without materializing the concat."""
    off = 0
    acc = None
    for xp in x_parts:
        d = xp.shape[-1]
        part = jnp.einsum("sbd,dg->sbg", xp, w_ih_t[off:off + d],
                          preferred_element_type=jnp.float32)
        acc = part if acc is None else acc + part
        off += d
    return acc + b


def init_params(key, vocab_size, embedding_dim, hidden_dim, output_dim,
                n_layers, pad_idx):
    """Deterministic parameter init mimicking PyTorch shapes.

    Per-layer weights are stored pre-concatenated over the two directions:
      w_ih_t: (in, 8H)   [fwd 4H | bwd 4H]
      w_hh_t: (H, 8H)    [fwd 4H | bwd 4H]
      b:      (1, 8H)    b_ih + b_hh, per direction
    """
    params = {}
    keys = jax.random.split(key, 64)
    ki = iter(range(64))

    emb = jax.random.normal(keys[next(ki)], (vocab_size, embedding_dim),
                            jnp.float32)
    emb = emb.at[pad_idx].set(0.0)      # padding_idx row is zero
    params["embedding"] = emb

    bound = 1.0 / jnp.sqrt(hidden_dim)
    lstm = []
    for layer in range(n_layers):
        in_dim = embedding_dim if layer == 0 else 2 * hidden_dim
        w_ih_parts, w_hh_parts, b_parts = [], [], []
        for _direction in range(2):     # bidirectional
            w_ih = jax.random.uniform(keys[next(ki)], (4 * hidden_dim, in_dim),
                                      jnp.float32, -bound, bound)
            w_hh = jax.random.uniform(keys[next(ki)],
                                      (4 * hidden_dim, hidden_dim),
                                      jnp.float32, -bound, bound)
            b_ih = jax.random.uniform(keys[next(ki)], (4 * hidden_dim,),
                                      jnp.float32, -bound, bound)
            b_hh = jax.random.uniform(keys[next(ki)], (4 * hidden_dim,),
                                      jnp.float32, -bound, bound)
            w_ih_parts.append(w_ih.T)                      # (in, 4H)
            w_hh_parts.append(w_hh.T)                      # (H, 4H)
            b_parts.append(b_ih + b_hh)                    # (4H,)
        lstm.append({
            "w_ih_t": jnp.concatenate(w_ih_parts, axis=1),              # (in, 8H)
            "w_hh_t": jnp.concatenate(w_hh_parts, axis=1),              # (H, 8H)
            "b": jnp.concatenate(b_parts).reshape(1, 8 * hidden_dim),   # (1, 8H)
        })
    params["lstm"] = lstm

    fc_bound = 1.0 / jnp.sqrt(2 * hidden_dim)
    fc_w = jax.random.uniform(keys[next(ki)], (output_dim, 2 * hidden_dim),
                              jnp.float32, -fc_bound, fc_bound)
    fc_b = jax.random.uniform(keys[next(ki)], (output_dim,),
                              jnp.float32, -fc_bound, fc_bound)
    params["fc_w_t"] = fc_w.T                       # (2H, O)
    params["fc_b"] = fc_b.reshape(1, output_dim)
    return params


@functools.partial(jax.jit, static_argnames=("n_layers", "time_block"))
def lstm_forward(params, text, text_lengths, n_layers, time_block=4):
    """Forward pass matching the PyTorch module (eval mode: dropout = identity)."""
    # Embedding lookup (glue, plain JAX gather).
    embedded = jnp.take(params["embedding"], text, axis=0)      # (S, B, E)
    # TODO(synk): dropout is stochastic; implemented as identity (eval mode).

    x_parts = [embedded]
    hn_f = hn_b = None
    for layer in range(n_layers):
        p = params["lstm"][layer]

        # Hoisted input projection: ONE wide matmul covering both directions
        # and all timesteps -> (S, B, 8H).
        gx_both = _input_projection(x_parts, p["w_ih_t"], p["b"])

        out_f, out_b, hn_f, hn_b = bilstm_layer(
            gx_both, p["w_hh_t"], text_lengths, time_block=time_block)

        # Next layer consumes the two halves directly (no concat round trip).
        x_parts = [out_f, out_b]
        # inter-layer dropout: identity (eval mode)

    hidden = jnp.concatenate([hn_f, hn_b], axis=1)                 # (B, 2H)
    # final dropout: identity (eval mode)
    # Final fc is tiny -> plain XLA matmul (cheaper than a Pallas launch).
    logits = jnp.dot(hidden, params["fc_w_t"],
                     preferred_element_type=jnp.float32) + params["fc_b"]
    return logits


# ----------------------------------------------------------------------------
# Pure-JAX reference (same packed-seq masking semantics) for a sanity check
# ----------------------------------------------------------------------------
def _dir_view(layer_params, direction, H):
    lo = 0 if direction == 0 else 4 * H
    hi = lo + 4 * H
    return {"w_ih_t": layer_params["w_ih_t"][:, lo:hi],
            "w_hh_t": layer_params["w_hh_t"][:, lo:hi],
            "b": layer_params["b"][:, lo:hi]}


def _reference_forward(params, text, text_lengths, n_layers, hidden_dim):
    S, B = text.shape
    emb = jnp.take(params["embedding"], text, axis=0)
    mask = (jnp.arange(S)[:, None] < text_lengths[None, :])
    mask = mask.astype(jnp.float32)[..., None]                    # (S, B, 1)

    def run_dir(x, m, p):
        H = p["w_hh_t"].shape[0]
        h = jnp.zeros((B, H), jnp.float32)
        c = jnp.zeros((B, H), jnp.float32)
        outs = []
        for t in range(S):
            gates = x[t] @ p["w_ih_t"] + h @ p["w_hh_t"] + p["b"]
            i = jax.nn.sigmoid(gates[:, 0 * H:1 * H])
            f = jax.nn.sigmoid(gates[:, 1 * H:2 * H])
            g = jnp.tanh(gates[:, 2 * H:3 * H])
            o = jax.nn.sigmoid(gates[:, 3 * H:4 * H])
            c_new = f * c + i * g
            h_new = o * jnp.tanh(c_new)
            mt = m[t]
            h = mt * h_new + (1.0 - mt) * h
            c = mt * c_new + (1.0 - mt) * c
            outs.append(mt * h)
        return jnp.stack(outs), h

    x = emb
    hf = hb = None
    for layer in range(n_layers):
        pf = _dir_view(params["lstm"][layer], 0, hidden_dim)
        pb = _dir_view(params["lstm"][layer], 1, hidden_dim)
        of, hf = run_dir(x, mask, pf)
        ob_rev, hb = run_dir(x[::-1], mask[::-1], pb)
        x = jnp.concatenate([of, ob_rev[::-1]], axis=-1)
    hidden = jnp.concatenate([hf, hb], axis=1)
    return hidden @ params["fc_w_t"] + params["fc_b"]


if __name__ == "__main__":
    VOCAB_SIZE = 50
    EMBEDDING_DIM = 32
    HIDDEN_DIM = 32
    OUTPUT_DIM = 4
    N_LAYERS = 2
    PAD_IDX = 0
    SEQ_LEN = 8
    BATCH = 2

    key = jax.random.PRNGKey(0)
    k_param, k_text = jax.random.split(key)

    params = init_params(k_param, VOCAB_SIZE, EMBEDDING_DIM, HIDDEN_DIM,
                         OUTPUT_DIM, N_LAYERS, PAD_IDX)

    # Sorted-descending lengths, as pack_padded_sequence expects.
    text_lengths = jnp.array([8, 5], dtype=jnp.int32)
    text = jax.random.randint(k_text, (SEQ_LEN, BATCH), 1, VOCAB_SIZE,
                              dtype=jnp.int32)
    # Zero out padded positions with pad_idx to mirror a padded batch.
    valid = (jnp.arange(SEQ_LEN)[:, None] < text_lengths[None, :])
    text = jnp.where(valid, text, PAD_IDX)

    logits = lstm_forward(params, text, text_lengths, N_LAYERS, time_block=4)
    jax.block_until_ready(logits)
    assert logits.shape == (BATCH, OUTPUT_DIM)

    ref = _reference_forward(params, text, text_lengths, N_LAYERS, HIDDEN_DIM)
    assert bool(jnp.allclose(logits, ref, atol=5e-2, rtol=5e-2))

    print("KERNEL_OK")
</pallas_src>

<mosaic_0001>
module attributes {stable_mosaic.version = 11 : i64} {
  func.func @_bilstm_kernel(%arg0: i32, %arg1: memref<4x2x128xf32, #tpu.memory_space<vmem>>, %arg2: memref<4x2x128xf32, #tpu.memory_space<vmem>>, %arg3: memref<32x256xf32, #tpu.memory_space<vmem>>, %arg4: memref<2x1xi32, #tpu.memory_space<vmem>>, %arg5: memref<4x2x32xf32, #tpu.memory_space<vmem>>, %arg6: memref<4x2x32xf32, #tpu.memory_space<vmem>>, %arg7: memref<2x32xf32, #tpu.memory_space<vmem>>, %arg8: memref<2x32xf32, #tpu.memory_space<vmem>>, %arg9: memref<2x32xf32, #tpu.memory_space<vmem>>, %arg10: memref<2x32xf32, #tpu.memory_space<vmem>>, %arg11: memref<2x32xf32, #tpu.memory_space<vmem>>, %arg12: memref<2x32xf32, #tpu.memory_space<vmem>>) attributes {dimension_semantics = [#tpu.dimension_semantics<arbitrary>], iteration_bounds = array<i64: 2>, scalar_prefetch = 0 : i64, scratch_operands = 4 : i64, tpu.core_type = #tpu.core_type<tc>, window_params = [{transform_indices = @transform_0, window_bounds = array<i64: 4, 2, 128>}, {transform_indices = @transform_1, window_bounds = array<i64: 4, 2, 128>}, {pipeline_mode = #tpu.pipeline_mode<synchronous>, transform_indices = @transform_2, window_bounds = array<i64: 32, 256>}, {pipeline_mode = #tpu.pipeline_mode<synchronous>, transform_indices = @transform_3, window_bounds = array<i64: 2, 1>}, {transform_indices = @transform_4, window_bounds = array<i64: 4, 2, 32>}, {transform_indices = @transform_5, window_bounds = array<i64: 4, 2, 32>}, {pipeline_mode = #tpu.pipeline_mode<synchronous>, transform_indices = @transform_6, window_bounds = array<i64: 2, 32>}, {pipeline_mode = #tpu.pipeline_mode<synchronous>, transform_indices = @transform_7, window_bounds = array<i64: 2, 32>}]} {
    %c0_i32 = arith.constant 0 : i32
    %0 = arith.cmpi eq, %arg0, %c0_i32 : i32
    %1 = arith.extui %0 : i1 to i32
    %c0_i32_0 = arith.constant 0 : i32
    %2 = arith.cmpi ne, %1, %c0_i32_0 : i32
    scf.if %2 {
      %cst_122 = arith.constant 0.000000e+00 : f32
      %445 = vector.broadcast %cst_122 : f32 to vector<2x32xf32>
      %c0_123 = arith.constant 0 : index
      %c0_124 = arith.constant 0 : index
      %446 = vector.load %arg9[%c0_123, %c0_124] : memref<2x32xf32, #tpu.memory_space<vmem>>, vector<2x32xf32>
      tpu.vector_store %arg9[%c0_123, %c0_124], %445 {strides = array<i32>} : memref<2x32xf32, #tpu.memory_space<vmem>>, vector<2x32xf32>,
      %cst_125 = arith.constant 0.000000e+00 : f32
      %447 = vector.broadcast %cst_125 : f32 to vector<2x32xf32>
      %c0_126 = arith.constant 0 : index
      %c0_127 = arith.constant 0 : index
      %448 = vector.load %arg10[%c0_126, %c0_127] : memref<2x32xf32, #tpu.memory_space<vmem>>, vector<2x32xf32>
      tpu.vector_store %arg10[%c0_126, %c0_127], %447 {strides = array<i32>} : memref<2x32xf32, #tpu.memory_space<vmem>>, vector<2x32xf32>,
      %cst_128 = arith.constant 0.000000e+00 : f32
      %449 = vector.broadcast %cst_128 : f32 to vector<2x32xf32>
      %c0_129 = arith.constant 0 : index
      %c0_130 = arith.constant 0 : index
      %450 = vector.load %arg11[%c0_129, %c0_130] : memref<2x32xf32, #tpu.memory_space<vmem>>, vector<2x32xf32>
      tpu.vector_store %arg11[%c0_129, %c0_130], %449 {strides = array<i32>} : memref<2x32xf32, #tpu.memory_space<vmem>>, vector<2x32xf32>,
      %cst_131 = arith.constant 0.000000e+00 : f32
      %451 = vector.broadcast %cst_131 : f32 to vector<2x32xf32>
      %c0_132 = arith.constant 0 : index
      %c0_133 = arith.constant 0 : index
      %452 = vector.load %arg12[%c0_132, %c0_133] : memref<2x32xf32, #tpu.memory_space<vmem>>, vector<2x32xf32>
      tpu.vector_store %arg12[%c0_132, %c0_133], %451 {strides = array<i32>} : memref<2x32xf32, #tpu.memory_space<vmem>>, vector<2x32xf32>,
    } else {
    }
    %c0 = arith.constant 0 : index
    %c0_1 = arith.constant 0 : index
    %3 = vector.load %arg4[%c0, %c0_1] : memref<2x1xi32, #tpu.memory_space<vmem>>, vector<2x1xi32>
    %c0_2 = arith.constant 0 : index
    %c0_3 = arith.constant 0 : index
    %4 = vector.load %arg3[%c0_2, %c0_3] : memref<32x256xf32, #tpu.memory_space<vmem>>, vector<32x128xf32>
    %c0_4 = arith.constant 0 : index
    %c128 = arith.constant 128 : index
    %5 = vector.load %arg3[%c0_4, %c128] : memref<32x256xf32, #tpu.memory_space<vmem>>, vector<32x128xf32>
    %c0_5 = arith.constant 0 : index
    %c0_6 = arith.constant 0 : index
    %6 = vector.load %arg9[%c0_5, %c0_6] : memref<2x32xf32, #tpu.memory_space<vmem>>, vector<2x32xf32>
    %c0_7 = arith.constant 0 : index
    %c0_8 = arith.constant 0 : index
    %7 = vector.load %arg10[%c0_7, %c0_8] : memref<2x32xf32, #tpu.memory_space<vmem>>, vector<2x32xf32>
    %c0_9 = arith.constant 0 : index
    %c0_10 = arith.constant 0 : index
    %8 = vector.load %arg11[%c0_9, %c0_10] : memref<2x32xf32, #tpu.memory_space<vmem>>, vector<2x32xf32>
    %c0_11 = arith.constant 0 : index
    %c0_12 = arith.constant 0 : index
    %9 = vector.load %arg12[%c0_11, %c0_12] : memref<2x32xf32, #tpu.memory_space<vmem>>, vector<2x32xf32>
    %c4_i32 = arith.constant 4 : i32
    %10 = arith.muli %arg0, %c4_i32 : i32
    %c0_i32_13 = arith.constant 0 : i32
    %11 = arith.addi %10, %c0_i32_13 : i32
    %c0_14 = arith.constant 0 : index
    %c0_15 = arith.constant 0 : index
    %c0_16 = arith.constant 0 : index
    %12 = vector.load %arg1[%c0_14, %c0_15, %c0_16] : memref<4x2x128xf32, #tpu.memory_space<vmem>>, vector<1x2x128xf32>
    %13 = vector.shape_cast %12 : vector<1x2x128xf32> to vector<2x128xf32>
    %cst = arith.constant dense<0.000000e+00> : vector<2x128xf32>
    %14 = tpu.matmul %6, %4, %cst {dimension_numbers = #tpu.dot_dimension_numbers<[1], [0], [0], [1], [0, 0, 1, 1], [], []>, precision = #tpu.contract_precision<fp32>} : vector<2x32xf32>, vector<32x128xf32>, vector<2x128xf32> -> vector<2x128xf32>
    %15 = arith.addf %13, %14 : vector<2x128xf32>
    %16 = vector.extract_strided_slice %15 {offsets = [0, 0], sizes = [2, 32], strides = [1, 1]} : vector<2x128xf32> to vector<2x32xf32>
    %17 = arith.negf %16 : vector<2x32xf32>
    %18 = math.exp %17 : vector<2x32xf32>
    %cst_17 = arith.constant 1.000000e+00 : f32
    %19 = vector.broadcast %cst_17 : f32 to vector<2x32xf32>
    %20 = arith.addf %19, %18 : vector<2x32xf32>
    %21 = arith.divf %19, %20 : vector<2x32xf32>
    %22 = vector.extract_strided_slice %15 {offsets = [0, 32], sizes = [2, 32], strides = [1, 1]} : vector<2x128xf32> to vector<2x32xf32>
    %23 = arith.negf %22 : vector<2x32xf32>
    %24 = math.exp %23 : vector<2x32xf32>
    %cst_18 = arith.constant 1.000000e+00 : f32
    %25 = vector.broadcast %cst_18 : f32 to vector<2x32xf32>
    %26 = arith.addf %25, %24 : vector<2x32xf32>
    %27 = arith.divf %25, %26 : vector<2x32xf32>
    %28 = vector.extract_strided_slice %15 {offsets = [0, 64], sizes = [2, 32], strides = [1, 1]} : vector<2x128xf32> to vector<2x32xf32>
    %29 = math.tanh %28 : vector<2x32xf32>
    %30 = vector.extract_strided_slice %15 {offsets = [0, 96], sizes = [2, 32], strides = [1, 1]} : vector<2x128xf32> to vector<2x32xf32>
    %31 = arith.negf %30 : vector<2x32xf32>
    %32 = math.exp %31 : vector<2x32xf32>
    %cst_19 = arith.constant 1.000000e+00 : f32
    %33 = vector.broadcast %cst_19 : f32 to vector<2x32xf32>
    %34 = arith.addf %33, %32 : vector<2x32xf32>
    %35 = arith.divf %33, %34 : vector<2x32xf32>
    %36 = arith.mulf %27, %7 : vector<2x32xf32>
    %37 = arith.mulf %21, %29 : vector<2x32xf32>
    %38 = arith.addf %36, %37 : vector<2x32xf32>
    %39 = math.tanh %38 : vector<2x32xf32>
    %40 = arith.mulf %35, %39 : vector<2x32xf32>
    %41 = vector.broadcast %11 : i32 to vector<2x1xi32>
    %42 = arith.cmpi slt, %41, %3 : vector<2x1xi32>
    %43 = arith.extui %42 : vector<2x1xi1> to vector<2x1xi32>
    %44 = arith.sitofp %43 : vector<2x1xi32> to vector<2x1xf32>
    %45 = vector.broadcast %44 : vector<2x1xf32> to vector<2x32xf32>
    %46 = arith.mulf %45, %40 : vector<2x32xf32>
    %cst_20 = arith.constant 1.000000e+00 : f32
    %47 = vector.broadcast %cst_20 : f32 to vector<2x1xf32>
    %48 = arith.subf %47, %44 : vector<2x1xf32>
    %49 = vector.broadcast %48 : vector<2x1xf32> to vector<2x32xf32>
    %50 = arith.mulf %49, %6 : vector<2x32xf32>
    %51 = arith.addf %46, %50 : vector<2x32xf32>
    %52 = vector.broadcast %44 : vector<2x1xf32> to vector<2x32xf32>
    %53 = arith.mulf %52, %38 : vector<2x32xf32>
    %cst_21 = arith.constant 1.000000e+00 : f32
    %54 = vector.broadcast %cst_21 : f32 to vector<2x1xf32>
    %55 = arith.subf %54, %44 : vector<2x1xf32>
    %56 = vector.broadcast %55 : vector<2x1xf32> to vector<2x32xf32>
    %57 = arith.mulf %56, %7 : vector<2x32xf32>
    %58 = arith.addf %53, %57 : vector<2x32xf32>
    %59 = vector.broadcast %44 : vector<2x1xf32> to vector<2x32xf32>
    %60 = arith.mulf %59, %51 : vector<2x32xf32>
    %c0_22 = arith.constant 0 : index
    %c0_23 = arith.constant 0 : index
    %c0_24 = arith.constant 0 : index
    %61 = vector.load %arg5[%c0_22, %c0_23, %c0_24] : memref<4x2x32xf32, #tpu.memory_space<vmem>>, vector<1x2x32xf32>
    %62 = vector.shape_cast %61 : vector<1x2x32xf32> to vector<2x32xf32>
    %63 = vector.shape_cast %60 : vector<2x32xf32> to vector<1x2x32xf32>
    tpu.vector_store %arg5[%c0_22, %c0_23, %c0_24], %63 {strides = array<i32>} : memref<4x2x32xf32, #tpu.memory_space<vmem>>, vector<1x2x32xf32>,
    %c7_i32 = arith.constant 7 : i32
    %64 = arith.subi %c7_i32, %11 : i32
    %c3 = arith.constant 3 : index
    %c0_25 = arith.constant 0 : index
    %c0_26 = arith.constant 0 : index
    %65 = vector.load %arg2[%c3, %c0_25, %c0_26] : memref<4x2x128xf32, #tpu.memory_space<vmem>>, vector<1x2x128xf32>
    %66 = vector.shape_cast %65 : vector<1x2x128xf32> to vector<2x128xf32>
    %cst_27 = arith.constant dense<0.000000e+00> : vector<2x128xf32>
    %67 = tpu.matmul %8, %5, %cst_27 {dimension_numbers = #tpu.dot_dimension_numbers<[1], [0], [0], [1], [0, 0, 1, 1], [], []>, precision = #tpu.contract_precision<fp32>} : vector<2x32xf32>, vector<32x128xf32>, vector<2x128xf32> -> vector<2x128xf32>
    %68 = arith.addf %66, %67 : vector<2x128xf32>
    %69 = vector.extract_strided_slice %68 {offsets = [0, 0], sizes = [2, 32], strides = [1, 1]} : vector<2x128xf32> to vector<2x32xf32>
    %70 = arith.negf %69 : vector<2x32xf32>
    %71 = math.exp %70 : vector<2x32xf32>
    %cst_28 = arith.constant 1.000000e+00 : f32
    %72 = vector.broadcast %cst_28 : f32 to vector<2x32xf32>
    %73 = arith.addf %72, %71 : vector<2x32xf32>
    %74 = arith.divf %72, %73 : vector<2x32xf32>
    %75 = vector.extract_strided_slice %68 {offsets = [0, 32], sizes = [2, 32], strides = [1, 1]} : vector<2x128xf32> to vector<2x32xf32>
    %76 = arith.negf %75 : vector<2x32xf32>
    %77 = math.exp %76 : vector<2x32xf32>
    %cst_29 = arith.constant 1.000000e+00 : f32
    %78 = vector.broadcast %cst_29 : f32 to vector<2x32xf32>
    %79 = arith.addf %78, %77 : vector<2x32xf32>
    %80 = arith.divf %78, %79 : vector<2x32xf32>
    %81 = vector.extract_strided_slice %68 {offsets = [0, 64], sizes = [2, 32], strides = [1, 1]} : vector<2x128xf32> to vector<2x32xf32>
    %82 = math.tanh %81 : vector<2x32xf32>
    %83 = vector.extract_strided_slice %68 {offsets = [0, 96], sizes = [2, 32], strides = [1, 1]} : vector<2x128xf32> to vector<2x32xf32>
    %84 = arith.negf %83 : vector<2x32xf32>
    %85 = math.exp %84 : vector<2x32xf32>
    %cst_30 = arith.constant 1.000000e+00 : f32
    %86 = vector.broadcast %cst_30 : f32 to vector<2x32xf32>
    %87 = arith.addf %86, %85 : vector<2x32xf32>
    %88 = arith.divf %86, %87 : vector<2x32xf32>
    %89 = arith.mulf %80, %9 : vector<2x32xf32>
    %90 = arith.mulf %74, %82 : vector<2x32xf32>
    %91 = arith.addf %89, %90 : vector<2x32xf32>
    %92 = math.tanh %91 : vector<2x32xf32>
    %93 = arith.mulf %88, %92 : vector<2x32xf32>
    %94 = vector.broadcast %64 : i32 to vector<2x1xi32>
    %95 = arith.cmpi slt, %94, %3 : vector<2x1xi32>
    %96 = arith.extui %95 : vector<2x1xi1> to vector<2x1xi32>
    %97 = arith.sitofp %96 : vector<2x1xi32> to vector<2x1xf32>
    %98 = vector.broadcast %97 : vector<2x1xf32> to vector<2x32xf32>
    %99 = arith.mulf %98, %93 : vector<2x32xf32>
    %cst_31 = arith.constant 1.000000e+00 : f32
    %100 = vector.broadcast %cst_31 : f32 to vector<2x1xf32>
    %101 = arith.subf %100, %97 : vector<2x1xf32>
    %102 = vector.broadcast %101 : vector<2x1xf32> to vector<2x32xf32>
    %103 = arith.mulf %102, %8 : vector<2x32xf32>
    %104 = arith.addf %99, %103 : vector<2x32xf32>
    %105 = vector.broadcast %97 : vector<2x1xf32> to vector<2x32xf32>
    %106 = arith.mulf %105, %91 : vector<2x32xf32>
    %cst_32 = arith.constant 1.000000e+00 : f32
    %107 = vector.broadcast %cst_32 : f32 to vector<2x1xf32>
    %108 = arith.subf %107, %97 : vector<2x1xf32>
    %109 = vector.broadcast %108 : vector<2x1xf32> to vector<2x32xf32>
    %110 = arith.mulf %109, %9 : vector<2x32xf32>
    %111 = arith.addf %106, %110 : vector<2x32xf32>
    %112 = vector.broadcast %97 : vector<2x1xf32> to vector<2x32xf32>
    %113 = arith.mulf %112, %104 : vector<2x32xf32>
    %c3_33 = arith.constant 3 : index
    %c0_34 = arith.constant 0 : index
    %c0_35 = arith.constant 0 : index
    %114 = vector.load %arg6[%c3_33, %c0_34, %c0_35] : memref<4x2x32xf32, #tpu.memory_space<vmem>>, vector<1x2x32xf32>
    %115 = vector.shape_cast %114 : vector<1x2x32xf32> to vector<2x32xf32>
    %116 = vector.shape_cast %113 : vector<2x32xf32> to vector<1x2x32xf32>
    tpu.vector_store %arg6[%c3_33, %c0_34, %c0_35], %116 {strides = array<i32>} : memref<4x2x32xf32, #tpu.memory_space<vmem>>, vector<1x2x32xf32>,
    %c4_i32_36 = arith.constant 4 : i32
    %117 = arith.muli %arg0, %c4_i32_36 : i32
    %c1_i32 = arith.constant 1 : i32
    %118 = arith.addi %117, %c1_i32 : i32
    %c1 = arith.constant 1 : index
    %c0_37 = arith.constant 0 : index
    %c0_38 = arith.constant 0 : index
    %119 = vector.load %arg1[%c1, %c0_37, %c0_38] : memref<4x2x128xf32, #tpu.memory_space<vmem>>, vector<1x2x128xf32>
    %120 = vector.shape_cast %119 : vector<1x2x128xf32> to vector<2x128xf32>
    %cst_39 = arith.constant dense<0.000000e+00> : vector<2x128xf32>
    %121 = tpu.matmul %51, %4, %cst_39 {dimension_numbers = #tpu.dot_dimension_numbers<[1], [0], [0], [1], [0, 0, 1, 1], [], []>, precision = #tpu.contract_precision<fp32>} : vector<2x32xf32>, vector<32x128xf32>, vector<2x128xf32> -> vector<2x128xf32>
    %122 = arith.addf %120, %121 : vector<2x128xf32>
    %123 = vector.extract_strided_slice %122 {offsets = [0, 0], sizes = [2, 32], strides = [1, 1]} : vector<2x128xf32> to vector<2x32xf32>
    %124 = arith.negf %123 : vector<2x32xf32>
    %125 = math.exp %124 : vector<2x32xf32>
    %cst_40 = arith.constant 1.000000e+00 : f32
    %126 = vector.broadcast %cst_40 : f32 to vector<2x32xf32>
    %127 = arith.addf %126, %125 : vector<2x32xf32>
    %128 = arith.divf %126, %127 : vector<2x32xf32>
    %129 = vector.extract_strided_slice %122 {offsets = [0, 32], sizes = [2, 32], strides = [1, 1]} : vector<2x128xf32> to vector<2x32xf32>
    %130 = arith.negf %129 : vector<2x32xf32>
    %131 = math.exp %130 : vector<2x32xf32>
    %cst_41 = arith.constant 1.000000e+00 : f32
    %132 = vector.broadcast %cst_41 : f32 to vector<2x32xf32>
    %133 = arith.addf %132, %131 : vector<2x32xf32>
    %134 = arith.divf %132, %133 : vector<2x32xf32>
    %135 = vector.extract_strided_slice %122 {offsets = [0, 64], sizes = [2, 32], strides = [1, 1]} : vector<2x128xf32> to vector<2x32xf32>
    %136 = math.tanh %135 : vector<2x32xf32>
    %137 = vector.extract_strided_slice %122 {offsets = [0, 96], sizes = [2, 32], strides = [1, 1]} : vector<2x128xf32> to vector<2x32xf32>
    %138 = arith.negf %137 : vector<2x32xf32>
    %139 = math.exp %138 : vector<2x32xf32>
    %cst_42 = arith.constant 1.000000e+00 : f32
    %140 = vector.broadcast %cst_42 : f32 to vector<2x32xf32>
    %141 = arith.addf %140, %139 : vector<2x32xf32>
    %142 = arith.divf %140, %141 : vector<2x32xf32>
    %143 = arith.mulf %134, %58 : vector<2x32xf32>
    %144 = arith.mulf %128, %136 : vector<2x32xf32>
    %145 = arith.addf %143, %144 : vector<2x32xf32>
    %146 = math.tanh %145 : vector<2x32xf32>
    %147 = arith.mulf %142, %146 : vector<2x32xf32>
    %148 = vector.broadcast %118 : i32 to vector<2x1xi32>
    %149 = arith.cmpi slt, %148, %3 : vector<2x1xi32>
    %150 = arith.extui %149 : vector<2x1xi1> to vector<2x1xi32>
    %151 = arith.sitofp %150 : vector<2x1xi32> to vector<2x1xf32>
    %152 = vector.broadcast %151 : vector<2x1xf32> to vector<2x32xf32>
    %153 = arith.mulf %152, %147 : vector<2x32xf32>
    %cst_43 = arith.constant 1.000000e+00 : f32
    %154 = vector.broadcast %cst_43 : f32 to vector<2x1xf32>
    %155 = arith.subf %154, %151 : vector<2x1xf32>
    %156 = vector.broadcast %155 : vector<2x1xf32> to vector<2x32xf32>
    %157 = arith.mulf %156, %51 : vector<2x32xf32>
    %158 = arith.addf %153, %157 : vector<2x32xf32>
    %159 = vector.broadcast %151 : vector<2x1xf32> to vector<2x32xf32>
    %160 = arith.mulf %159, %145 : vector<2x32xf32>
    %cst_44 = arith.constant 1.000000e+00 : f32
    %161 = vector.broadcast %cst_44 : f32 to vector<2x1xf32>
    %162 = arith.subf %161, %151 : vector<2x1xf32>
    %163 = vector.broadcast %162 : vector<2x1xf32> to vector<2x32xf32>
    %164 = arith.mulf %163, %58 : vector<2x32xf32>
    %165 = arith.addf %160, %164 : vector<2x32xf32>
    %166 = vector.broadcast %151 : vector<2x1xf32> to vector<2x32xf32>
    %167 = arith.mulf %166, %158 : vector<2x32xf32>
    %c1_45 = arith.constant 1 : index
    %c0_46 = arith.constant 0 : index
    %c0_47 = arith.constant 0 : index
    %168 = vector.load %arg5[%c1_45, %c0_46, %c0_47] : memref<4x2x32xf32, #tpu.memory_space<vmem>>, vector<1x2x32xf32>
    %169 = vector.shape_cast %168 : vector<1x2x32xf32> to vector<2x32xf32>
    %170 = vector.shape_cast %167 : vector<2x32xf32> to vector<1x2x32xf32>
    tpu.vector_store %arg5[%c1_45, %c0_46, %c0_47], %170 {strides = array<i32>} : memref<4x2x32xf32, #tpu.memory_space<vmem>>, vector<1x2x32xf32>,
    %c7_i32_48 = arith.constant 7 : i32
    %171 = arith.subi %c7_i32_48, %118 : i32
    %c2 = arith.constant 2 : index
    %c0_49 = arith.constant 0 : index
    %c0_50 = arith.constant 0 : index
    %172 = vector.load %arg2[%c2, %c0_49, %c0_50] : memref<4x2x128xf32, #tpu.memory_space<vmem>>, vector<1x2x128xf32>
    %173 = vector.shape_cast %172 : vector<1x2x128xf32> to vector<2x128xf32>
    %cst_51 = arith.constant dense<0.000000e+00> : vector<2x128xf32>
    %174 = tpu.matmul %104, %5, %cst_51 {dimension_numbers = #tpu.dot_dimension_numbers<[1], [0], [0], [1], [0, 0, 1, 1], [], []>, precision = #tpu.contract_precision<fp32>} : vector<2x32xf32>, vector<32x128xf32>, vector<2x128xf32> -> vector<2x128xf32>
    %175 = arith.addf %173, %174 : vector<2x128xf32>
    %176 = vector.extract_strided_slice %175 {offsets = [0, 0], sizes = [2, 32], strides = [1, 1]} : vector<2x128xf32> to vector<2x32xf32>
    %177 = arith.negf %176 : vector<2x32xf32>
    %178 = math.exp %177 : vector<2x32xf32>
    %cst_52 = arith.constant 1.000000e+00 : f32
    %179 = vector.broadcast %cst_52 : f32 to vector<2x32xf32>
    %180 = arith.addf %179, %178 : vector<2x32xf32>
    %181 = arith.divf %179, %180 : vector<2x32xf32>
    %182 = vector.extract_strided_slice %175 {offsets = [0, 32], sizes = [2, 32], strides = [1, 1]} : vector<2x128xf32> to vector<2x32xf32>
    %183 = arith.negf %182 : vector<2x32xf32>
    %184 = math.exp %183 : vector<2x32xf32>
    %cst_53 = arith.constant 1.000000e+00 : f32
    %185 = vector.broadcast %cst_53 : f32 to vector<2x32xf32>
    %186 = arith.addf %185, %184 : vector<2x32xf32>
    %187 = arith.divf %185, %186 : vector<2x32xf32>
    %188 = vector.extract_strided_slice %175 {offsets = [0, 64], sizes = [2, 32], strides = [1, 1]} : vector<2x128xf32> to vector<2x32xf32>
    %189 = math.tanh %188 : vector<2x32xf32>
    %190 = vector.extract_strided_slice %175 {offsets = [0, 96], sizes = [2, 32], strides = [1, 1]} : vector<2x128xf32> to vector<2x32xf32>
    %191 = arith.negf %190 : vector<2x32xf32>
    %192 = math.exp %191 : vector<2x32xf32>
    %cst_54 = arith.constant 1.000000e+00 : f32
    %193 = vector.broadcast %cst_54 : f32 to vector<2x32xf32>
    %194 = arith.addf %193, %192 : vector<2x32xf32>
    %195 = arith.divf %193, %194 : vector<2x32xf32>
    %196 = arith.mulf %187, %111 : vector<2x32xf32>
    %197 = arith.mulf %181, %189 : vector<2x32xf32>
    %198 = arith.addf %196, %197 : vector<2x32xf32>
    %199 = math.tanh %198 : vector<2x32xf32>
    %200 = arith.mulf %195, %199 : vector<2x32xf32>
    %201 = vector.broadcast %171 : i32 to vector<2x1xi32>
    %202 = arith.cmpi slt, %201, %3 : vector<2x1xi32>
    %203 = arith.extui %202 : vector<2x1xi1> to vector<2x1xi32>
    %204 = arith.sitofp %203 : vector<2x1xi32> to vector<2x1xf32>
    %205 = vector.broadcast %204 : vector<2x1xf32> to vector<2x32xf32>
    %206 = arith.mulf %205, %200 : vector<2x32xf32>
    %cst_55 = arith.constant 1.000000e+00 : f32
    %207 = vector.broadcast %cst_55 : f32 to vector<2x1xf32>
    %208 = arith.subf %207, %204 : vector<2x1xf32>
    %209 = vector.broadcast %208 : vector<2x1xf32> to vector<2x32xf32>
    %210 = arith.mulf %209, %104 : vector<2x32xf32>
    %211 = arith.addf %206, %210 : vector<2x32xf32>
    %212 = vector.broadcast %204 : vector<2x1xf32> to vector<2x32xf32>
    %213 = arith.mulf %212, %198 : vector<2x32xf32>
    %cst_56 = arith.constant 1.000000e+00 : f32
    %214 = vector.broadcast %cst_56 : f32 to vector<2x1xf32>
    %215 = arith.subf %214, %204 : vector<2x1xf32>
    %216 = vector.broadcast %215 : vector<2x1xf32> to vector<2x32xf32>
    %217 = arith.mulf %216, %111 : vector<2x32xf32>
    %218 = arith.addf %213, %217 : vector<2x32xf32>
    %219 = vector.broadcast %204 : vector<2x1xf32> to vector<2x32xf32>
    %220 = arith.mulf %219, %211 : vector<2x32xf32>
    %c2_57 = arith.constant 2 : index
    %c0_58 = arith.constant 0 : index
    %c0_59 = arith.constant 0 : index
    %221 = vector.load %arg6[%c2_57, %c0_58, %c0_59] : memref<4x2x32xf32, #tpu.memory_space<vmem>>, vector<1x2x32xf32>
    %222 = vector.shape_cast %221 : vector<1x2x32xf32> to vector<2x32xf32>
    %223 = vector.shape_cast %220 : vector<2x32xf32> to vector<1x2x32xf32>
    tpu.vector_store %arg6[%c2_57, %c0_58, %c0_59], %223 {strides = array<i32>} : memref<4x2x32xf32, #tpu.memory_space<vmem>>, vector<1x2x32xf32>,
    %c4_i32_60 = arith.constant 4 : i32
    %224 = arith.muli %arg0, %c4_i32_60 : i32
    %c2_i32 = arith.constant 2 : i32
    %225 = arith.addi %224, %c2_i32 : i32
    %c2_61 = arith.constant 2 : index
    %c0_62 = arith.constant 0 : index
    %c0_63 = arith.constant 0 : index
    %226 = vector.load %arg1[%c2_61, %c0_62, %c0_63] : memref<4x2x128xf32, #tpu.memory_space<vmem>>, vector<1x2x128xf32>
    %227 = vector.shape_cast %226 : vector<1x2x128xf32> to vector<2x128xf32>
    %cst_64 = arith.constant dense<0.000000e+00> : vector<2x128xf32>
    %228 = tpu.matmul %158, %4, %cst_64 {dimension_numbers = #tpu.dot_dimension_numbers<[1], [0], [0], [1], [0, 0, 1, 1], [], []>, precision = #tpu.contract_precision<fp32>} : vector<2x32xf32>, vector<32x128xf32>, vector<2x128xf32> -> vector<2x128xf32>
    %229 = arith.addf %227, %228 : vector<2x128xf32>
    %230 = vector.extract_strided_slice %229 {offsets = [0, 0], sizes = [2, 32], strides = [1, 1]} : vector<2x128xf32> to vector<2x32xf32>
    %231 = arith.negf %230 : vector<2x32xf32>
    %232 = math.exp %231 : vector<2x32xf32>
    %cst_65 = arith.constant 1.000000e+00 : f32
    %233 = vector.broadcast %cst_65 : f32 to vector<2x32xf32>
    %234 = arith.addf %233, %232 : vector<2x32xf32>
    %235 = arith.divf %233, %234 : vector<2x32xf32>
    %236 = vector.extract_strided_slice %229 {offsets = [0, 32], sizes = [2, 32], strides = [1, 1]} : vector<2x128xf32> to vector<2x32xf32>
    %237 = arith.negf %236 : vector<2x32xf32>
    %238 = math.exp %237 : vector<2x32xf32>
    %cst_66 = arith.constant 1.000000e+00 : f32
    %239 = vector.broadcast %cst_66 : f32 to vector<2x32xf32>
    %240 = arith.addf %239, %238 : vector<2x32xf32>
    %241 = arith.divf %239, %240 : vector<2x32xf32>
    %242 = vector.extract_strided_slice %229 {offsets = [0, 64], sizes = [2, 32], strides = [1, 1]} : vector<2x128xf32> to vector<2x32xf32>
    %243 = math.tanh %242 : vector<2x32xf32>
    %244 = vector.extract_strided_slice %229 {offsets = [0, 96], sizes = [2, 32], strides = [1, 1]} : vector<2x128xf32> to vector<2x32xf32>
    %245 = arith.negf %244 : vector<2x32xf32>
    %246 = math.exp %245 : vector<2x32xf32>
    %cst_67 = arith.constant 1.000000e+00 : f32
    %247 = vector.broadcast %cst_67 : f32 to vector<2x32xf32>
    %248 = arith.addf %247, %246 : vector<2x32xf32>
    %249 = arith.divf %247, %248 : vector<2x32xf32>
    %250 = arith.mulf %241, %165 : vector<2x32xf32>
    %251 = arith.mulf %235, %243 : vector<2x32xf32>
    %252 = arith.addf %250, %251 : vector<2x32xf32>
    %253 = math.tanh %252 : vector<2x32xf32>
    %254 = arith.mulf %249, %253 : vector<2x32xf32>
    %255 = vector.broadcast %225 : i32 to vector<2x1xi32>
    %256 = arith.cmpi slt, %255, %3 : vector<2x1xi32>
    %257 = arith.extui %256 : vector<2x1xi1> to vector<2x1xi32>
    %258 = arith.sitofp %257 : vector<2x1xi32> to vector<2x1xf32>
    %259 = vector.broadcast %258 : vector<2x1xf32> to vector<2x32xf32>
    %260 = arith.mulf %259, %254 : vector<2x32xf32>
    %cst_68 = arith.constant 1.000000e+00 : f32
    %261 = vector.broadcast %cst_68 : f32 to vector<2x1xf32>
    %262 = arith.subf %261, %258 : vector<2x1xf32>
    %263 = vector.broadcast %262 : vector<2x1xf32> to vector<2x32xf32>
    %264 = arith.mulf %263, %158 : vector<2x32xf32>
    %265 = arith.addf %260, %264 : vector<2x32xf32>
    %266 = vector.broadcast %258 : vector<2x1xf32> to vector<2x32xf32>
    %267 = arith.mulf %266, %252 : vector<2x32xf32>
    %cst_69 = arith.constant 1.000000e+00 : f32
    %268 = vector.broadcast %cst_69 : f32 to vector<2x1xf32>
    %269 = arith.subf %268, %258 : vector<2x1xf32>
    %270 = vector.broadcast %269 : vector<2x1xf32> to vector<2x32xf32>
    %271 = arith.mulf %270, %165 : vector<2x32xf32>
    %272 = arith.addf %267, %271 : vector<2x32xf32>
    %273 = vector.broadcast %258 : vector<2x1xf32> to vector<2x32xf32>
    %274 = arith.mulf %273, %265 : vector<2x32xf32>
    %c2_70 = arith.constant 2 : index
    %c0_71 = arith.constant 0 : index
    %c0_72 = arith.constant 0 : index
    %275 = vector.load %arg5[%c2_70, %c0_71, %c0_72] : memref<4x2x32xf32, #tpu.memory_space<vmem>>, vector<1x2x32xf32>
    %276 = vector.shape_cast %275 : vector<1x2x32xf32> to vector<2x32xf32>
    %277 = vector.shape_cast %274 : vector<2x32xf32> to vector<1x2x32xf32>
    tpu.vector_store %arg5[%c2_70, %c0_71, %c0_72], %277 {strides = array<i32>} : memref<4x2x32xf32, #tpu.memory_space<vmem>>, vector<1x2x32xf32>,
    %c7_i32_73 = arith.constant 7 : i32
    %278 = arith.subi %c7_i32_73, %225 : i32
    %c1_74 = arith.constant 1 : index
    %c0_75 = arith.constant 0 : index
    %c0_76 = arith.constant 0 : index
    %279 = vector.load %arg2[%c1_74, %c0_75, %c0_76] : memref<4x2x128xf32, #tpu.memory_space<vmem>>, vector<1x2x128xf32>
    %280 = vector.shape_cast %279 : vector<1x2x128xf32> to vector<2x128xf32>
    %cst_77 = arith.constant dense<0.000000e+00> : vector<2x128xf32>
    %281 = tpu.matmul %211, %5, %cst_77 {dimension_numbers = #tpu.dot_dimension_numbers<[1], [0], [0], [1], [0, 0, 1, 1], [], []>, precision = #tpu.contract_precision<fp32>} : vector<2x32xf32>, vector<32x128xf32>, vector<2x128xf32> -> vector<2x128xf32>
    %282 = arith.addf %280, %281 : vector<2x128xf32>
    %283 = vector.extract_strided_slice %282 {offsets = [0, 0], sizes = [2, 32], strides = [1, 1]} : vector<2x128xf32> to vector<2x32xf32>
    %284 = arith.negf %283 : vector<2x32xf32>
    %285 = math.exp %284 : vector<2x32xf32>
    %cst_78 = arith.constant 1.000000e+00 : f32
    %286 = vector.broadcast %cst_78 : f32 to vector<2x32xf32>
    %287 = arith.addf %286, %285 : vector<2x32xf32>
    %288 = arith.divf %286, %287 : vector<2x32xf32>
    %289 = vector.extract_strided_slice %282 {offsets = [0, 32], sizes = [2, 32], strides = [1, 1]} : vector<2x128xf32> to vector<2x32xf32>
    %290 = arith.negf %289 : vector<2x32xf32>
    %291 = math.exp %290 : vector<2x32xf32>
    %cst_79 = arith.constant 1.000000e+00 : f32
    %292 = vector.broadcast %cst_79 : f32 to vector<2x32xf32>
    %293 = arith.addf %292, %291 : vector<2x32xf32>
    %294 = arith.divf %292, %293 : vector<2x32xf32>
    %295 = vector.extract_strided_slice %282 {offsets = [0, 64], sizes = [2, 32], strides = [1, 1]} : vector<2x128xf32> to vector<2x32xf32>
    %296 = math.tanh %295 : vector<2x32xf32>
    %297 = vector.extract_strided_slice %282 {offsets = [0, 96], sizes = [2, 32], strides = [1, 1]} : vector<2x128xf32> to vector<2x32xf32>
    %298 = arith.negf %297 : vector<2x32xf32>
    %299 = math.exp %298 : vector<2x32xf32>
    %cst_80 = arith.constant 1.000000e+00 : f32
    %300 = vector.broadcast %cst_80 : f32 to vector<2x32xf32>
    %301 = arith.addf %300, %299 : vector<2x32xf32>
    %302 = arith.divf %300, %301 : vector<2x32xf32>
    %303 = arith.mulf %294, %218 : vector<2x32xf32>
    %304 = arith.mulf %288, %296 : vector<2x32xf32>
    %305 = arith.addf %303, %304 : vector<2x32xf32>
    %306 = math.tanh %305 : vector<2x32xf32>
    %307 = arith.mulf %302, %306 : vector<2x32xf32>
    %308 = vector.broadcast %278 : i32 to vector<2x1xi32>
    %309 = arith.cmpi slt, %308, %3 : vector<2x1xi32>
    %310 = arith.extui %309 : vector<2x1xi1> to vector<2x1xi32>
    %311 = arith.sitofp %310 : vector<2x1xi32> to vector<2x1xf32>
    %312 = vector.broadcast %311 : vector<2x1xf32> to vector<2x32xf32>
    %313 = arith.mulf %312, %307 : vector<2x32xf32>
    %cst_81 = arith.constant 1.000000e+00 : f32
    %314 = vector.broadcast %cst_81 : f32 to vector<2x1xf32>
    %315 = arith.subf %314, %311 : vector<2x1xf32>
    %316 = vector.broadcast %315 : vector<2x1xf32> to vector<2x32xf32>
    %317 = arith.mulf %316, %211 : vector<2x32xf32>
    %318 = arith.addf %313, %317 : vector<2x32xf32>
    %319 = vector.broadcast %311 : vector<2x1xf32> to vector<2x32xf32>
    %320 = arith.mulf %319, %305 : vector<2x32xf32>
    %cst_82 = arith.constant 1.000000e+00 : f32
    %321 = vector.broadcast %cst_82 : f32 to vector<2x1xf32>
    %322 = arith.subf %321, %311 : vector<2x1xf32>
    %323 = vector.broadcast %322 : vector<2x1xf32> to vector<2x32xf32>
    %324 = arith.mulf %323, %218 : vector<2x32xf32>
    %325 = arith.addf %320, %324 : vector<2x32xf32>
    %326 = vector.broadcast %311 : vector<2x1xf32> to vector<2x32xf32>
    %327 = arith.mulf %326, %318 : vector<2x32xf32>
    %c1_83 = arith.constant 1 : index
    %c0_84 = arith.constant 0 : index
    %c0_85 = arith.constant 0 : index
    %328 = vector.load %arg6[%c1_83, %c0_84, %c0_85] : memref<4x2x32xf32, #tpu.memory_space<vmem>>, vector<1x2x32xf32>
    %329 = vector.shape_cast %328 : vector<1x2x32xf32> to vector<2x32xf32>
    %330 = vector.shape_cast %327 : vector<2x32xf32> to vector<1x2x32xf32>
    tpu.vector_store %arg6[%c1_83, %c0_84, %c0_85], %330 {strides = array<i32>} : memref<4x2x32xf32, #tpu.memory_space<vmem>>, vector<1x2x32xf32>,
    %c4_i32_86 = arith.constant 4 : i32
    %331 = arith.muli %arg0, %c4_i32_86 : i32
    %c3_i32 = arith.constant 3 : i32
    %332 = arith.addi %331, %c3_i32 : i32
    %c3_87 = arith.constant 3 : index
    %c0_88 = arith.constant 0 : index
    %c0_89 = arith.constant 0 : index
    %333 = vector.load %arg1[%c3_87, %c0_88, %c0_89] : memref<4x2x128xf32, #tpu.memory_space<vmem>>, vector<1x2x128xf32>
    %334 = vector.shape_cast %333 : vector<1x2x128xf32> to vector<2x128xf32>
    %cst_90 = arith.constant dense<0.000000e+00> : vector<2x128xf32>
    %335 = tpu.matmul %265, %4, %cst_90 {dimension_numbers = #tpu.dot_dimension_numbers<[1], [0], [0], [1], [0, 0, 1, 1], [], []>, precision = #tpu.contract_precision<fp32>} : vector<2x32xf32>, vector<32x128xf32>, vector<2x128xf32> -> vector<2x128xf32>
    %336 = arith.addf %334, %335 : vector<2x128xf32>
    %337 = vector.extract_strided_slice %336 {offsets = [0, 0], sizes = [2, 32], strides = [1, 1]} : vector<2x128xf32> to vector<2x32xf32>
    %338 = arith.negf %337 : vector<2x32xf32>
    %339 = math.exp %338 : vector<2x32xf32>
    %cst_91 = arith.constant 1.000000e+00 : f32
    %340 = vector.broadcast %cst_91 : f32 to vector<2x32xf32>
    %341 = arith.addf %340, %339 : vector<2x32xf32>
    %342 = arith.divf %340, %341 : vector<2x32xf32>
    %343 = vector.extract_strided_slice %336 {offsets = [0, 32], sizes = [2, 32], strides = [1, 1]} : vector<2x128xf32> to vector<2x32xf32>
    %344 = arith.negf %343 : vector<2x32xf32>
    %345 = math.exp %344 : vector<2x32xf32>
    %cst_92 = arith.constant 1.000000e+00 : f32
    %346 = vector.broadcast %cst_92 : f32 to vector<2x32xf32>
    %347 = arith.addf %346, %345 : vector<2x32xf32>
    %348 = arith.divf %346, %347 : vector<2x32xf32>
    %349 = vector.extract_strided_slice %336 {offsets = [0, 64], sizes = [2, 32], strides = [1, 1]} : vector<2x128xf32> to vector<2x32xf32>
    %350 = math.tanh %349 : vector<2x32xf32>
    %351 = vector.extract_strided_slice %336 {offsets = [0, 96], sizes = [2, 32], strides = [1, 1]} : vector<2x128xf32> to vector<2x32xf32>
    %352 = arith.negf %351 : vector<2x32xf32>
    %353 = math.exp %352 : vector<2x32xf32>
    %cst_93 = arith.constant 1.000000e+00 : f32
    %354 = vector.broadcast %cst_93 : f32 to vector<2x32xf32>
    %355 = arith.addf %354, %353 : vector<2x32xf32>
    %356 = arith.divf %354, %355 : vector<2x32xf32>
    %357 = arith.mulf %348, %272 : vector<2x32xf32>
    %358 = arith.mulf %342, %350 : vector<2x32xf32>
    %359 = arith.addf %357, %358 : vector<2x32xf32>
    %360 = math.tanh %359 : vector<2x32xf32>
    %361 = arith.mulf %356, %360 : vector<2x32xf32>
    %362 = vector.broadcast %332 : i32 to vector<2x1xi32>
    %363 = arith.cmpi slt, %362, %3 : vector<2x1xi32>
    %364 = arith.extui %363 : vector<2x1xi1> to vector<2x1xi32>
    %365 = arith.sitofp %364 : vector<2x1xi32> to vector<2x1xf32>
    %366 = vector.broadcast %365 : vector<2x1xf32> to vector<2x32xf32>
    %367 = arith.mulf %366, %361 : vector<2x32xf32>
    %cst_94 = arith.constant 1.000000e+00 : f32
    %368 = vector.broadcast %cst_94 : f32 to vector<2x1xf32>
    %369 = arith.subf %368, %365 : vector<2x1xf32>
    %370 = vector.broadcast %369 : vector<2x1xf32> to vector<2x32xf32>
    %371 = arith.mulf %370, %265 : vector<2x32xf32>
    %372 = arith.addf %367, %371 : vector<2x32xf32>
    %373 = vector.broadcast %365 : vector<2x1xf32> to vector<2x32xf32>
    %374 = arith.mulf %373, %359 : vector<2x32xf32>
    %cst_95 = arith.constant 1.000000e+00 : f32
    %375 = vector.broadcast %cst_95 : f32 to vector<2x1xf32>
    %376 = arith.subf %375, %365 : vector<2x1xf32>
    %377 = vector.broadcast %376 : vector<2x1xf32> to vector<2x32xf32>
    %378 = arith.mulf %377, %272 : vector<2x32xf32>
    %379 = arith.addf %374, %378 : vector<2x32xf32>
    %380 = vector.broadcast %365 : vector<2x1xf32> to vector<2x32xf32>
    %381 = arith.mulf %380, %372 : vector<2x32xf32>
    %c3_96 = arith.constant 3 : index
    %c0_97 = arith.constant 0 : index
    %c0_98 = arith.constant 0 : index
    %382 = vector.load %arg5[%c3_96, %c0_97, %c0_98] : memref<4x2x32xf32, #tpu.memory_space<vmem>>, vector<1x2x32xf32>
    %383 = vector.shape_cast %382 : vector<1x2x32xf32> to vector<2x32xf32>
    %384 = vector.shape_cast %381 : vector<2x32xf32> to vector<1x2x32xf32>
    tpu.vector_store %arg5[%c3_96, %c0_97, %c0_98], %384 {strides = array<i32>} : memref<4x2x32xf32, #tpu.memory_space<vmem>>, vector<1x2x32xf32>,
    %c7_i32_99 = arith.constant 7 : i32
    %385 = arith.subi %c7_i32_99, %332 : i32
    %c0_100 = arith.constant 0 : index
    %c0_101 = arith.constant 0 : index
    %c0_102 = arith.constant 0 : index
    %386 = vector.load %arg2[%c0_100, %c0_101, %c0_102] : memref<4x2x128xf32, #tpu.memory_space<vmem>>, vector<1x2x128xf32>
    %387 = vector.shape_cast %386 : vector<1x2x128xf32> to vector<2x128xf32>
    %cst_103 = arith.constant dense<0.000000e+00> : vector<2x128xf32>
    %388 = tpu.matmul %318, %5, %cst_103 {dimension_numbers = #tpu.dot_dimension_numbers<[1], [0], [0], [1], [0, 0, 1, 1], [], []>, precision = #tpu.contract_precision<fp32>} : vector<2x32xf32>, vector<32x128xf32>, vector<2x128xf32> -> vector<2x128xf32>
    %389 = arith.addf %387, %388 : vector<2x128xf32>
    %390 = vector.extract_strided_slice %389 {offsets = [0, 0], sizes = [2, 32], strides = [1, 1]} : vector<2x128xf32> to vector<2x32xf32>
    %391 = arith.negf %390 : vector<2x32xf32>
    %392 = math.exp %391 : vector<2x32xf32>
    %cst_104 = arith.constant 1.000000e+00 : f32
    %393 = vector.broadcast %cst_104 : f32 to vector<2x32xf32>
    %394 = arith.addf %393, %392 : vector<2x32xf32>
    %395 = arith.divf %393, %394 : vector<2x32xf32>
    %396 = vector.extract_strided_slice %389 {offsets = [0, 32], sizes = [2, 32], strides = [1, 1]} : vector<2x128xf32> to vector<2x32xf32>
    %397 = arith.negf %396 : vector<2x32xf32>
    %398 = math.exp %397 : vector<2x32xf32>
    %cst_105 = arith.constant 1.000000e+00 : f32
    %399 = vector.broadcast %cst_105 : f32 to vector<2x32xf32>
    %400 = arith.addf %399, %398 : vector<2x32xf32>
    %401 = arith.divf %399, %400 : vector<2x32xf32>
    %402 = vector.extract_strided_slice %389 {offsets = [0, 64], sizes = [2, 32], strides = [1, 1]} : vector<2x128xf32> to vector<2x32xf32>
    %403 = math.tanh %402 : vector<2x32xf32>
    %404 = vector.extract_strided_slice %389 {offsets = [0, 96], sizes = [2, 32], strides = [1, 1]} : vector<2x128xf32> to vector<2x32xf32>
    %405 = arith.negf %404 : vector<2x32xf32>
    %406 = math.exp %405 : vector<2x32xf32>
    %cst_106 = arith.constant 1.000000e+00 : f32
    %407 = vector.broadcast %cst_106 : f32 to vector<2x32xf32>
    %408 = arith.addf %407, %406 : vector<2x32xf32>
    %409 = arith.divf %407, %408 : vector<2x32xf32>
    %410 = arith.mulf %401, %325 : vector<2x32xf32>
    %411 = arith.mulf %395, %403 : vector<2x32xf32>
    %412 = arith.addf %410, %411 : vector<2x32xf32>
    %413 = math.tanh %412 : vector<2x32xf32>
    %414 = arith.mulf %409, %413 : vector<2x32xf32>
    %415 = vector.broadcast %385 : i32 to vector<2x1xi32>
    %416 = arith.cmpi slt, %415, %3 : vector<2x1xi32>
    %417 = arith.extui %416 : vector<2x1xi1> to vector<2x1xi32>
    %418 = arith.sitofp %417 : vector<2x1xi32> to vector<2x1xf32>
    %419 = vector.broadcast %418 : vector<2x1xf32> to vector<2x32xf32>
    %420 = arith.mulf %419, %414 : vector<2x32xf32>
    %cst_107 = arith.constant 1.000000e+00 : f32
    %421 = vector.broadcast %cst_107 : f32 to vector<2x1xf32>
    %422 = arith.subf %421, %418 : vector<2x1xf32>
    %423 = vector.broadcast %422 : vector<2x1xf32> to vector<2x32xf32>
    %424 = arith.mulf %423, %318 : vector<2x32xf32>
    %425 = arith.addf %420, %424 : vector<2x32xf32>
    %426 = vector.broadcast %418 : vector<2x1xf32> to vector<2x32xf32>
    %427 = arith.mulf %426, %412 : vector<2x32xf32>
    %cst_108 = arith.constant 1.000000e+00 : f32
    %428 = vector.broadcast %cst_108 : f32 to vector<2x1xf32>
    %429 = arith.subf %428, %418 : vector<2x1xf32>
    %430 = vector.broadcast %429 : vector<2x1xf32> to vector<2x32xf32>
    %431 = arith.mulf %430, %325 : vector<2x32xf32>
    %432 = arith.addf %427, %431 : vector<2x32xf32>
    %433 = vector.broadcast %418 : vector<2x1xf32> to vector<2x32xf32>
    %434 = arith.mulf %433, %425 : vector<2x32xf32>
    %c0_109 = arith.constant 0 : index
    %c0_110 = arith.constant 0 : index
    %c0_111 = arith.constant 0 : index
    %435 = vector.load %arg6[%c0_109, %c0_110, %c0_111] : memref<4x2x32xf32, #tpu.memory_space<vmem>>, vector<1x2x32xf32>
    %436 = vector.shape_cast %435 : vector<1x2x32xf32> to vector<2x32xf32>
    %437 = vector.shape_cast %434 : vector<2x32xf32> to vector<1x2x32xf32>
    tpu.vector_store %arg6[%c0_109, %c0_110, %c0_111], %437 {strides = array<i32>} : memref<4x2x32xf32, #tpu.memory_space<vmem>>, vector<1x2x32xf32>,
    %c0_112 = arith.constant 0 : index
    %c0_113 = arith.constant 0 : index
    %438 = vector.load %arg9[%c0_112, %c0_113] : memref<2x32xf32, #tpu.memory_space<vmem>>, vector<2x32xf32>
    tpu.vector_store %arg9[%c0_112, %c0_113], %372 {strides = array<i32>} : memref<2x32xf32, #tpu.memory_space<vmem>>, vector<2x32xf32>,
    %c0_114 = arith.constant 0 : index
    %c0_115 = arith.constant 0 : index
    %439 = vector.load %arg10[%c0_114, %c0_115] : memref<2x32xf32, #tpu.memory_space<vmem>>, vector<2x32xf32>
    tpu.vector_store %arg10[%c0_114, %c0_115], %379 {strides = array<i32>} : memref<2x32xf32, #tpu.memory_space<vmem>>, vector<2x32xf32>,
    %c0_116 = arith.constant 0 : index
    %c0_117 = arith.constant 0 : index
    %440 = vector.load %arg11[%c0_116, %c0_117] : memref<2x32xf32, #tpu.memory_space<vmem>>, vector<2x32xf32>
    tpu.vector_store %arg11[%c0_116, %c0_117], %425 {strides = array<i32>} : memref<2x32xf32, #tpu.memory_space<vmem>>, vector<2x32xf32>,
    %c0_118 = arith.constant 0 : index
    %c0_119 = arith.constant 0 : index
    %441 = vector.load %arg12[%c0_118, %c0_119] : memref<2x32xf32, #tpu.memory_space<vmem>>, vector<2x32xf32>
    tpu.vector_store %arg12[%c0_118, %c0_119], %432 {strides = array<i32>} : memref<2x32xf32, #tpu.memory_space<vmem>>, vector<2x32xf32>,
    %c1_i32_120 = arith.constant 1 : i32
    %442 = arith.cmpi eq, %arg0, %c1_i32_120 : i32
    %443 = arith.extui %442 : i1 to i32
    %c0_i32_121 = arith.constant 0 : i32
    %444 = arith.cmpi ne, %443, %c0_i32_121 : i32
    scf.if %444 {
      %c0_122 = arith.constant 0 : index
      %c0_123 = arith.constant 0 : index
      %445 = vector.load %arg7[%c0_122, %c0_123] : memref<2x32xf32, #tpu.memory_space<vmem>>, vector<2x32xf32>
      tpu.vector_store %arg7[%c0_122, %c0_123], %372 {strides = array<i32>} : memref<2x32xf32, #tpu.memory_space<vmem>>, vector<2x32xf32>,
      %c0_124 = arith.constant 0 : index
      %c0_125 = arith.constant 0 : index
      %446 = vector.load %arg8[%c0_124, %c0_125] : memref<2x32xf32, #tpu.memory_space<vmem>>, vector<2x32xf32>
      tpu.vector_store %arg8[%c0_124, %c0_125], %425 {strides = array<i32>} : memref<2x32xf32, #tpu.memory_space<vmem>>, vector<2x32xf32>,
    } else {
    }
    return
  }
  func.func @transform_0(%arg0: i32) -> (i32, i32, i32) {
    %c0_i32 = arith.constant 0 : i32
    %c0_i32_0 = arith.constant 0 : i32
    %c0_i32_1 = arith.constant 0 : i32
    return %arg0, %c0_i32, %c0_i32_0 : i32, i32, i32
  }
  func.func @transform_1(%arg0: i32) -> (i32, i32, i32) {
    %c1_i32 = arith.constant 1 : i32
    %0 = arith.subi %c1_i32, %arg0 : i32
    %c0_i32 = arith.constant 0 : i32
    %c1_i32_0 = arith.constant 1 : i32
    %c0_i32_1 = arith.constant 0 : i32
    return %0, %c0_i32, %c1_i32_0 : i32, i32, i32
  }
  func.func @transform_2(%arg0: i32) -> (i32, i32) {
    %c0_i32 = arith.constant 0 : i32
    %c0_i32_0 = arith.constant 0 : i32
    %c0_i32_1 = arith.constant 0 : i32
    return %c0_i32, %c0_i32_0 : i32, i32
  }
  func.func @transform_3(%arg0: i32) -> (i32, i32) {
    %c0_i32 = arith.constant 0 : i32
    %c0_i32_0 = arith.constant 0 : i32
    %c0_i32_1 = arith.constant 0 : i32
    return %c0_i32, %c0_i32_0 : i32, i32
  }
  func.func @transform_4(%arg0: i32) -> (i32, i32, i32) {
    %c0_i32 = arith.constant 0 : i32
    %c0_i32_0 = arith.constant 0 : i32
    %c0_i32_1 = arith.constant 0 : i32
    return %arg0, %c0_i32, %c0_i32_0 : i32, i32, i32
  }
  func.func @transform_5(%arg0: i32) -> (i32, i32, i32) {
    %c1_i32 = arith.constant 1 : i32
    %0 = arith.subi %c1_i32, %arg0 : i32
    %c0_i32 = arith.constant 0 : i32
    %c0_i32_0 = arith.constant 0 : i32
    %c0_i32_1 = arith.constant 0 : i32
    return %0, %c0_i32, %c0_i32_0 : i32, i32, i32
  }
  func.func @transform_6(%arg0: i32) -> (i32, i32) {
    %c0_i32 = arith.constant 0 : i32
    %c0_i32_0 = arith.constant 0 : i32
    %c0_i32_1 = arith.constant 0 : i32
    return %c0_i32, %c0_i32_0 : i32, i32
  }
  func.func @transform_7(%arg0: i32) -> (i32, i32) {
    %c0_i32 = arith.constant 0 : i32
    %c0_i32_0 = arith.constant 0 : i32
    %c0_i32_1 = arith.constant 0 : i32
    return %c0_i32, %c0_i32_0 : i32, i32
  }
}

module attributes {stable_mosaic.version = 11 : i64} {
  func.func @_bilstm_kernel(%arg0: i32, %arg1: memref<4x2x128xf32, #tpu.memory_space<vmem>>, %arg2: memref<4x2x128xf32, #tpu.memory_space<vmem>>, %arg3: memref<32x256xf32, #tpu.memory_space<vmem>>, %arg4: memref<2x1xi32, #tpu.memory_space<vmem>>, %arg5: memref<4x2x32xf32, #tpu.memory_space<vmem>>, %arg6: memref<4x2x32xf32, #tpu.memory_space<vmem>>, %arg7: memref<2x32xf32, #tpu.memory_space<vmem>>, %arg8: memref<2x32xf32, #tpu.memory_space<vmem>>, %arg9: memref<2x32xf32, #tpu.memory_space<vmem>>, %arg10: memref<2x32xf32, #tpu.memory_space<vmem>>, %arg11: memref<2x32xf32, #tpu.memory_space<vmem>>, %arg12: memref<2x32xf32, #tpu.memory_space<vmem>>) attributes {dimension_semantics = [#tpu.dimension_semantics<arbitrary>], iteration_bounds = array<i64: 2>, scalar_prefetch = 0 : i64, scratch_operands = 4 : i64, tpu.core_type = #tpu.core_type<tc>, window_params = [{transform_indices = @transform_0, window_bounds = array<i64: 4, 2, 128>}, {transform_indices = @transform_1, window_bounds = array<i64: 4, 2, 128>}, {pipeline_mode = #tpu.pipeline_mode<synchronous>, transform_indices = @transform_2, window_bounds = array<i64: 32, 256>}, {pipeline_mode = #tpu.pipeline_mode<synchronous>, transform_indices = @transform_3, window_bounds = array<i64: 2, 1>}, {transform_indices = @transform_4, window_bounds = array<i64: 4, 2, 32>}, {transform_indices = @transform_5, window_bounds = array<i64: 4, 2, 32>}, {pipeline_mode = #tpu.pipeline_mode<synchronous>, transform_indices = @transform_6, window_bounds = array<i64: 2, 32>}, {pipeline_mode = #tpu.pipeline_mode<synchronous>, transform_indices = @transform_7, window_bounds = array<i64: 2, 32>}]} {
    %c0_i32 = arith.constant 0 : i32
    %0 = arith.cmpi eq, %arg0, %c0_i32 : i32
    %1 = arith.extui %0 : i1 to i32
    %c0_i32_0 = arith.constant 0 : i32
    %2 = arith.cmpi ne, %1, %c0_i32_0 : i32
    scf.if %2 {
      %cst_122 = arith.constant 0.000000e+00 : f32
      %445 = vector.broadcast %cst_122 : f32 to vector<2x32xf32>
      %c0_123 = arith.constant 0 : index
      %c0_124 = arith.constant 0 : index
      %446 = vector.load %arg9[%c0_123, %c0_124] : memref<2x32xf32, #tpu.memory_space<vmem>>, vector<2x32xf32>
      tpu.vector_store %arg9[%c0_123, %c0_124], %445 {strides = array<i32>} : memref<2x32xf32, #tpu.memory_space<vmem>>, vector<2x32xf32>,
      %cst_125 = arith.constant 0.000000e+00 : f32
      %447 = vector.broadcast %cst_125 : f32 to vector<2x32xf32>
      %c0_126 = arith.constant 0 : index
      %c0_127 = arith.constant 0 : index
      %448 = vector.load %arg10[%c0_126, %c0_127] : memref<2x32xf32, #tpu.memory_space<vmem>>, vector<2x32xf32>
      tpu.vector_store %arg10[%c0_126, %c0_127], %447 {strides = array<i32>} : memref<2x32xf32, #tpu.memory_space<vmem>>, vector<2x32xf32>,
      %cst_128 = arith.constant 0.000000e+00 : f32
      %449 = vector.broadcast %cst_128 : f32 to vector<2x32xf32>
      %c0_129 = arith.constant 0 : index
      %c0_130 = arith.constant 0 : index
      %450 = vector.load %arg11[%c0_129, %c0_130] : memref<2x32xf32, #tpu.memory_space<vmem>>, vector<2x32xf32>
      tpu.vector_store %arg11[%c0_129, %c0_130], %449 {strides = array<i32>} : memref<2x32xf32, #tpu.memory_space<vmem>>, vector<2x32xf32>,
      %cst_131 = arith.constant 0.000000e+00 : f32
      %451 = vector.broadcast %cst_131 : f32 to vector<2x32xf32>
      %c0_132 = arith.constant 0 : index
      %c0_133 = arith.constant 0 : index
      %452 = vector.load %arg12[%c0_132, %c0_133] : memref<2x32xf32, #tpu.memory_space<vmem>>, vector<2x32xf32>
      tpu.vector_store %arg12[%c0_132, %c0_133], %451 {strides = array<i32>} : memref<2x32xf32, #tpu.memory_space<vmem>>, vector<2x32xf32>,
    } else {
    }
    %c0 = arith.constant 0 : index
    %c0_1 = arith.constant 0 : index
    %3 = vector.load %arg4[%c0, %c0_1] : memref<2x1xi32, #tpu.memory_space<vmem>>, vector<2x1xi32>
    %c0_2 = arith.constant 0 : index
    %c0_3 = arith.constant 0 : index
    %4 = vector.load %arg3[%c0_2, %c0_3] : memref<32x256xf32, #tpu.memory_space<vmem>>, vector<32x128xf32>
    %c0_4 = arith.constant 0 : index
    %c128 = arith.constant 128 : index
    %5 = vector.load %arg3[%c0_4, %c128] : memref<32x256xf32, #tpu.memory_space<vmem>>, vector<32x128xf32>
    %c0_5 = arith.constant 0 : index
    %c0_6 = arith.constant 0 : index
    %6 = vector.load %arg9[%c0_5, %c0_6] : memref<2x32xf32, #tpu.memory_space<vmem>>, vector<2x32xf32>
    %c0_7 = arith.constant 0 : index
    %c0_8 = arith.constant 0 : index
    %7 = vector.load %arg10[%c0_7, %c0_8] : memref<2x32xf32, #tpu.memory_space<vmem>>, vector<2x32xf32>
    %c0_9 = arith.constant 0 : index
    %c0_10 = arith.constant 0 : index
    %8 = vector.load %arg11[%c0_9, %c0_10] : memref<2x32xf32, #tpu.memory_space<vmem>>, vector<2x32xf32>
    %c0_11 = arith.constant 0 : index
    %c0_12 = arith.constant 0 : index
    %9 = vector.load %arg12[%c0_11, %c0_12] : memref<2x32xf32, #tpu.memory_space<vmem>>, vector<2x32xf32>
    %c4_i32 = arith.constant 4 : i32
    %10 = arith.muli %arg0, %c4_i32 : i32
    %c0_i32_13 = arith.constant 0 : i32
    %11 = arith.addi %10, %c0_i32_13 : i32
    %c0_14 = arith.constant 0 : index
    %c0_15 = arith.constant 0 : index
    %c0_16 = arith.constant 0 : index
    %12 = vector.load %arg1[%c0_14, %c0_15, %c0_16] : memref<4x2x128xf32, #tpu.memory_space<vmem>>, vector<1x2x128xf32>
    %13 = vector.shape_cast %12 : vector<1x2x128xf32> to vector<2x128xf32>
    %cst = arith.constant dense<0.000000e+00> : vector<2x128xf32>
    %14 = tpu.matmul %6, %4, %cst {dimension_numbers = #tpu.dot_dimension_numbers<[1], [0], [0], [1], [0, 0, 1, 1], [], []>, precision = #tpu.contract_precision<fp32>} : vector<2x32xf32>, vector<32x128xf32>, vector<2x128xf32> -> vector<2x128xf32>
    %15 = arith.addf %13, %14 : vector<2x128xf32>
    %16 = vector.extract_strided_slice %15 {offsets = [0, 0], sizes = [2, 32], strides = [1, 1]} : vector<2x128xf32> to vector<2x32xf32>
    %17 = arith.negf %16 : vector<2x32xf32>
    %18 = math.exp %17 : vector<2x32xf32>
    %cst_17 = arith.constant 1.000000e+00 : f32
    %19 = vector.broadcast %cst_17 : f32 to vector<2x32xf32>
    %20 = arith.addf %19, %18 : vector<2x32xf32>
    %21 = arith.divf %19, %20 : vector<2x32xf32>
    %22 = vector.extract_strided_slice %15 {offsets = [0, 32], sizes = [2, 32], strides = [1, 1]} : vector<2x128xf32> to vector<2x32xf32>
    %23 = arith.negf %22 : vector<2x32xf32>
    %24 = math.exp %23 : vector<2x32xf32>
    %cst_18 = arith.constant 1.000000e+00 : f32
    %25 = vector.broadcast %cst_18 : f32 to vector<2x32xf32>
    %26 = arith.addf %25, %24 : vector<2x32xf32>
    %27 = arith.divf %25, %26 : vector<2x32xf32>
    %28 = vector.extract_strided_slice %15 {offsets = [0, 64], sizes = [2, 32], strides = [1, 1]} : vector<2x128xf32> to vector<2x32xf32>
    %29 = math.tanh %28 : vector<2x32xf32>
    %30 = vector.extract_strided_slice %15 {offsets = [0, 96], sizes = [2, 32], strides = [1, 1]} : vector<2x128xf32> to vector<2x32xf32>
    %31 = arith.negf %30 : vector<2x32xf32>
    %32 = math.exp %31 : vector<2x32xf32>
    %cst_19 = arith.constant 1.000000e+00 : f32
    %33 = vector.broadcast %cst_19 : f32 to vector<2x32xf32>
    %34 = arith.addf %33, %32 : vector<2x32xf32>
    %35 = arith.divf %33, %34 : vector<2x32xf32>
    %36 = arith.mulf %27, %7 : vector<2x32xf32>
    %37 = arith.mulf %21, %29 : vector<2x32xf32>
    %38 = arith.addf %36, %37 : vector<2x32xf32>
    %39 = math.tanh %38 : vector<2x32xf32>
    %40 = arith.mulf %35, %39 : vector<2x32xf32>
    %41 = vector.broadcast %11 : i32 to vector<2x1xi32>
    %42 = arith.cmpi slt, %41, %3 : vector<2x1xi32>
    %43 = arith.extui %42 : vector<2x1xi1> to vector<2x1xi32>
    %44 = arith.sitofp %43 : vector<2x1xi32> to vector<2x1xf32>
    %45 = vector.broadcast %44 : vector<2x1xf32> to vector<2x32xf32>
    %46 = arith.mulf %45, %40 : vector<2x32xf32>
    %cst_20 = arith.constant 1.000000e+00 : f32
    %47 = vector.broadcast %cst_20 : f32 to vector<2x1xf32>
    %48 = arith.subf %47, %44 : vector<2x1xf32>
    %49 = vector.broadcast %48 : vector<2x1xf32> to vector<2x32xf32>
    %50 = arith.mulf %49, %6 : vector<2x32xf32>
    %51 = arith.addf %46, %50 : vector<2x32xf32>
    %52 = vector.broadcast %44 : vector<2x1xf32> to vector<2x32xf32>
    %53 = arith.mulf %52, %38 : vector<2x32xf32>
    %cst_21 = arith.constant 1.000000e+00 : f32
    %54 = vector.broadcast %cst_21 : f32 to vector<2x1xf32>
    %55 = arith.subf %54, %44 : vector<2x1xf32>
    %56 = vector.broadcast %55 : vector<2x1xf32> to vector<2x32xf32>
    %57 = arith.mulf %56, %7 : vector<2x32xf32>
    %58 = arith.addf %53, %57 : vector<2x32xf32>
    %59 = vector.broadcast %44 : vector<2x1xf32> to vector<2x32xf32>
    %60 = arith.mulf %59, %51 : vector<2x32xf32>
    %c0_22 = arith.constant 0 : index
    %c0_23 = arith.constant 0 : index
    %c0_24 = arith.constant 0 : index
    %61 = vector.load %arg5[%c0_22, %c0_23, %c0_24] : memref<4x2x32xf32, #tpu.memory_space<vmem>>, vector<1x2x32xf32>
    %62 = vector.shape_cast %61 : vector<1x2x32xf32> to vector<2x32xf32>
    %63 = vector.shape_cast %60 : vector<2x32xf32> to vector<1x2x32xf32>
    tpu.vector_store %arg5[%c0_22, %c0_23, %c0_24], %63 {strides = array<i32>} : memref<4x2x32xf32, #tpu.memory_space<vmem>>, vector<1x2x32xf32>,
    %c7_i32 = arith.constant 7 : i32
    %64 = arith.subi %c7_i32, %11 : i32
    %c3 = arith.constant 3 : index
    %c0_25 = arith.constant 0 : index
    %c0_26 = arith.constant 0 : index
    %65 = vector.load %arg2[%c3, %c0_25, %c0_26] : memref<4x2x128xf32, #tpu.memory_space<vmem>>, vector<1x2x128xf32>
    %66 = vector.shape_cast %65 : vector<1x2x128xf32> to vector<2x128xf32>
    %cst_27 = arith.constant dense<0.000000e+00> : vector<2x128xf32>
    %67 = tpu.matmul %8, %5, %cst_27 {dimension_numbers = #tpu.dot_dimension_numbers<[1], [0], [0], [1], [0, 0, 1, 1], [], []>, precision = #tpu.contract_precision<fp32>} : vector<2x32xf32>, vector<32x128xf32>, vector<2x128xf32> -> vector<2x128xf32>
    %68 = arith.addf %66, %67 : vector<2x128xf32>
    %69 = vector.extract_strided_slice %68 {offsets = [0, 0], sizes = [2, 32], strides = [1, 1]} : vector<2x128xf32> to vector<2x32xf32>
    %70 = arith.negf %69 : vector<2x32xf32>
    %71 = math.exp %70 : vector<2x32xf32>
    %cst_28 = arith.constant 1.000000e+00 : f32
    %72 = vector.broadcast %cst_28 : f32 to vector<2x32xf32>
    %73 = arith.addf %72, %71 : vector<2x32xf32>
    %74 = arith.divf %72, %73 : vector<2x32xf32>
    %75 = vector.extract_strided_slice %68 {offsets = [0, 32], sizes = [2, 32], strides = [1, 1]} : vector<2x128xf32> to vector<2x32xf32>
    %76 = arith.negf %75 : vector<2x32xf32>
    %77 = math.exp %76 : vector<2x32xf32>
    %cst_29 = arith.constant 1.000000e+00 : f32
    %78 = vector.broadcast %cst_29 : f32 to vector<2x32xf32>
    %79 = arith.addf %78, %77 : vector<2x32xf32>
    %80 = arith.divf %78, %79 : vector<2x32xf32>
    %81 = vector.extract_strided_slice %68 {offsets = [0, 64], sizes = [2, 32], strides = [1, 1]} : vector<2x128xf32> to vector<2x32xf32>
    %82 = math.tanh %81 : vector<2x32xf32>
    %83 = vector.extract_strided_slice %68 {offsets = [0, 96], sizes = [2, 32], strides = [1, 1]} : vector<2x128xf32> to vector<2x32xf32>
    %84 = arith.negf %83 : vector<2x32xf32>
    %85 = math.exp %84 : vector<2x32xf32>
    %cst_30 = arith.constant 1.000000e+00 : f32
    %86 = vector.broadcast %cst_30 : f32 to vector<2x32xf32>
    %87 = arith.addf %86, %85 : vector<2x32xf32>
    %88 = arith.divf %86, %87 : vector<2x32xf32>
    %89 = arith.mulf %80, %9 : vector<2x32xf32>
    %90 = arith.mulf %74, %82 : vector<2x32xf32>
    %91 = arith.addf %89, %90 : vector<2x32xf32>
    %92 = math.tanh %91 : vector<2x32xf32>
    %93 = arith.mulf %88, %92 : vector<2x32xf32>
    %94 = vector.broadcast %64 : i32 to vector<2x1xi32>
    %95 = arith.cmpi slt, %94, %3 : vector<2x1xi32>
    %96 = arith.extui %95 : vector<2x1xi1> to vector<2x1xi32>
    %97 = arith.sitofp %96 : vector<2x1xi32> to vector<2x1xf32>
    %98 = vector.broadcast %97 : vector<2x1xf32> to vector<2x32xf32>
    %99 = arith.mulf %98, %93 : vector<2x32xf32>
    %cst_31 = arith.constant 1.000000e+00 : f32
    %100 = vector.broadcast %cst_31 : f32 to vector<2x1xf32>
    %101 = arith.subf %100, %97 : vector<2x1xf32>
    %102 = vector.broadcast %101 : vector<2x1xf32> to vector<2x32xf32>
    %103 = arith.mulf %102, %8 : vector<2x32xf32>
    %104 = arith.addf %99, %103 : vector<2x32xf32>
    %105 = vector.broadcast %97 : vector<2x1xf32> to vector<2x32xf32>
    %106 = arith.mulf %105, %91 : vector<2x32xf32>
    %cst_32 = arith.constant 1.000000e+00 : f32
    %107 = vector.broadcast %cst_32 : f32 to vector<2x1xf32>
    %108 = arith.subf %107, %97 : vector<2x1xf32>
    %109 = vector.broadcast %108 : vector<2x1xf32> to vector<2x32xf32>
    %110 = arith.mulf %109, %9 : vector<2x32xf32>
    %111 = arith.addf %106, %110 : vector<2x32xf32>
    %112 = vector.broadcast %97 : vector<2x1xf32> to vector<2x32xf32>
    %113 = arith.mulf %112, %104 : vector<2x32xf32>
    %c3_33 = arith.constant 3 : index
    %c0_34 = arith.constant 0 : index
    %c0_35 = arith.constant 0 : index
    %114 = vector.load %arg6[%c3_33, %c0_34, %c0_35] : memref<4x2x32xf32, #tpu.memory_space<vmem>>, vector<1x2x32xf32>
    %115 = vector.shape_cast %114 : vector<1x2x32xf32> to vector<2x32xf32>
    %116 = vector.shape_cast %113 : vector<2x32xf32> to vector<1x2x32xf32>
    tpu.vector_store %arg6[%c3_33, %c0_34, %c0_35], %116 {strides = array<i32>} : memref<4x2x32xf32, #tpu.memory_space<vmem>>, vector<1x2x32xf32>,
    %c4_i32_36 = arith.constant 4 : i32
    %117 = arith.muli %arg0, %c4_i32_36 : i32
    %c1_i32 = arith.constant 1 : i32
    %118 = arith.addi %117, %c1_i32 : i32
    %c1 = arith.constant 1 : index
    %c0_37 = arith.constant 0 : index
    %c0_38 = arith.constant 0 : index
    %119 = vector.load %arg1[%c1, %c0_37, %c0_38] : memref<4x2x128xf32, #tpu.memory_space<vmem>>, vector<1x2x128xf32>
    %120 = vector.shape_cast %119 : vector<1x2x128xf32> to vector<2x128xf32>
    %cst_39 = arith.constant dense<0.000000e+00> : vector<2x128xf32>
    %121 = tpu.matmul %51, %4, %cst_39 {dimension_numbers = #tpu.dot_dimension_numbers<[1], [0], [0], [1], [0, 0, 1, 1], [], []>, precision = #tpu.contract_precision<fp32>} : vector<2x32xf32>, vector<32x128xf32>, vector<2x128xf32> -> vector<2x128xf32>
    %122 = arith.addf %120, %121 : vector<2x128xf32>
    %123 = vector.extract_strided_slice %122 {offsets = [0, 0], sizes = [2, 32], strides = [1, 1]} : vector<2x128xf32> to vector<2x32xf32>
    %124 = arith.negf %123 : vector<2x32xf32>
    %125 = math.exp %124 : vector<2x32xf32>
    %cst_40 = arith.constant 1.000000e+00 : f32
    %126 = vector.broadcast %cst_40 : f32 to vector<2x32xf32>
    %127 = arith.addf %126, %125 : vector<2x32xf32>
    %128 = arith.divf %126, %127 : vector<2x32xf32>
    %129 = vector.extract_strided_slice %122 {offsets = [0, 32], sizes = [2, 32], strides = [1, 1]} : vector<2x128xf32> to vector<2x32xf32>
    %130 = arith.negf %129 : vector<2x32xf32>
    %131 = math.exp %130 : vector<2x32xf32>
    %cst_41 = arith.constant 1.000000e+00 : f32
    %132 = vector.broadcast %cst_41 : f32 to vector<2x32xf32>
    %133 = arith.addf %132, %131 : vector<2x32xf32>
    %134 = arith.divf %132, %133 : vector<2x32xf32>
    %135 = vector.extract_strided_slice %122 {offsets = [0, 64], sizes = [2, 32], strides = [1, 1]} : vector<2x128xf32> to vector<2x32xf32>
    %136 = math.tanh %135 : vector<2x32xf32>
    %137 = vector.extract_strided_slice %122 {offsets = [0, 96], sizes = [2, 32], strides = [1, 1]} : vector<2x128xf32> to vector<2x32xf32>
    %138 = arith.negf %137 : vector<2x32xf32>
    %139 = math.exp %138 : vector<2x32xf32>
    %cst_42 = arith.constant 1.000000e+00 : f32
    %140 = vector.broadcast %cst_42 : f32 to vector<2x32xf32>
    %141 = arith.addf %140, %139 : vector<2x32xf32>
    %142 = arith.divf %140, %141 : vector<2x32xf32>
    %143 = arith.mulf %134, %58 : vector<2x32xf32>
    %144 = arith.mulf %128, %136 : vector<2x32xf32>
    %145 = arith.addf %143, %144 : vector<2x32xf32>
    %146 = math.tanh %145 : vector<2x32xf32>
    %147 = arith.mulf %142, %146 : vector<2x32xf32>
    %148 = vector.broadcast %118 : i32 to vector<2x1xi32>
    %149 = arith.cmpi slt, %148, %3 : vector<2x1xi32>
    %150 = arith.extui %149 : vector<2x1xi1> to vector<2x1xi32>
    %151 = arith.sitofp %150 : vector<2x1xi32> to vector<2x1xf32>
    %152 = vector.broadcast %151 : vector<2x1xf32> to vector<2x32xf32>
    %153 = arith.mulf %152, %147 : vector<2x32xf32>
    %cst_43 = arith.constant 1.000000e+00 : f32
    %154 = vector.broadcast %cst_43 : f32 to vector<2x1xf32>
    %155 = arith.subf %154, %151 : vector<2x1xf32>
    %156 = vector.broadcast %155 : vector<2x1xf32> to vector<2x32xf32>
    %157 = arith.mulf %156, %51 : vector<2x32xf32>
    %158 = arith.addf %153, %157 : vector<2x32xf32>
    %159 = vector.broadcast %151 : vector<2x1xf32> to vector<2x32xf32>
    %160 = arith.mulf %159, %145 : vector<2x32xf32>
    %cst_44 = arith.constant 1.000000e+00 : f32
    %161 = vector.broadcast %cst_44 : f32 to vector<2x1xf32>
    %162 = arith.subf %161, %151 : vector<2x1xf32>
    %163 = vector.broadcast %162 : vector<2x1xf32> to vector<2x32xf32>
    %164 = arith.mulf %163, %58 : vector<2x32xf32>
    %165 = arith.addf %160, %164 : vector<2x32xf32>
    %166 = vector.broadcast %151 : vector<2x1xf32> to vector<2x32xf32>
    %167 = arith.mulf %166, %158 : vector<2x32xf32>
    %c1_45 = arith.constant 1 : index
    %c0_46 = arith.constant 0 : index
    %c0_47 = arith.constant 0 : index
    %168 = vector.load %arg5[%c1_45, %c0_46, %c0_47] : memref<4x2x32xf32, #tpu.memory_space<vmem>>, vector<1x2x32xf32>
    %169 = vector.shape_cast %168 : vector<1x2x32xf32> to vector<2x32xf32>
    %170 = vector.shape_cast %167 : vector<2x32xf32> to vector<1x2x32xf32>
    tpu.vector_store %arg5[%c1_45, %c0_46, %c0_47], %170 {strides = array<i32>} : memref<4x2x32xf32, #tpu.memory_space<vmem>>, vector<1x2x32xf32>,
    %c7_i32_48 = arith.constant 7 : i32
    %171 = arith.subi %c7_i32_48, %118 : i32
    %c2 = arith.constant 2 : index
    %c0_49 = arith.constant 0 : index
    %c0_50 = arith.constant 0 : index
    %172 = vector.load %arg2[%c2, %c0_49, %c0_50] : memref<4x2x128xf32, #tpu.memory_space<vmem>>, vector<1x2x128xf32>
    %173 = vector.shape_cast %172 : vector<1x2x128xf32> to vector<2x128xf32>
    %cst_51 = arith.constant dense<0.000000e+00> : vector<2x128xf32>
    %174 = tpu.matmul %104, %5, %cst_51 {dimension_numbers = #tpu.dot_dimension_numbers<[1], [0], [0], [1], [0, 0, 1, 1], [], []>, precision = #tpu.contract_precision<fp32>} : vector<2x32xf32>, vector<32x128xf32>, vector<2x128xf32> -> vector<2x128xf32>
    %175 = arith.addf %173, %174 : vector<2x128xf32>
    %176 = vector.extract_strided_slice %175 {offsets = [0, 0], sizes = [2, 32], strides = [1, 1]} : vector<2x128xf32> to vector<2x32xf32>
    %177 = arith.negf %176 : vector<2x32xf32>
    %178 = math.exp %177 : vector<2x32xf32>
    %cst_52 = arith.constant 1.000000e+00 : f32
    %179 = vector.broadcast %cst_52 : f32 to vector<2x32xf32>
    %180 = arith.addf %179, %178 : vector<2x32xf32>
    %181 = arith.divf %179, %180 : vector<2x32xf32>
    %182 = vector.extract_strided_slice %175 {offsets = [0, 32], sizes = [2, 32], strides = [1, 1]} : vector<2x128xf32> to vector<2x32xf32>
    %183 = arith.negf %182 : vector<2x32xf32>
    %184 = math.exp %183 : vector<2x32xf32>
    %cst_53 = arith.constant 1.000000e+00 : f32
    %185 = vector.broadcast %cst_53 : f32 to vector<2x32xf32>
    %186 = arith.addf %185, %184 : vector<2x32xf32>
    %187 = arith.divf %185, %186 : vector<2x32xf32>
    %188 = vector.extract_strided_slice %175 {offsets = [0, 64], sizes = [2, 32], strides = [1, 1]} : vector<2x128xf32> to vector<2x32xf32>
    %189 = math.tanh %188 : vector<2x32xf32>
    %190 = vector.extract_strided_slice %175 {offsets = [0, 96], sizes = [2, 32], strides = [1, 1]} : vector<2x128xf32> to vector<2x32xf32>
    %191 = arith.negf %190 : vector<2x32xf32>
    %192 = math.exp %191 : vector<2x32xf32>
    %cst_54 = arith.constant 1.000000e+00 : f32
    %193 = vector.broadcast %cst_54 : f32 to vector<2x32xf32>
    %194 = arith.addf %193, %192 : vector<2x32xf32>
    %195 = arith.divf %193, %194 : vector<2x32xf32>
    %196 = arith.mulf %187, %111 : vector<2x32xf32>
    %197 = arith.mulf %181, %189 : vector<2x32xf32>
    %198 = arith.addf %196, %197 : vector<2x32xf32>
    %199 = math.tanh %198 : vector<2x32xf32>
    %200 = arith.mulf %195, %199 : vector<2x32xf32>
    %201 = vector.broadcast %171 : i32 to vector<2x1xi32>
    %202 = arith.cmpi slt, %201, %3 : vector<2x1xi32>
    %203 = arith.extui %202 : vector<2x1xi1> to vector<2x1xi32>
    %204 = arith.sitofp %203 : vector<2x1xi32> to vector<2x1xf32>
    %205 = vector.broadcast %204 : vector<2x1xf32> to vector<2x32xf32>
    %206 = arith.mulf %205, %200 : vector<2x32xf32>
    %cst_55 = arith.constant 1.000000e+00 : f32
    %207 = vector.broadcast %cst_55 : f32 to vector<2x1xf32>
    %208 = arith.subf %207, %204 : vector<2x1xf32>
    %209 = vector.broadcast %208 : vector<2x1xf32> to vector<2x32xf32>
    %210 = arith.mulf %209, %104 : vector<2x32xf32>
    %211 = arith.addf %206, %210 : vector<2x32xf32>
    %212 = vector.broadcast %204 : vector<2x1xf32> to vector<2x32xf32>
    %213 = arith.mulf %212, %198 : vector<2x32xf32>
    %cst_56 = arith.constant 1.000000e+00 : f32
    %214 = vector.broadcast %cst_56 : f32 to vector<2x1xf32>
    %215 = arith.subf %214, %204 : vector<2x1xf32>
    %216 = vector.broadcast %215 : vector<2x1xf32> to vector<2x32xf32>
    %217 = arith.mulf %216, %111 : vector<2x32xf32>
    %218 = arith.addf %213, %217 : vector<2x32xf32>
    %219 = vector.broadcast %204 : vector<2x1xf32> to vector<2x32xf32>
    %220 = arith.mulf %219, %211 : vector<2x32xf32>
    %c2_57 = arith.constant 2 : index
    %c0_58 = arith.constant 0 : index
    %c0_59 = arith.constant 0 : index
    %221 = vector.load %arg6[%c2_57, %c0_58, %c0_59] : memref<4x2x32xf32, #tpu.memory_space<vmem>>, vector<1x2x32xf32>
    %222 = vector.shape_cast %221 : vector<1x2x32xf32> to vector<2x32xf32>
    %223 = vector.shape_cast %220 : vector<2x32xf32> to vector<1x2x32xf32>
    tpu.vector_store %arg6[%c2_57, %c0_58, %c0_59], %223 {strides = array<i32>} : memref<4x2x32xf32, #tpu.memory_space<vmem>>, vector<1x2x32xf32>,
    %c4_i32_60 = arith.constant 4 : i32
    %224 = arith.muli %arg0, %c4_i32_60 : i32
    %c2_i32 = arith.constant 2 : i32
    %225 = arith.addi %224, %c2_i32 : i32
    %c2_61 = arith.constant 2 : index
    %c0_62 = arith.constant 0 : index
    %c0_63 = arith.constant 0 : index
    %226 = vector.load %arg1[%c2_61, %c0_62, %c0_63] : memref<4x2x128xf32, #tpu.memory_space<vmem>>, vector<1x2x128xf32>
    %227 = vector.shape_cast %226 : vector<1x2x128xf32> to vector<2x128xf32>
    %cst_64 = arith.constant dense<0.000000e+00> : vector<2x128xf32>
    %228 = tpu.matmul %158, %4, %cst_64 {dimension_numbers = #tpu.dot_dimension_numbers<[1], [0], [0], [1], [0, 0, 1, 1], [], []>, precision = #tpu.contract_precision<fp32>} : vector<2x32xf32>, vector<32x128xf32>, vector<2x128xf32> -> vector<2x128xf32>
    %229 = arith.addf %227, %228 : vector<2x128xf32>
    %230 = vector.extract_strided_slice %229 {offsets = [0, 0], sizes = [2, 32], strides = [1, 1]} : vector<2x128xf32> to vector<2x32xf32>
    %231 = arith.negf %230 : vector<2x32xf32>
    %232 = math.exp %231 : vector<2x32xf32>
    %cst_65 = arith.constant 1.000000e+00 : f32
    %233 = vector.broadcast %cst_65 : f32 to vector<2x32xf32>
    %234 = arith.addf %233, %232 : vector<2x32xf32>
    %235 = arith.divf %233, %234 : vector<2x32xf32>
    %236 = vector.extract_strided_slice %229 {offsets = [0, 32], sizes = [2, 32], strides = [1, 1]} : vector<2x128xf32> to vector<2x32xf32>
    %237 = arith.negf %236 : vector<2x32xf32>
    %238 = math.exp %237 : vector<2x32xf32>
    %cst_66 = arith.constant 1.000000e+00 : f32
    %239 = vector.broadcast %cst_66 : f32 to vector<2x32xf32>
    %240 = arith.addf %239, %238 : vector<2x32xf32>
    %241 = arith.divf %239, %240 : vector<2x32xf32>
    %242 = vector.extract_strided_slice %229 {offsets = [0, 64], sizes = [2, 32], strides = [1, 1]} : vector<2x128xf32> to vector<2x32xf32>
    %243 = math.tanh %242 : vector<2x32xf32>
    %244 = vector.extract_strided_slice %229 {offsets = [0, 96], sizes = [2, 32], strides = [1, 1]} : vector<2x128xf32> to vector<2x32xf32>
    %245 = arith.negf %244 : vector<2x32xf32>
    %246 = math.exp %245 : vector<2x32xf32>
    %cst_67 = arith.constant 1.000000e+00 : f32
    %247 = vector.broadcast %cst_67 : f32 to vector<2x32xf32>
    %248 = arith.addf %247, %246 : vector<2x32xf32>
    %249 = arith.divf %247, %248 : vector<2x32xf32>
    %250 = arith.mulf %241, %165 : vector<2x32xf32>
    %251 = arith.mulf %235, %243 : vector<2x32xf32>
    %252 = arith.addf %250, %251 : vector<2x32xf32>
    %253 = math.tanh %252 : vector<2x32xf32>
    %254 = arith.mulf %249, %253 : vector<2x32xf32>
    %255 = vector.broadcast %225 : i32 to vector<2x1xi32>
    %256 = arith.cmpi slt, %255, %3 : vector<2x1xi32>
    %257 = arith.extui %256 : vector<2x1xi1> to vector<2x1xi32>
    %258 = arith.sitofp %257 : vector<2x1xi32> to vector<2x1xf32>
    %259 = vector.broadcast %258 : vector<2x1xf32> to vector<2x32xf32>
    %260 = arith.mulf %259, %254 : vector<2x32xf32>
    %cst_68 = arith.constant 1.000000e+00 : f32
    %261 = vector.broadcast %cst_68 : f32 to vector<2x1xf32>
    %262 = arith.subf %261, %258 : vector<2x1xf32>
    %263 = vector.broadcast %262 : vector<2x1xf32> to vector<2x32xf32>
    %264 = arith.mulf %263, %158 : vector<2x32xf32>
    %265 = arith.addf %260, %264 : vector<2x32xf32>
    %266 = vector.broadcast %258 : vector<2x1xf32> to vector<2x32xf32>
    %267 = arith.mulf %266, %252 : vector<2x32xf32>
    %cst_69 = arith.constant 1.000000e+00 : f32
    %268 = vector.broadcast %cst_69 : f32 to vector<2x1xf32>
    %269 = arith.subf %268, %258 : vector<2x1xf32>
    %270 = vector.broadcast %269 : vector<2x1xf32> to vector<2x32xf32>
    %271 = arith.mulf %270, %165 : vector<2x32xf32>
    %272 = arith.addf %267, %271 : vector<2x32xf32>
    %273 = vector.broadcast %258 : vector<2x1xf32> to vector<2x32xf32>
    %274 = arith.mulf %273, %265 : vector<2x32xf32>
    %c2_70 = arith.constant 2 : index
    %c0_71 = arith.constant 0 : index
    %c0_72 = arith.constant 0 : index
    %275 = vector.load %arg5[%c2_70, %c0_71, %c0_72] : memref<4x2x32xf32, #tpu.memory_space<vmem>>, vector<1x2x32xf32>
    %276 = vector.shape_cast %275 : vector<1x2x32xf32> to vector<2x32xf32>
    %277 = vector.shape_cast %274 : vector<2x32xf32> to vector<1x2x32xf32>
    tpu.vector_store %arg5[%c2_70, %c0_71, %c0_72], %277 {strides = array<i32>} : memref<4x2x32xf32, #tpu.memory_space<vmem>>, vector<1x2x32xf32>,
    %c7_i32_73 = arith.constant 7 : i32
    %278 = arith.subi %c7_i32_73, %225 : i32
    %c1_74 = arith.constant 1 : index
    %c0_75 = arith.constant 0 : index
    %c0_76 = arith.constant 0 : index
    %279 = vector.load %arg2[%c1_74, %c0_75, %c0_76] : memref<4x2x128xf32, #tpu.memory_space<vmem>>, vector<1x2x128xf32>
    %280 = vector.shape_cast %279 : vector<1x2x128xf32> to vector<2x128xf32>
    %cst_77 = arith.constant dense<0.000000e+00> : vector<2x128xf32>
    %281 = tpu.matmul %211, %5, %cst_77 {dimension_numbers = #tpu.dot_dimension_numbers<[1], [0], [0], [1], [0, 0, 1, 1], [], []>, precision = #tpu.contract_precision<fp32>} : vector<2x32xf32>, vector<32x128xf32>, vector<2x128xf32> -> vector<2x128xf32>
    %282 = arith.addf %280, %281 : vector<2x128xf32>
    %283 = vector.extract_strided_slice %282 {offsets = [0, 0], sizes = [2, 32], strides = [1, 1]} : vector<2x128xf32> to vector<2x32xf32>
    %284 = arith.negf %283 : vector<2x32xf32>
    %285 = math.exp %284 : vector<2x32xf32>
    %cst_78 = arith.constant 1.000000e+00 : f32
    %286 = vector.broadcast %cst_78 : f32 to vector<2x32xf32>
    %287 = arith.addf %286, %285 : vector<2x32xf32>
    %288 = arith.divf %286, %287 : vector<2x32xf32>
    %289 = vector.extract_strided_slice %282 {offsets = [0, 32], sizes = [2, 32], strides = [1, 1]} : vector<2x128xf32> to vector<2x32xf32>
    %290 = arith.negf %289 : vector<2x32xf32>
    %291 = math.exp %290 : vector<2x32xf32>
    %cst_79 = arith.constant 1.000000e+00 : f32
    %292 = vector.broadcast %cst_79 : f32 to vector<2x32xf32>
    %293 = arith.addf %292, %291 : vector<2x32xf32>
    %294 = arith.divf %292, %293 : vector<2x32xf32>
    %295 = vector.extract_strided_slice %282 {offsets = [0, 64], sizes = [2, 32], strides = [1, 1]} : vector<2x128xf32> to vector<2x32xf32>
    %296 = math.tanh %295 : vector<2x32xf32>
    %297 = vector.extract_strided_slice %282 {offsets = [0, 96], sizes = [2, 32], strides = [1, 1]} : vector<2x128xf32> to vector<2x32xf32>
    %298 = arith.negf %297 : vector<2x32xf32>
    %299 = math.exp %298 : vector<2x32xf32>
    %cst_80 = arith.constant 1.000000e+00 : f32
    %300 = vector.broadcast %cst_80 : f32 to vector<2x32xf32>
    %301 = arith.addf %300, %299 : vector<2x32xf32>
    %302 = arith.divf %300, %301 : vector<2x32xf32>
    %303 = arith.mulf %294, %218 : vector<2x32xf32>
    %304 = arith.mulf %288, %296 : vector<2x32xf32>
    %305 = arith.addf %303, %304 : vector<2x32xf32>
    %306 = math.tanh %305 : vector<2x32xf32>
    %307 = arith.mulf %302, %306 : vector<2x32xf32>
    %308 = vector.broadcast %278 : i32 to vector<2x1xi32>
    %309 = arith.cmpi slt, %308, %3 : vector<2x1xi32>
    %310 = arith.extui %309 : vector<2x1xi1> to vector<2x1xi32>
    %311 = arith.sitofp %310 : vector<2x1xi32> to vector<2x1xf32>
    %312 = vector.broadcast %311 : vector<2x1xf32> to vector<2x32xf32>
    %313 = arith.mulf %312, %307 : vector<2x32xf32>
    %cst_81 = arith.constant 1.000000e+00 : f32
    %314 = vector.broadcast %cst_81 : f32 to vector<2x1xf32>
    %315 = arith.subf %314, %311 : vector<2x1xf32>
    %316 = vector.broadcast %315 : vector<2x1xf32> to vector<2x32xf32>
    %317 = arith.mulf %316, %211 : vector<2x32xf32>
    %318 = arith.addf %313, %317 : vector<2x32xf32>
    %319 = vector.broadcast %311 : vector<2x1xf32> to vector<2x32xf32>
    %320 = arith.mulf %319, %305 : vector<2x32xf32>
    %cst_82 = arith.constant 1.000000e+00 : f32
    %321 = vector.broadcast %cst_82 : f32 to vector<2x1xf32>
    %322 = arith.subf %321, %311 : vector<2x1xf32>
    %323 = vector.broadcast %322 : vector<2x1xf32> to vector<2x32xf32>
    %324 = arith.mulf %323, %218 : vector<2x32xf32>
    %325 = arith.addf %320, %324 : vector<2x32xf32>
    %326 = vector.broadcast %311 : vector<2x1xf32> to vector<2x32xf32>
    %327 = arith.mulf %326, %318 : vector<2x32xf32>
    %c1_83 = arith.constant 1 : index
    %c0_84 = arith.constant 0 : index
    %c0_85 = arith.constant 0 : index
    %328 = vector.load %arg6[%c1_83, %c0_84, %c0_85] : memref<4x2x32xf32, #tpu.memory_space<vmem>>, vector<1x2x32xf32>
    %329 = vector.shape_cast %328 : vector<1x2x32xf32> to vector<2x32xf32>
    %330 = vector.shape_cast %327 : vector<2x32xf32> to vector<1x2x32xf32>
    tpu.vector_store %arg6[%c1_83, %c0_84, %c0_85], %330 {strides = array<i32>} : memref<4x2x32xf32, #tpu.memory_space<vmem>>, vector<1x2x32xf32>,
    %c4_i32_86 = arith.constant 4 : i32
    %331 = arith.muli %arg0, %c4_i32_86 : i32
    %c3_i32 = arith.constant 3 : i32
    %332 = arith.addi %331, %c3_i32 : i32
    %c3_87 = arith.constant 3 : index
    %c0_88 = arith.constant 0 : index
    %c0_89 = arith.constant 0 : index
    %333 = vector.load %arg1[%c3_87, %c0_88, %c0_89] : memref<4x2x128xf32, #tpu.memory_space<vmem>>, vector<1x2x128xf32>
    %334 = vector.shape_cast %333 : vector<1x2x128xf32> to vector<2x128xf32>
    %cst_90 = arith.constant dense<0.000000e+00> : vector<2x128xf32>
    %335 = tpu.matmul %265, %4, %cst_90 {dimension_numbers = #tpu.dot_dimension_numbers<[1], [0], [0], [1], [0, 0, 1, 1], [], []>, precision = #tpu.contract_precision<fp32>} : vector<2x32xf32>, vector<32x128xf32>, vector<2x128xf32> -> vector<2x128xf32>
    %336 = arith.addf %334, %335 : vector<2x128xf32>
    %337 = vector.extract_strided_slice %336 {offsets = [0, 0], sizes = [2, 32], strides = [1, 1]} : vector<2x128xf32> to vector<2x32xf32>
    %338 = arith.negf %337 : vector<2x32xf32>
    %339 = math.exp %338 : vector<2x32xf32>
    %cst_91 = arith.constant 1.000000e+00 : f32
    %340 = vector.broadcast %cst_91 : f32 to vector<2x32xf32>
    %341 = arith.addf %340, %339 : vector<2x32xf32>
    %342 = arith.divf %340, %341 : vector<2x32xf32>
    %343 = vector.extract_strided_slice %336 {offsets = [0, 32], sizes = [2, 32], strides = [1, 1]} : vector<2x128xf32> to vector<2x32xf32>
    %344 = arith.negf %343 : vector<2x32xf32>
    %345 = math.exp %344 : vector<2x32xf32>
    %cst_92 = arith.constant 1.000000e+00 : f32
    %346 = vector.broadcast %cst_92 : f32 to vector<2x32xf32>
    %347 = arith.addf %346, %345 : vector<2x32xf32>
    %348 = arith.divf %346, %347 : vector<2x32xf32>
    %349 = vector.extract_strided_slice %336 {offsets = [0, 64], sizes = [2, 32], strides = [1, 1]} : vector<2x128xf32> to vector<2x32xf32>
    %350 = math.tanh %349 : vector<2x32xf32>
    %351 = vector.extract_strided_slice %336 {offsets = [0, 96], sizes = [2, 32], strides = [1, 1]} : vector<2x128xf32> to vector<2x32xf32>
    %352 = arith.negf %351 : vector<2x32xf32>
    %353 = math.exp %352 : vector<2x32xf32>
    %cst_93 = arith.constant 1.000000e+00 : f32
    %354 = vector.broadcast %cst_93 : f32 to vector<2x32xf32>
    %355 = arith.addf %354, %353 : vector<2x32xf32>
    %356 = arith.divf %354, %355 : vector<2x32xf32>
    %357 = arith.mulf %348, %272 : vector<2x32xf32>
    %358 = arith.mulf %342, %350 : vector<2x32xf32>
    %359 = arith.addf %357, %358 : vector<2x32xf32>
    %360 = math.tanh %359 : vector<2x32xf32>
    %361 = arith.mulf %356, %360 : vector<2x32xf32>
    %362 = vector.broadcast %332 : i32 to vector<2x1xi32>
    %363 = arith.cmpi slt, %362, %3 : vector<2x1xi32>
    %364 = arith.extui %363 : vector<2x1xi1> to vector<2x1xi32>
    %365 = arith.sitofp %364 : vector<2x1xi32> to vector<2x1xf32>
    %366 = vector.broadcast %365 : vector<2x1xf32> to vector<2x32xf32>
    %367 = arith.mulf %366, %361 : vector<2x32xf32>
    %cst_94 = arith.constant 1.000000e+00 : f32
    %368 = vector.broadcast %cst_94 : f32 to vector<2x1xf32>
    %369 = arith.subf %368, %365 : vector<2x1xf32>
    %370 = vector.broadcast %369 : vector<2x1xf32> to vector<2x32xf32>
    %371 = arith.mulf %370, %265 : vector<2x32xf32>
    %372 = arith.addf %367, %371 : vector<2x32xf32>
    %373 = vector.broadcast %365 : vector<2x1xf32> to vector<2x32xf32>
    %374 = arith.mulf %373, %359 : vector<2x32xf32>
    %cst_95 = arith.constant 1.000000e+00 : f32
    %375 = vector.broadcast %cst_95 : f32 to vector<2x1xf32>
    %376 = arith.subf %375, %365 : vector<2x1xf32>
    %377 = vector.broadcast %376 : vector<2x1xf32> to vector<2x32xf32>
    %378 = arith.mulf %377, %272 : vector<2x32xf32>
    %379 = arith.addf %374, %378 : vector<2x32xf32>
    %380 = vector.broadcast %365 : vector<2x1xf32> to vector<2x32xf32>
    %381 = arith.mulf %380, %372 : vector<2x32xf32>
    %c3_96 = arith.constant 3 : index
    %c0_97 = arith.constant 0 : index
    %c0_98 = arith.constant 0 : index
    %382 = vector.load %arg5[%c3_96, %c0_97, %c0_98] : memref<4x2x32xf32, #tpu.memory_space<vmem>>, vector<1x2x32xf32>
    %383 = vector.shape_cast %382 : vector<1x2x32xf32> to vector<2x32xf32>
    %384 = vector.shape_cast %381 : vector<2x32xf32> to vector<1x2x32xf32>
    tpu.vector_store %arg5[%c3_96, %c0_97, %c0_98], %384 {strides = array<i32>} : memref<4x2x32xf32, #tpu.memory_space<vmem>>, vector<1x2x32xf32>,
    %c7_i32_99 = arith.constant 7 : i32
    %385 = arith.subi %c7_i32_99, %332 : i32
    %c0_100 = arith.constant 0 : index
    %c0_101 = arith.constant 0 : index
    %c0_102 = arith.constant 0 : index
    %386 = vector.load %arg2[%c0_100, %c0_101, %c0_102] : memref<4x2x128xf32, #tpu.memory_space<vmem>>, vector<1x2x128xf32>
    %387 = vector.shape_cast %386 : vector<1x2x128xf32> to vector<2x128xf32>
    %cst_103 = arith.constant dense<0.000000e+00> : vector<2x128xf32>
    %388 = tpu.matmul %318, %5, %cst_103 {dimension_numbers = #tpu.dot_dimension_numbers<[1], [0], [0], [1], [0, 0, 1, 1], [], []>, precision = #tpu.contract_precision<fp32>} : vector<2x32xf32>, vector<32x128xf32>, vector<2x128xf32> -> vector<2x128xf32>
    %389 = arith.addf %387, %388 : vector<2x128xf32>
    %390 = vector.extract_strided_slice %389 {offsets = [0, 0], sizes = [2, 32], strides = [1, 1]} : vector<2x128xf32> to vector<2x32xf32>
    %391 = arith.negf %390 : vector<2x32xf32>
    %392 = math.exp %391 : vector<2x32xf32>
    %cst_104 = arith.constant 1.000000e+00 : f32
    %393 = vector.broadcast %cst_104 : f32 to vector<2x32xf32>
    %394 = arith.addf %393, %392 : vector<2x32xf32>
    %395 = arith.divf %393, %394 : vector<2x32xf32>
    %396 = vector.extract_strided_slice %389 {offsets = [0, 32], sizes = [2, 32], strides = [1, 1]} : vector<2x128xf32> to vector<2x32xf32>
    %397 = arith.negf %396 : vector<2x32xf32>
    %398 = math.exp %397 : vector<2x32xf32>
    %cst_105 = arith.constant 1.000000e+00 : f32
    %399 = vector.broadcast %cst_105 : f32 to vector<2x32xf32>
    %400 = arith.addf %399, %398 : vector<2x32xf32>
    %401 = arith.divf %399, %400 : vector<2x32xf32>
    %402 = vector.extract_strided_slice %389 {offsets = [0, 64], sizes = [2, 32], strides = [1, 1]} : vector<2x128xf32> to vector<2x32xf32>
    %403 = math.tanh %402 : vector<2x32xf32>
    %404 = vector.extract_strided_slice %389 {offsets = [0, 96], sizes = [2, 32], strides = [1, 1]} : vector<2x128xf32> to vector<2x32xf32>
    %405 = arith.negf %404 : vector<2x32xf32>
    %406 = math.exp %405 : vector<2x32xf32>
    %cst_106 = arith.constant 1.000000e+00 : f32
    %407 = vector.broadcast %cst_106 : f32 to vector<2x32xf32>
    %408 = arith.addf %407, %406 : vector<2x32xf32>
    %409 = arith.divf %407, %408 : vector<2x32xf32>
    %410 = arith.mulf %401, %325 : vector<2x32xf32>
    %411 = arith.mulf %395, %403 : vector<2x32xf32>
    %412 = arith.addf %410, %411 : vector<2x32xf32>
    %413 = math.tanh %412 : vector<2x32xf32>
    %414 = arith.mulf %409, %413 : vector<2x32xf32>
    %415 = vector.broadcast %385 : i32 to vector<2x1xi32>
    %416 = arith.cmpi slt, %415, %3 : vector<2x1xi32>
    %417 = arith.extui %416 : vector<2x1xi1> to vector<2x1xi32>
    %418 = arith.sitofp %417 : vector<2x1xi32> to vector<2x1xf32>
    %419 = vector.broadcast %418 : vector<2x1xf32> to vector<2x32xf32>
    %420 = arith.mulf %419, %414 : vector<2x32xf32>
    %cst_107 = arith.constant 1.000000e+00 : f32
    %421 = vector.broadcast %cst_107 : f32 to vector<2x1xf32>
    %422 = arith.subf %421, %418 : vector<2x1xf32>
    %423 = vector.broadcast %422 : vector<2x1xf32> to vector<2x32xf32>
    %424 = arith.mulf %423, %318 : vector<2x32xf32>
    %425 = arith.addf %420, %424 : vector<2x32xf32>
    %426 = vector.broadcast %418 : vector<2x1xf32> to vector<2x32xf32>
    %427 = arith.mulf %426, %412 : vector<2x32xf32>
    %cst_108 = arith.constant 1.000000e+00 : f32
    %428 = vector.broadcast %cst_108 : f32 to vector<2x1xf32>
    %429 = arith.subf %428, %418 : vector<2x1xf32>
    %430 = vector.broadcast %429 : vector<2x1xf32> to vector<2x32xf32>
    %431 = arith.mulf %430, %325 : vector<2x32xf32>
    %432 = arith.addf %427, %431 : vector<2x32xf32>
    %433 = vector.broadcast %418 : vector<2x1xf32> to vector<2x32xf32>
    %434 = arith.mulf %433, %425 : vector<2x32xf32>
    %c0_109 = arith.constant 0 : index
    %c0_110 = arith.constant 0 : index
    %c0_111 = arith.constant 0 : index
    %435 = vector.load %arg6[%c0_109, %c0_110, %c0_111] : memref<4x2x32xf32, #tpu.memory_space<vmem>>, vector<1x2x32xf32>
    %436 = vector.shape_cast %435 : vector<1x2x32xf32> to vector<2x32xf32>
    %437 = vector.shape_cast %434 : vector<2x32xf32> to vector<1x2x32xf32>
    tpu.vector_store %arg6[%c0_109, %c0_110, %c0_111], %437 {strides = array<i32>} : memref<4x2x32xf32, #tpu.memory_space<vmem>>, vector<1x2x32xf32>,
    %c0_112 = arith.constant 0 : index
    %c0_113 = arith.constant 0 : index
    %438 = vector.load %arg9[%c0_112, %c0_113] : memref<2x32xf32, #tpu.memory_space<vmem>>, vector<2x32xf32>
    tpu.vector_store %arg9[%c0_112, %c0_113], %372 {strides = array<i32>} : memref<2x32xf32, #tpu.memory_space<vmem>>, vector<2x32xf32>,
    %c0_114 = arith.constant 0 : index
    %c0_115 = arith.constant 0 : index
    %439 = vector.load %arg10[%c0_114, %c0_115] : memref<2x32xf32, #tpu.memory_space<vmem>>, vector<2x32xf32>
    tpu.vector_store %arg10[%c0_114, %c0_115], %379 {strides = array<i32>} : memref<2x32xf32, #tpu.memory_space<vmem>>, vector<2x32xf32>,
    %c0_116 = arith.constant 0 : index
    %c0_117 = arith.constant 0 : index
    %440 = vector.load %arg11[%c0_116, %c0_117] : memref<2x32xf32, #tpu.memory_space<vmem>>, vector<2x32xf32>
    tpu.vector_store %arg11[%c0_116, %c0_117], %425 {strides = array<i32>} : memref<2x32xf32, #tpu.memory_space<vmem>>, vector<2x32xf32>,
    %c0_118 = arith.constant 0 : index
    %c0_119 = arith.constant 0 : index
    %441 = vector.load %arg12[%c0_118, %c0_119] : memref<2x32xf32, #tpu.memory_space<vmem>>, vector<2x32xf32>
    tpu.vector_store %arg12[%c0_118, %c0_119], %432 {strides = array<i32>} : memref<2x32xf32, #tpu.memory_space<vmem>>, vector<2x32xf32>,
    %c1_i32_120 = arith.constant 1 : i32
    %442 = arith.cmpi eq, %arg0, %c1_i32_120 : i32
    %443 = arith.extui %442 : i1 to i32
    %c0_i32_121 = arith.constant 0 : i32
    %444 = arith.cmpi ne, %443, %c0_i32_121 : i32
    scf.if %444 {
      %c0_122 = arith.constant 0 : index
      %c0_123 = arith.constant 0 : index
      %445 = vector.load %arg7[%c0_122, %c0_123] : memref<2x32xf32, #tpu.memory_space<vmem>>, vector<2x32xf32>
      tpu.vector_store %arg7[%c0_122, %c0_123], %372 {strides = array<i32>} : memref<2x32xf32, #tpu.memory_space<vmem>>, vector<2x32xf32>,
      %c0_124 = arith.constant 0 : index
      %c0_125 = arith.constant 0 : index
      %446 = vector.load %arg8[%c0_124, %c0_125] : memref<2x32xf32, #tpu.memory_space<vmem>>, vector<2x32xf32>
      tpu.vector_store %arg8[%c0_124, %c0_125], %425 {strides = array<i32>} : memref<2x32xf32, #tpu.memory_space<vmem>>, vector<2x32xf32>,
    } else {
    }
    return
  }
  func.func @transform_0(%arg0: i32) -> (i32, i32, i32) {
    %c0_i32 = arith.constant 0 : i32
    %c0_i32_0 = arith.constant 0 : i32
    %c0_i32_1 = arith.constant 0 : i32
    return %arg0, %c0_i32, %c0_i32_0 : i32, i32, i32
  }
  func.func @transform_1(%arg0: i32) -> (i32, i32, i32) {
    %c1_i32 = arith.constant 1 : i32
    %0 = arith.subi %c1_i32, %arg0 : i32
    %c0_i32 = arith.constant 0 : i32
    %c1_i32_0 = arith.constant 1 : i32
    %c0_i32_1 = arith.constant 0 : i32
    return %0, %c0_i32, %c1_i32_0 : i32, i32, i32
  }
  func.func @transform_2(%arg0: i32) -> (i32, i32) {
    %c0_i32 = arith.constant 0 : i32
    %c0_i32_0 = arith.constant 0 : i32
    %c0_i32_1 = arith.constant 0 : i32
    return %c0_i32, %c0_i32_0 : i32, i32
  }
  func.func @transform_3(%arg0: i32) -> (i32, i32) {
    %c0_i32 = arith.constant 0 : i32
    %c0_i32_0 = arith.constant 0 : i32
    %c0_i32_1 = arith.constant 0 : i32
    return %c0_i32, %c0_i32_0 : i32, i32
  }
  func.func @transform_4(%arg0: i32) -> (i32, i32, i32) {
    %c0_i32 = arith.constant 0 : i32
    %c0_i32_0 = arith.constant 0 : i32
    %c0_i32_1 = arith.constant 0 : i32
    return %arg0, %c0_i32, %c0_i32_0 : i32, i32, i32
  }
  func.func @transform_5(%arg0: i32) -> (i32, i32, i32) {
    %c1_i32 = arith.constant 1 : i32
    %0 = arith.subi %c1_i32, %arg0 : i32
    %c0_i32 = arith.constant 0 : i32
    %c0_i32_0 = arith.constant 0 : i32
    %c0_i32_1 = arith.constant 0 : i32
    return %0, %c0_i32, %c0_i32_0 : i32, i32, i32
  }
  func.func @transform_6(%arg0: i32) -> (i32, i32) {
    %c0_i32 = arith.constant 0 : i32
    %c0_i32_0 = arith.constant 0 : i32
    %c0_i32_1 = arith.constant 0 : i32
    return %c0_i32, %c0_i32_0 : i32, i32
  }
  func.func @transform_7(%arg0: i32) -> (i32, i32) {
    %c0_i32 = arith.constant 0 : i32
    %c0_i32_0 = arith.constant 0 : i32
    %c0_i32_1 = arith.constant 0 : i32
    return %c0_i32, %c0_i32_0 : i32, i32
  }
}

</mosaic_0001>

<bundles_post_ra>
// kernel: lstm_forward.2
= control target key start
LH: loop header
LB: loop body
LE: loop exit
PB: predicated region body
PF: predicated region fallthrough
CT: control target
= control target key end

     0   :  { %13 = vsyncpa [#allocation9], 0  ;;  %s3779_s0 = inlined_call_operand.vmem [shape: f32[8,2,256], index: 0, kind: input, shape index: {}, may-alias: {0,1}]   ;;  %s3780_s1 = inlined_call_operand.vmem [shape: f32[8,2,256], index: 1, kind: input, shape index: {}, may-alias: {0,1}]   ;;  %s3781_s2 = inlined_call_operand.vmem [shape: f32[32,256], index: 2, kind: input, shape index: {}]   ;;  %s3782_s3 = inlined_call_operand.vmem [shape: s32[2,1], index: 3, kind: input, shape index: {}]   ;;  %s3783_s4 = inlined_call_operand.vmem [shape: f32[8,2,32], index: 4, kind: output, shape index: {0}]   ;;  %s3784_s5 = inlined_call_operand.vmem [shape: f32[8,2,32], index: 5, kind: output, shape index: {1}]   ;;  %s3785_s6 = inlined_call_operand.hbm [shape: f32[2,32], index: 6, kind: output, shape index: {2}]   ;;  %s3786_s7 = inlined_call_operand.hbm [shape: f32[2,32], index: 7, kind: output, shape index: {3}]  }
   0x1   :  { %14 = vsyncpa [#allocation11], 0  ;;  %s3090_s24 = smov 0   ;;  %s3092_s25 = smov 0  }
   0x2   :  { %s3094_s26 = smov 0   ;;  %s3096_s27 = smov 0  }
   0x3   :  { %s3098_s28 = smov 0  }
   0x4 LB: > { %s3116_s29 = sadd.s32 4294967295, %s3040_s28   ;;  %s3119_s30 = sadd.s32 1, %s3040_s28   ;;  %s3040_s28 = sphi %s3098_s28, %s3792_s28   ;;  %s3036_s27 = sphi %s3096_s27, %s3791_s27   ;;  %s3032_s26 = sphi %s3094_s26, %s3790_s26   ;;  %s3028_s25 = sphi %s3092_s25, %s3789_s25   ;;  %s3024_s24 = sphi %s3090_s24, %s3788_s24  }
   0x5   : > { %s24_s8 = ssub.s32 %s3040_s28, %s3119_s30  ;;  %s27_s9 = sadd.s32 1, %s3036_s27 }
   0x6   : > { %p25_p0 = scmp.eq.s32.totalorder %s24_s8, 0  ;;  %p34_p1 = scmp.ne.s32.totalorder %s3036_s27, %s3032_s26 }
   0x7   : > { %p35_p2 = scmp.eq.s32.totalorder %s3040_s28, 0  ;;  %s50_s10 = ssub.s32 1, %s3040_s28 }
   0x8   : > { %s3129_s11 = scalar_select %p25_p0, %s3036_s27, %s27_s9  }
   0x9   : > { %p36_p3 = por %p35_p2, %p34_p1  ;;  %s51_s12 = ssub.s32 1, %s3119_s30 }
   0xa   : > { %s52_s13 = ssub.s32 %s50_s10, %s51_s12  ;;  %s55_s14 = sadd.s32 1, %s3028_s25 }
   0xb   : > { %p53_p4 = scmp.eq.s32.totalorder %s52_s13, 0  ;;  %p62_p5 = scmp.ne.s32.totalorder %s3028_s25, %s3024_s24 }
   0xc   : > { %p2746_p7 = scmp.ge.s32.totalorder %s3040_s28, 2 }
   0xd   : > { %s3136_s15 = scalar_select %p53_p4, %s3028_s25, %s55_s14  }
   0xe   : > { %p3138_p6 = por %p62_p5, %p35_p2  ;;  %232 = sbr.rel (%p2746_p7) target bundleno = 35 (0x23), region = 24 }
  0x13   : > { %235 = sbr.rel (!%p36_p3) target bundleno = 27 (0x1b), region = 28  ;;  %s237_s17 = sand.u32 (%p36_p3), 1, %s3036_s27  }
  0x14   : > { %s2803_s18 = sshll.u32 (%p36_p3), %s3040_s28, 4  ;;  %s2747_s19 = sshll.u32 (%p36_p3), %s237_s17, 3 }
  0x15   : > { %s243_s22 = scalar_lea.vmem (%p36_p3), %s3779_s0, %s2803_s18  ;;  %s239_s23 = scalar_lea.vmem (%p36_p3), [#allocation6], %s2747_s19 }
  0x16   : > { %v260_v0 = vld [vmem:[%s243_s22] sm:$0x3] (%p36_p3)  ;;  %v262_v1 = vld [vmem:[%s243_s22 + $0x4] sm:$0x3] (%p36_p3)  ;;  %v264_v2 = vld [vmem:[%s243_s22 + $0x8] sm:$0x3] (%p36_p3) }
  0x17   : > { %261 = vst [vmem:[%s239_s23] sm:$0x3] (%p36_p3), %v260_v0  ;;  %v266_v3 = vld [vmem:[%s243_s22 + $0xc] sm:$0x3] (%p36_p3) }
  0x18   : > { %263 = vst [vmem:[%s239_s23 + $0x2] sm:$0x3] %v262_v1 }
  0x19   : > { %265 = vst [vmem:[%s239_s23 + $0x4] sm:$0x3] %v264_v2 }
  0x1a   : > { %267 = vst [vmem:[%s239_s23 + $0x6] sm:$0x3] %v266_v3 }
  0x1b PF: > { %299 = sbr.rel (!%p3138_p6) target bundleno = 35 (0x23), region = 69  ;;  %s301_s8 = sand.u32 (%p3138_p6), 1, %s3028_s25  }
  0x1c   : > { %s2804_s9 = sshll.u32 (%p3138_p6), %s50_s10, 4  ;;  %s2751_s12 = sshll.u32 (%p3138_p6), %s301_s8, 3 }
  0x1d   : > { %s2662_s17 = scalar_lea.vmem (%p3138_p6), %s3780_s1, %s2804_s9  ;;  %s303_s18 = scalar_lea.vmem (%p3138_p6), [#allocation7], %s2751_s12 }
  0x1e   : > { %v2754_v4 = vld [vmem:[%s2662_s17 + $0x2] sm:$0x3] (%p3138_p6)  ;;  %v2755_v5 = vld [vmem:[%s2662_s17 + $0x6] sm:$0x3] (%p3138_p6)  ;;  %v2756_v6 = vld [vmem:[%s2662_s17 + $0xa] sm:$0x3] (%p3138_p6) }
  0x1f   : > { %327 = vst [vmem:[%s303_s18] sm:$0x3] (%p3138_p6), %v2754_v4  ;;  %v2757_v7 = vld [vmem:[%s2662_s17 + $0xe] sm:$0x3] (%p3138_p6) }
  0x20   : > { %329 = vst [vmem:[%s303_s18 + $0x2] sm:$0x3] %v2755_v5 }
  0x21   : > { %331 = vst [vmem:[%s303_s18 + $0x4] sm:$0x3] %v2756_v6 }
  0x22   : > { %333 = vst [vmem:[%s303_s18 + $0x6] sm:$0x3] %v2757_v7 }
  0x23 PF: > { %p2758_p8 = scmp.ge.s32.totalorder %s3040_s28, 1  ;;  %p364_p9 = scmp.lt.s32.totalorder %s3040_s28, 3 }
  0x25   : > { %p365_p10 = pnand %p2758_p8, %p364_p9 }
  0x26   : > { %s371_s10 = sand.u32 (!%p365_p10), 1, %s3032_s26   ;;  %s378_s16 = sand.u32 (!%p365_p10), 1, %s3024_s24  }
  0x27   : > { %368 = sbr.rel (%p365_p10) target bundleno = 2534 (0x9e6), region = 110  ;;  %s2759_s19 = sshll.u32 (!%p365_p10), %s371_s10, 3 }
  0x28   : > { %s2760_s20 = sshll.u32 (!%p365_p10), %s378_s16, 3  ;;  %s3159_s21 = sshll.u32 (!%p365_p10), %s3116_s29, 2 }
  0x29   : > { %s428_s22 = ssub.s32 (!%p365_p10), 1, %s3116_s29  ;;  %p423_p11 = scmp.lt.s32.totalorder (!%p365_p10), %s3159_s21, 7 }
  0x2a   : > { %s2763_s23 = sshll.u32 (!%p365_p10), %s428_s22, 2  ;;  %s3174_s18 = scalar_lea.vmem (!%p365_p10), [#allocation6], %s2759_s19 }
  0x2b   : > { %p430_p12 = scmp.lt.s32.totalorder (!%p365_p10), %s2763_s23, 7  ;;  %s3176_s10 = scalar_lea.vmem (!%p365_p10), [#allocation7], %s2760_s20 }
  0x2c   : > { %s424_s8 = scalar_select %p423_p11, %s3159_s21, 7 }
  0x2d   : > { %s3794_s23 = smov (!%p430_p12, %s2763_s23), 7  ;;  %p2765_p13 = scmp.ne.s32.totalorder %s3116_s29, 0 }
  0x2e   : > { %s2762_s28 = sshll.u32 %s424_s8, 1  ;;  %s2764_s26 = sshll.u32 %s3794_s23, 1 }
  0x2f   : > { %s3167_s13 = scalar_lea.vmem %s3783_s4, %s2762_s28  ;;  %s3172_s17 = scalar_lea.vmem %s3784_s5, %s2764_s26 }
  0x30   : > { %439 = sbr.rel (%p2765_p13) target bundleno = 58 (0x3a), region = 122 }
  0x35   : > { %vm440_vm0 = vcmask 254976   ;;  %v3042_v8 = vmov 0.0  }
  0x36   : > { %441 = vst.msk [vmem:[#allocation2] sm:$0x3] %vm440_vm0, %v3042_v8 }
  0x37   : > { %442 = vst.msk [vmem:[#allocation3] sm:$0x3] %vm440_vm0, %v3042_v8 }
  0x38   : > { %443 = vst.msk [vmem:[#allocation4] sm:$0x3] %vm440_vm0, %v3042_v8 }
  0x39   : > { %444 = vst.msk [vmem:[#allocation5] sm:$0x3] %vm440_vm0, %v3042_v8 }
  0x3a PF: > { %v449_v9 = vld [vmem:[%s3781_s2 + $0x30] sm:$0xff]  ;;  %v448_v10 = vld [vmem:[%s3781_s2 + $0x20] sm:$0xff]  ;;  %vm460_vm1 = vcmask 261120   ;;  %v453_v19 = vld [vmem:[%s3781_s2 + $0x38] sm:$0xff]  ;;  %s3043_s23 = smov 32   ;;  %s3044_s20 = smov 64  }
  0x3b   : > { %v447_v11 = vld [vmem:[%s3781_s2 + $0x10] sm:$0xff]  ;;  %v3188_v12 = vand.u32 4294901760, %v449_v9  ;;  %v3190_v13 = vand.u32 4294901760, %v448_v10  ;;  %v446_v15 = vld [vmem:[%s3781_s2] sm:$0xff]  ;;  %v452_v20 = vld [vmem:[%s3781_s2 + $0x28] sm:$0xff]  ;;  %v3230_v28 = vand.u32 4294901760, %v453_v19 }
  0x3c   : > { %v3192_v14 = vand.u32 4294901760, %v447_v11  ;;  %v3199_v17 = vand.u32 4294901760, %v446_v15  ;;  %v451_v21 = vld [vmem:[%s3781_s2 + $0x18] sm:$0xff]  ;;  %v3232_v29 = vand.u32 4294901760, %v452_v20  ;;  %v450_v47 = vld [vmem:[%s3781_s2 + $0x8] sm:$0xff]  ;;  %s727_s12 = ssub.s32 7, %s3159_s21 }
  0x3d   : > { %v3197_v16 = vld [vmem:[#allocation2] sm:$0x3]  ;;  %477 = vmatpush.msra.mxu0 %v3188_v12  ;;  %v3214_v22 = vsub.f32 %v449_v9, %v3188_v12  ;;  %577 = vmatpush.msra.mxu3 %v3188_v12  ;;  %v3218_v23 = vsub.f32 %v448_v10, %v3190_v13  ;;  %v3234_v30 = vand.u32 4294901760, %v451_v21  ;;  %v3254_v36 = vsub.f32 %v453_v19, %v3230_v28  ;;  %s3047_s26 = smov 96   ;;  %s996_s24 = sadd.s32 1, %s3159_s21 }
  0x3e   : > { %v462_v18 = vsel %vm460_vm1, %v3197_v16, 0  ;;  %v3221_v24 = vsub.f32 %v447_v11, %v3192_v14  ;;  %v3225_v26 = vld [vmem:[#allocation3] sm:$0x3]  ;;  %v3228_v27 = vsub.f32 %v446_v15, %v3199_v17  ;;  %v3260_v38 = vsub.f32 %v452_v20, %v3232_v29  ;;  %s1255_s14 = ssub.s32 6, %s3159_s21  ;;  %s1514_s16 = sadd.s32 2, %s3159_s21 }
  0x3f   : > { %v3223_v25 = vand.u32 4294901760, %v462_v18  ;;  %671 = vrot.lane.b32.xlu1 %v3225_v26, %s3043_s23  ;;  %548 = vmatpush.msra.mxu2 %v3214_v22  ;;  %v3243_v32 = vand.u32 4294901760, %v3214_v22  ;;  %v3246_v33 = vand.u32 4294901760, %v3218_v23  ;;  %v3263_v39 = vsub.f32 %v451_v21, %v3234_v30  ;;  %v3288_v48 = vld [vmem:[#allocation4] sm:$0x3]  ;;  %s1773_s22 = ssub.s32 5, %s3159_s21 }
  0x40   : > { %v3238_v31 = vld [vmem:[#allocation5] sm:$0x3]  ;;  %479 = vmatpush.msra.mxu0 %v3190_v13  ;;  %v3250_v35 = vand.u32 4294901760, %v3221_v24  ;;  %579 = vmatpush.msra.mxu3 %v3190_v13  ;;  %v3257_v37 = vand.u32 4294901760, %v3228_v27  ;;  %v3277_v44 = vand.u32 4294901760, %v3254_v36  ;;  %v3280_v45 = vand.u32 4294901760, %v3260_v38 }
  0x41   : > { %v485_v34 = vsub.f32 %v462_v18, %v3223_v25  ;;  %940 = vrot.lane.b32.xlu2 %v3238_v31, %s3043_s23  ;;  %551 = vmatpush.msra.mxu2 %v3218_v23  ;;  %v508_v40 = vsub.f32 %v3214_v22, %v3243_v32  ;;  %v514_v41 = vsub.f32 %v3218_v23, %v3246_v33  ;;  %v3283_v46 = vand.u32 4294901760, %v3263_v39  ;;  %p2795_p0 = scmp.ne.s32.totalorder %s3116_s29, 1 }
  0x42   : > { %481 = vmatpush.msra.mxu0 %v3192_v14  ;;  %v520_v43 = vsub.f32 %v3221_v24, %v3250_v35  ;;  %581 = vmatpush.msra.mxu3 %v3192_v14  ;;  %v526_v52 = vsub.f32 %v3228_v27, %v3257_v37  ;;  %v777_v54 = vsub.f32 %v3254_v36, %v3277_v44  ;;  %v3310_v58 = vand.u32 4294901760, %v450_v47 }
  0x43   : > { %v486_v42 = vand.u32 4294901760, %v485_v34  ;;  %v3290_v49 = vand.u32 4294901760, %v508_v40  ;;  %554 = vmatpush.msra.mxu2 %v3221_v24  ;;  %v3294_v50 = vand.u32 4294901760, %v514_v41  ;;  %v783_v55 = vsub.f32 %v3260_v38, %v3280_v45 }
  0x44   : > { %483 = vmatpush.msra.mxu0 %v3199_v17  ;;  %583 = vmatpush.msra.mxu3 %v3199_v17  ;;  %v3299_v53 = vand.u32 4294901760, %v520_v43  ;;  %v789_v57 = vsub.f32 %v3263_v39, %v3283_v46  ;;  %v731_v59 = vsel %vm460_vm1, %v3288_v48, 0  ;;  %v3314_v60 = vand.u32 4294901760, %v777_v54 }
  0x45   : > { %v487_v51 = vsub.f32 %v485_v34, %v486_v42  ;;  %510 = vmatpush.msra.mxu1 %v3290_v49  ;;  %557 = vmatpush.msra.mxu2 %v3228_v27  ;;  %v3316_v61 = vand.u32 4294901760, %v783_v55  ;;  %v753_v62 = vand.u32 4294901760, %v731_v59  ;;  %v3319_v63 = vand.u32 4294901760, %v526_v52 }
  0x46   : > { %606 = vmatpush.msrb.mxu0 %v3243_v32  ;;  %560 = vmatmul.f32.vlgmr.msra.gmra.mxu2 %v485_v34  ;;  %v3322_v0 = vsub.f32 %v450_v47, %v3310_v58  ;;  %v3328_v2 = vand.u32 4294901760, %v789_v57  ;;  %v459_v34 = vld [vmem:[%s3174_s18] sm:$0x3] }
  0x47   : > { %v488_v56 = vand.u32 4294901760, %v487_v51  ;;  %587 = vmatmul.f32.vlgmr.msra.gmra.mxu3 %v486_v42  ;;  %516 = vmatpush.msra.mxu1 %v3294_v50  ;;  %v754_v1 = vsub.f32 %v731_v59, %v753_v62 }
  0x48   : > { %746 = vmatpush.msrb.mxu2 %v3230_v28  ;;  %779 = vmatpush.msrb.mxu3 %v3314_v60  ;;  %v3331_v3 = vand.u32 4294901760, %v3322_v0 }
  0x49   : > { %489 = vmatmul.f32.vlgmr.msra.gmra.mxu0 %v488_v56  ;;  %522 = vmatpush.msra.mxu1 %v3299_v53  ;;  %v755_v4 = vand.u32 4294901760, %v754_v1 }
  0x4a   : > { %610 = vmatpush.msrb.mxu0 %v3246_v33  ;;  %748 = vmatpush.msrb.mxu2 %v3232_v29  ;;  %v795_v5 = vsub.f32 %v3322_v0, %v3331_v3 }
  0x4b   : > { %785 = vmatpush.msrb.mxu3 %v3316_v61  ;;  %528 = vmatpush.msra.mxu1 %v3319_v63  ;;  %v756_v6 = vsub.f32 %v754_v1, %v755_v4 }
  0x4c   : > { %614 = vmatpush.msrb.mxu0 %v3250_v35  ;;  %530 = vmatmul.f32.vlgmr.msra.gmra.mxu1 %v3223_v25  ;;  %v3343_v7 = vand.u32 4294901760, %v795_v5 }
  0x4d   : > { %750 = vmatpush.msrb.mxu2 %v3234_v30  ;;  %637 = vmatpush.msrb.mxu1 %v3188_v12  ;;  %v757_v8 = vand.u32 4294901760, %v756_v6 }
  0x4e   : > { %791 = vmatpush.msrb.mxu3 %v3328_v2  ;;  %618 = vmatpush.msrb.mxu0 %v3257_v37 }
  0x4f   : > { %752 = vmatpush.msrb.mxu2 %v3310_v58  ;;  %639 = vmatpush.msrb.mxu1 %v3190_v13 }
  0x50   : > { %797 = vmatpush.msrb.mxu3 %v3343_v7  ;;  %758 = vmatmul.f32.vlgmr.msrb.gmra.mxu2 %v757_v8 }
  0x51   : > { %620 = vmatmul.f32.vlgmr.msrb.gmra.mxu0 %v3223_v25  ;;  %641 = vmatpush.msrb.mxu1 %v3192_v14 }
  0x52   : > { %799 = vmatmul.f32.vlgmr.msrb.gmra.mxu3 %v753_v62  ;;  %875 = vmatpush.msra.mxu2 %v3277_v44 }
  0x53   : > { %817 = vmatpush.msra.mxu0 %v3254_v36  ;;  %643 = vmatpush.msrb.mxu1 %v3199_v17 }
  0x54   : > { %906 = vmatpush.msra.mxu3 %v3230_v28  ;;  %879 = vmatpush.msra.mxu2 %v3280_v45 }
  0x55   : > { %820 = vmatpush.msra.mxu0 %v3260_v38  ;;  %645 = vmatmul.f32.vlgmr.msrb.gmra.mxu1 %v3223_v25 }
  0x56   : > { %908 = vmatpush.msra.mxu3 %v3232_v29  ;;  %846 = vmatpush.msra.mxu1 %v3230_v28 }
  0x57   : > { %883 = vmatpush.msra.mxu2 %v3283_v46  ;;  %823 = vmatpush.msra.mxu0 %v3263_v39 }
  0x58   : > { %910 = vmatpush.msra.mxu3 %v3234_v30  ;;  %848 = vmatpush.msra.mxu1 %v3232_v29 }
  0x59   : > { %887 = vmatpush.msra.mxu2 %v3331_v3  ;;  %826 = vmatpush.msra.mxu0 %v3322_v0 }
  0x5a   : > { %889 = vmatmul.f32.vlgmr.msra.gmra.mxu2 %v753_v62  ;;  %829 = vmatmul.f32.vlgmr.msra.gmra.mxu0 %v754_v1  ;;  %v2769_v1 = vld [vmem:[%s3176_s10 + $0x6] sm:$0x3] }
  0x5b   : > { %850 = vmatpush.msra.mxu1 %v3234_v30  ;;  %912 = vmatpush.msra.mxu3 %v3310_v58 }
  0x5c   : > { %1088 = vmatpush.msrb.mxu2 %v3214_v22  ;;  %914 = vmatmul.f32.vlgmr.msra.gmra.mxu3 %v753_v62 }
  0x5d   : > { %852 = vmatpush.msra.mxu1 %v3310_v58  ;;  %1117 = vmatpush.msrb.mxu3 %v3188_v12 }
  0x5e   : > { %856 = vmatmul.f32.vlgmr.msra.gmra.mxu1 %v755_v4  ;;  %1091 = vmatpush.msrb.mxu2 %v3218_v23 }
  0x5f   : > { %1050 = vmatpush.msrb.mxu1 %v3290_v49  ;;  %1017 = vmatpush.msrb.mxu0 %v3188_v12 }
  0x60   : > { %1094 = vmatpush.msrb.mxu2 %v3221_v24  ;;  %1119 = vmatpush.msrb.mxu3 %v3190_v13 }
  0x61   : > { %1056 = vmatpush.msrb.mxu1 %v3294_v50  ;;  %1019 = vmatpush.msrb.mxu0 %v3190_v13 }
  0x62   : > { %1097 = vmatpush.msrb.mxu2 %v3228_v27  ;;  %1121 = vmatpush.msrb.mxu3 %v3192_v14 }
  0x63   : > { %1062 = vmatpush.msrb.mxu1 %v3299_v53  ;;  %1021 = vmatpush.msrb.mxu0 %v3192_v14 }
  0x64   : > { %1276 = vmatpush.msra.mxu2 %v3230_v28  ;;  %1123 = vmatpush.msrb.mxu3 %v3199_v17 }
  0x65   : > { %1068 = vmatpush.msrb.mxu1 %v3319_v63  ;;  %1023 = vmatpush.msrb.mxu0 %v3199_v17 }
  0x66   : > { %1309 = vmatpush.msra.mxu3 %v3314_v60  ;;  %1278 = vmatpush.msra.mxu2 %v3232_v29 }
  0x67   : > { %1177 = vmatpush.msra.mxu1 %v3188_v12  ;;  %1146 = vmatpush.msra.mxu0 %v3243_v32 }
  0x68   : > { %1315 = vmatpush.msra.mxu3 %v3316_v61  ;;  %1280 = vmatpush.msra.mxu2 %v3234_v30 }
  0x69   : > { %1179 = vmatpush.msra.mxu1 %v3190_v13  ;;  %1150 = vmatpush.msra.mxu0 %v3246_v33 }
  0x6a   : > { %1321 = vmatpush.msra.mxu3 %v3328_v2  ;;  %1282 = vmatpush.msra.mxu2 %v3310_v58 }
  0x6b   : > { %1181 = vmatpush.msra.mxu1 %v3192_v14  ;;  %1154 = vmatpush.msra.mxu0 %v3250_v35 }
  0x6c   : > { %1327 = vmatpush.msra.mxu3 %v3343_v7 }
  0x6d   : > { %1183 = vmatpush.msra.mxu1 %v3199_v17  ;;  %1158 = vmatpush.msra.mxu0 %v3257_v37 }
  0xc6   : > { %v490_v9 = vpop.f32.mrf.mxu0 }
  0xc9   : > { %v531_v10 = vpop.f32.mrf.mxu1  ;;  %v561_v11 = vpop.f32.mrf.mxu2 }
  0xca   : > { %v532_v15 = vadd.f32 %v531_v10, %v490_v9  ;;  %v588_v18 = vpop.f32.mrf.mxu3 }
  0xcc   : > { %v562_v19 = vadd.f32 %v561_v11, %v532_v15 }
  0xce   : > { %v621_v20 = vpop.f32.mrf.mxu0  ;;  %v589_v21 = vadd.f32 %v588_v18, %v562_v19  ;;  %v3045_v18 = vmov 0  }
  0xcf   : > { %2866 = vset.pattern.permute.xlu1 %v3045_v18  ;;  %2865 = vset.pattern.permute.xlu0 %v3045_v18 }
  0xd0   : > { %v622_v25 = vadd.f32 %v621_v20, %v589_v21  ;;  %2872 = vset.pattern.permute.xlu2 %v3045_v18 }
  0xd2   : > { %v646_v40 = vpop.f32.mrf.mxu1 }
  0xd3   : > { %v647_v41 = vadd.f32 %v646_v40, %v622_v25  ;;  %v759_v42 = vpop.f32.mrf.mxu2  ;;  %v691_v40 = vstv %s3159_s21 }
  0xd5   : > { %v800_v43 = vpop.f32.mrf.mxu3  ;;  %v649_v47 = vadd.f32 %v647_v41, %v459_v34  ;;  %v3408_v34 = vld [vmem:[%s3782_s3] sm:$0x3] }
  0xd6   : > { %v801_v51 = vadd.f32 %v800_v43, %v759_v42  ;;  %vm692_vm2 = vcmp.lt.s32.totalorder %v691_v40, %v3408_v34  ;;  %v3046_v42 = vmov 0.0  }
  0xd7   : > { %2873 = vtanh.f32 %v649_v47  ;;  %v830_v52 = vpop.f32.mrf.mxu0  ;;  %v2767_v9 = vmul.f32 -1.442695, %v649_v47  ;;  %v2768_v43 = vsel %vm692_vm2, 1.0, %v3046_v42 }
  0xd8   : > { %v831_v54 = vadd.f32 %v830_v52, %v801_v51  ;;  %v701_v47 = vsub.f32 1.0, %v2768_v43 }
  0xdb   : > { %v857_v55 = vpop.f32.mrf.mxu1 }
  0xdc   : > { %v858_v56 = vadd.f32 %v857_v55, %v831_v54 }
  0xdd   : > { %v890_v57 = vpop.f32.mrf.mxu2  ;;  %v2874_v59 = vpop.eup %2873 }
  0xde   : > { %v891_v62 = vadd.f32 %v890_v57, %v858_v56  ;;  %676 = vrot.lane.b32.xlu0 %v2874_v59, %s3044_s20 }
  0xdf   : > { %v915_v4 = vpop.f32.mrf.mxu3 }
  0xe0   : > { %v916_v5 = vadd.f32 %v915_v4, %v891_v62  ;;  %v960_v4 = vstv %s727_s12 }
  0xe1   : > { %vm961_vm7 = vcmp.lt.s32.totalorder %v960_v4, %v3408_v34 }
  0xe2   : > { %v918_v6 = vadd.f32 %v2769_v1, %v916_v5 }
  0xe4   : > { %2875 = vtanh.f32 %v918_v6  ;;  %v2770_v15 = vmul.f32 -1.442695, %v918_v6 }
  0xe5   : > { %2877 = vpow2.f32 %v2767_v9 }
  0xea   : > { %v2876_v8 = vpop.eup %2875 }
  0xeb   : > { %945 = vrot.lane.b32.xlu0 %v2876_v8, %s3044_s20  ;;  %v2878_v10 = vpop.eup %2877 }
  0xec   : > { %v653_v11 = vadd.f32 1.0, %v2878_v10  ;;  %v2771_v10 = vsel %vm961_vm7, 1.0, %v3046_v42 }
  0xed   : > { %v970_v18 = vsub.f32 1.0, %v2771_v10 }
  0xee   : > { %2879 = vrcp.f32 %v653_v11  ;;  %v665_v55 = vand.u32 2147483648, %v653_v11  ;;  %vm659_vm4 = vweird.f32 %v653_v11  ;;  %v663_v57 = vand.u32 2147483647, %v653_v11 }
  0xef   : > { %2881 = vpow2.f32 %v2770_v15 }
  0xf0   : > { %v666_v62 = vor.u32 1.1754944e-38, %v665_v55  ;;  %vm664_vm6 = vcmp.eq.f32.partialorder %v663_v57, 8.507059e+37  ;;  %v672_v57 = vpop.permute.xlu1 %671 }
  0xf3   : > { %704 = vperm.xlu0 %2865, %v701_v47  }
  0xf4   : > { %v2880_v19 = vpop.eup %2879 }
  0xf5   : > { %v2882_v20 = vpop.eup %2881  ;;  %v655_v25 = vmul.f32 %v2880_v19, %v653_v11  ;;  %vm660_vm3 = vweird.f32 %v2880_v19 }
  0xf6   : > { %v922_v21 = vadd.f32 1.0, %v2882_v20  ;;  %vm661_vm5 = vmor %vm659_vm4, %vm660_vm3 }
  0xf7   : > { %v656_v41 = vsub.f32 1.0, %v655_v25 }
  0xf8   : > { %2883 = vrcp.f32 %v922_v21  ;;  %v934_v11 = vand.u32 2147483648, %v922_v21  ;;  %vm928_vm9 = vweird.f32 %v922_v21 }
  0xf9   : > { %v657_v51 = vmul.f32 %v2880_v19, %v656_v41 }
  0xfa   : > { %v935_v25 = vor.u32 1.1754944e-38, %v934_v11 }
  0xfb   : > { %v658_v54 = vadd.f32 %v2880_v19, %v657_v51  ;;  %v941_v51 = vpop.permute.xlu2 %940 }
  0xfd   : > { %v662_v59 = vsel %vm661_vm5, %v2880_v19, %v658_v54  ;;  %v932_v19 = vand.u32 2147483647, %v922_v21 }
  0xfe   : > { %v2884_v52 = vpop.eup %2883  ;;  %v667_v5 = vsel %vm664_vm6, %v666_v62, %v662_v59 }
  0xff   : > { %v924_v56 = vmul.f32 %v2884_v52, %v922_v21  ;;  %vm929_vm8 = vweird.f32 %v2884_v52  ;;  %vm933_vm11 = vcmp.eq.f32.partialorder %v932_v19, 8.507059e+37 }
 0x100   : > { %vm930_vm10 = vmor %vm928_vm9, %vm929_vm8 }
 0x101   : > { %v925_v1 = vsub.f32 1.0, %v924_v56 }
 0x103   : > { %v926_v9 = vmul.f32 %v2884_v52, %v925_v1 }
 0x105   : > { %v927_v15 = vadd.f32 %v2884_v52, %v926_v9 }
 0x107   : > { %v931_v20 = vsel %vm930_vm10, %v2884_v52, %v927_v15  ;;  %v674_v52 = vmul.f32 %v672_v57, %v667_v5 }
 0x108   : > { %v936_v40 = vsel %vm933_vm11, %v935_v25, %v931_v20 }
 0x109   : > { %v943_v54 = vmul.f32 %v941_v51, %v936_v40 }
 0x150   : > { %v677_v6 = vpop.permute.xlu0 %676 }
 0x151   : > { %v679_v8 = vmul.f32 %v677_v6, %v667_v5 }
 0x153   : > { %681 = vrot.lane.b32.xlu1 %v679_v8, %s3043_s23 }
 0x15b   : > { %973 = vperm.xlu1 %2866, %v970_v18  }
 0x15d   : > { %v946_v41 = vpop.permute.xlu0 %945 }
 0x15e   : > { %v948_v47 = vmul.f32 %v946_v41, %v936_v40 }
 0x160   : > { %950 = vrot.lane.b32.xlu2 %v948_v47, %s3043_s23 }
 0x163   : > { %697 = vperm.xlu1 %2866, %v2768_v43  }
 0x165   : > { %v705_v43 = vpop.permute.xlu0 %704 }
 0x166   : > { %v707_v4 = vmul.f32 %v705_v43, %v3197_v16 }
 0x16b   : > { %966 = vperm.xlu1 %2866, %v2771_v10  }
 0x1ba   : > { %v951_v55 = vpop.permute.xlu2 %950 }
 0x1bb   : > { %v3418_v56 = vadd.f32 %v951_v55, %v943_v54 }
 0x1bd   : > { %2885 = vtanh.f32 %v3418_v56 }
 0x1c3   : > { %v2886_v21 = vpop.eup %2885 }
 0x1c4   : > { %956 = vrot.lane.b32.xlu0 %v2886_v21, %s3044_s20 }
 0x1c5   : > { %v682_v59 = vpop.permute.xlu1 %681 }
 0x1c6   : > { %v3422_v62 = vadd.f32 %v682_v59, %v674_v52 }
 0x1c8   : > { %2887 = vtanh.f32 %v3422_v62 }
 0x1cd   : > { %v3428_v6 = vpop.permute.xlu1 %973 }
 0x1ce   : > { %v2888_v1 = vpop.eup %2887  ;;  %v976_v8 = vmul.f32 %v3428_v6, %v3288_v48 }
 0x1cf   : > { %687 = vrot.lane.b32.xlu2 %v2888_v1, %s3044_s20 }
 0x1d5   : > { %v3433_v15 = vpop.permute.xlu1 %697 }
 0x1d7   : > { %709 = vrot.lane.b32.xlu2 %v707_v4, %s3047_s26 }
 0x1dd   : > { %v3440_v25 = vpop.permute.xlu1 %966 }
 0x1df   : > { %978 = vrot.lane.b32.xlu2 %v976_v8, %s3047_s26 }
 0x229   : > { %v688_v9 = vpop.permute.xlu2 %687 }
 0x22a   : > { %v690_v10 = vmul.f32 %v688_v9, %v667_v5  ;;  %v714_v5 = vmul.f32 %v705_v43, %v3225_v26 }
 0x22c   : > { %v700_v11 = vmul.f32 %v3433_v15, %v690_v10 }
 0x231   : > { %v710_v18 = vpop.permute.xlu2 %709 }
 0x232   : > { %v3436_v19 = vadd.f32 %v710_v18, %v700_v11 }
 0x234   : > { %1000 = vrot.lane.b32.xlu0 %v3436_v19, %s3043_s23 }
 0x236   : > { %v957_v16 = vpop.permute.xlu0 %956 }
 0x237   : > { %v959_v20 = vmul.f32 %v957_v16, %v936_v40 }
 0x239   : > { %v979_v41 = vpop.permute.xlu2 %978  ;;  %v969_v48 = vmul.f32 %v3440_v25, %v959_v20 }
 0x23b   : > { %v3443_v47 = vadd.f32 %v979_v41, %v969_v48 }
 0x23d   : > { %1259 = vrot.lane.b32.xlu1 %v3443_v47, %s3043_s23 }
 0x245   : > { %716 = vrot.lane.b32.xlu1 %v714_v5, %s3043_s23 }
 0x2a6   : > { %v1001_v51 = vpop.permute.xlu0 %1000 }
 0x2a7   : > { %v1002_v54 = vsel %vm460_vm1, %v1001_v51, 0 }
 0x2a8   : > { %v1024_v55 = vand.u32 4294901760, %v1002_v54 }
 0x2aa   : > { %v1025_v57 = vsub.f32 %v1002_v54, %v1024_v55  ;;  %1070 = vmatmul.f32.vlgmr.msrb.gmra.mxu1 %v1024_v55 }
 0x2ab   : > { %1376 = vmatpush.msrb.mxu1 %v3230_v28 }
 0x2ac   : > { %v1026_v40 = vand.u32 4294901760, %v1025_v57  ;;  %1100 = vmatmul.f32.vlgmr.msrb.gmra.mxu2 %v1025_v57 }
 0x2ad   : > { %1378 = vmatpush.msrb.mxu1 %v3232_v29  ;;  %1405 = vmatpush.msrb.mxu2 %v3277_v44 }
 0x2ae   : > { %v1027_v21 = vsub.f32 %v1025_v57, %v1026_v40  ;;  %1127 = vmatmul.f32.vlgmr.msrb.gmra.mxu3 %v1026_v40 }
 0x2af   : > { %v1260_v52 = vpop.permute.xlu1 %1259  ;;  %1380 = vmatpush.msrb.mxu1 %v3234_v30  ;;  %1436 = vmatpush.msrb.mxu3 %v3230_v28 }
 0x2b0   : > { %v1028_v26 = vand.u32 4294901760, %v1027_v21  ;;  %v1261_v59 = vsel %vm460_vm1, %v1260_v52, 0  ;;  %1409 = vmatpush.msrb.mxu2 %v3280_v45 }
 0x2b1   : > { %v1283_v1 = vand.u32 4294901760, %v1261_v59  ;;  %1382 = vmatpush.msrb.mxu1 %v3310_v58  ;;  %1438 = vmatpush.msrb.mxu3 %v3232_v29 }
 0x2b2   : > { %1029 = vmatmul.f32.vlgmr.msrb.gmra.mxu0 %v1028_v26  ;;  %1185 = vmatmul.f32.vlgmr.msra.gmra.mxu1 %v1024_v55 }
 0x2b3   : > { %v1284_v43 = vsub.f32 %v1261_v59, %v1283_v1  ;;  %1347 = vmatpush.msrb.mxu0 %v3254_v36  ;;  %1440 = vmatpush.msrb.mxu3 %v3234_v30 }
 0x2b4   : > { %1413 = vmatpush.msrb.mxu2 %v3283_v46  ;;  %1568 = vmatpush.msra.mxu1 %v3290_v49 }
 0x2b5   : > { %v1285_v4 = vand.u32 4294901760, %v1284_v43  ;;  %1350 = vmatpush.msrb.mxu0 %v3260_v38  ;;  %1442 = vmatpush.msrb.mxu3 %v3310_v58 }
 0x2b6   : > { %1329 = vmatmul.f32.vlgmr.msra.gmra.mxu3 %v1283_v1  ;;  %1417 = vmatpush.msrb.mxu2 %v3331_v3 }
 0x2b7   : > { %v1286_v8 = vsub.f32 %v1284_v43, %v1285_v4  ;;  %1353 = vmatpush.msrb.mxu0 %v3263_v39  ;;  %1574 = vmatpush.msra.mxu1 %v3294_v50 }
 0x2b8   : > { %1635 = vmatpush.msra.mxu3 %v3188_v12 }
 0x2b9   : > { %v1287_v9 = vand.u32 4294901760, %v1286_v8  ;;  %1356 = vmatpush.msrb.mxu0 %v3322_v0  ;;  %1580 = vmatpush.msra.mxu1 %v3299_v53 }
 0x2ba   : > { %1160 = vmatmul.f32.vlgmr.msra.gmra.mxu0 %v1024_v55  ;;  %1386 = vmatmul.f32.vlgmr.msrb.gmra.mxu1 %v1285_v4  ;;  %v2773_v55 = vld [vmem:[%s3174_s18 + $0x2] sm:$0x3] }
 0x2bb   : > { %1288 = vmatmul.f32.vlgmr.msra.gmra.mxu2 %v1287_v9  ;;  %1586 = vmatpush.msra.mxu1 %v3319_v63 }
 0x2bc   : > { %1606 = vmatpush.msra.mxu2 %v3214_v22  ;;  %1637 = vmatpush.msra.mxu3 %v3190_v13 }
 0x2bd   : > { %1535 = vmatpush.msra.mxu0 %v3188_v12  ;;  %1695 = vmatpush.msrb.mxu1 %v3188_v12 }
 0x2be   : > { %1444 = vmatmul.f32.vlgmr.msrb.gmra.mxu3 %v1283_v1  ;;  %1609 = vmatpush.msra.mxu2 %v3218_v23 }
 0x2bf   : > { %1639 = vmatpush.msra.mxu3 %v3192_v14  ;;  %1537 = vmatpush.msra.mxu0 %v3190_v13 }
 0x2c0   : > { %1612 = vmatpush.msra.mxu2 %v3221_v24  ;;  %1697 = vmatpush.msrb.mxu1 %v3190_v13 }
 0x2c1   : > { %1641 = vmatpush.msra.mxu3 %v3199_v17  ;;  %1539 = vmatpush.msra.mxu0 %v3192_v14 }
 0x2c2   : > { %1359 = vmatmul.f32.vlgmr.msrb.gmra.mxu0 %v1284_v43  ;;  %1615 = vmatpush.msra.mxu2 %v3228_v27 }
 0x2c3   : > { %1419 = vmatmul.f32.vlgmr.msrb.gmra.mxu2 %v1283_v1  ;;  %1699 = vmatpush.msrb.mxu1 %v3192_v14 }
 0x2c4   : > { %1541 = vmatpush.msra.mxu0 %v3199_v17  ;;  %1827 = vmatpush.msrb.mxu3 %v3314_v60 }
 0x2c5   : > { %1701 = vmatpush.msrb.mxu1 %v3199_v17  ;;  %1794 = vmatpush.msrb.mxu2 %v3230_v28 }
 0x2c6   : > { %1664 = vmatpush.msrb.mxu0 %v3243_v32  ;;  %1833 = vmatpush.msrb.mxu3 %v3316_v61 }
 0x2c7   : > { %1796 = vmatpush.msrb.mxu2 %v3232_v29 }
 0x2c8   : > { %1668 = vmatpush.msrb.mxu0 %v3246_v33  ;;  %1839 = vmatpush.msrb.mxu3 %v3328_v2 }
 0x2c9   : > { %1798 = vmatpush.msrb.mxu2 %v3234_v30 }
 0x2ca   : > { %1672 = vmatpush.msrb.mxu0 %v3250_v35  ;;  %1845 = vmatpush.msrb.mxu3 %v3343_v7 }
 0x2cb   : > { %1800 = vmatpush.msrb.mxu2 %v3310_v58 }
 0x2cc   : > { %1676 = vmatpush.msrb.mxu0 %v3257_v37 }
 0x327   : > { %v1071_v10 = vpop.f32.mrf.mxu1 }
 0x32f   : > { %v1030_v11 = vpop.f32.mrf.mxu0  ;;  %v1101_v16 = vpop.f32.mrf.mxu2 }
 0x330   : > { %v1072_v18 = vadd.f32 %v1071_v10, %v1030_v11  ;;  %v1186_v54 = vpop.f32.mrf.mxu1 }
 0x331   : > { %v1128_v41 = vpop.f32.mrf.mxu3 }
 0x332   : > { %v1102_v20 = vadd.f32 %v1101_v16, %v1072_v18  ;;  %v2777_v18 = vld [vmem:[%s3176_s10 + $0x4] sm:$0x3] }
 0x334   : > { %v1129_v48 = vadd.f32 %v1128_v41, %v1102_v20 }
 0x337   : > { %v1161_v5 = vpop.f32.mrf.mxu0 }
 0x338   : > { %v1162_v51 = vadd.f32 %v1161_v5, %v1129_v48  ;;  %v1387_v4 = vpop.f32.mrf.mxu1  ;;  %v983_v48 = vmul.f32 %v3428_v6, %v3238_v31  ;;  %v1227_v5 = vstv %s996_s24 }
 0x339   : > { %v1330_v21 = vpop.f32.mrf.mxu3  ;;  %vm1228_vm12 = vcmp.lt.s32.totalorder %v1227_v5, %v3408_v34 }
 0x33a   : > { %v1187_v57 = vadd.f32 %v1186_v54, %v1162_v51  ;;  %v2775_v51 = vsel %vm1228_vm12, 1.0, %v3046_v42  ;;  %v1486_v54 = vstv %s1255_s14 }
 0x33b   : > { %vm1487_vm13 = vcmp.lt.s32.totalorder %v1486_v54, %v3408_v34 }
 0x33c   : > { %v1189_v40 = vadd.f32 %v2773_v55, %v1187_v57  ;;  %v2779_v55 = vsel %vm1487_vm13, 1.0, %v3046_v42 }
 0x33e   : > { %2889 = vtanh.f32 %v1189_v40  ;;  %v1289_v52 = vpop.f32.mrf.mxu2  ;;  %v2774_v57 = vmul.f32 -1.442695, %v1189_v40 }
 0x33f   : > { %v1331_v26 = vadd.f32 %v1330_v21, %v1289_v52  ;;  %v1360_v59 = vpop.f32.mrf.mxu0 }
 0x341   : > { %v1361_v1 = vadd.f32 %v1360_v59, %v1331_v26  ;;  %v1445_v11 = vpop.f32.mrf.mxu3 }
 0x343   : > { %v1388_v8 = vadd.f32 %v1387_v4, %v1361_v1 }
 0x344   : > { %v2890_v43 = vpop.eup %2889 }
 0x345   : > { %1212 = vrot.lane.b32.xlu2 %v2890_v43, %s3044_s20 }
 0x346   : > { %v1420_v9 = vpop.f32.mrf.mxu2 }
 0x347   : > { %v1421_v10 = vadd.f32 %v1420_v9, %v1388_v8 }
 0x349   : > { %v1446_v16 = vadd.f32 %v1445_v11, %v1421_v10 }
 0x34b   : > { %v1448_v20 = vadd.f32 %v2777_v18, %v1446_v16 }
 0x34d   : > { %2891 = vtanh.f32 %v1448_v20  ;;  %v2778_v43 = vmul.f32 -1.442695, %v1448_v20 }
 0x34e   : > { %2893 = vpow2.f32 %v2774_v57 }
 0x353   : > { %v2892_v41 = vpop.eup %2891 }
 0x354   : > { %1471 = vrot.lane.b32.xlu0 %v2892_v41, %s3044_s20  ;;  %v2894_v21 = vpop.eup %2893 }
 0x355   : > { %v1193_v52 = vadd.f32 1.0, %v2894_v21 }
 0x357   : > { %2895 = vrcp.f32 %v1193_v52  ;;  %v1205_v4 = vand.u32 2147483648, %v1193_v52  ;;  %vm1199_vm15 = vweird.f32 %v1193_v52  ;;  %v1203_v8 = vand.u32 2147483647, %v1193_v52 }
 0x358   : > { %2897 = vpow2.f32 %v2778_v43  ;;  %v1237_v43 = vsub.f32 1.0, %v2775_v51 }
 0x359   : > { %v1206_v10 = vor.u32 1.1754944e-38, %v1205_v4  ;;  %vm1204_vm2 = vcmp.eq.f32.partialorder %v1203_v8, 8.507059e+37  ;;  %v1496_v4 = vsub.f32 1.0, %v2779_v55  ;;  %v717_v8 = vpop.permute.xlu1 %716 }
 0x35c   : > { %985 = vrot.lane.b32.xlu0 %v983_v48, %s3043_s23 }
 0x35d   : > { %v2896_v31 = vpop.eup %2895 }
 0x35e   : > { %v1195_v6 = vmul.f32 %v2896_v31, %v1193_v52  ;;  %vm1200_vm14 = vweird.f32 %v2896_v31  ;;  %v2898_v16 = vpop.eup %2897 }
 0x35f   : > { %vm1201_vm0 = vmor %vm1199_vm15, %vm1200_vm14  ;;  %v1452_v41 = vadd.f32 1.0, %v2898_v16 }
 0x360   : > { %v1196_v26 = vsub.f32 1.0, %v1195_v6 }
 0x361   : > { %2899 = vrcp.f32 %v1452_v41  ;;  %v1464_v21 = vand.u32 2147483648, %v1452_v41  ;;  %vm1458_vm4 = vweird.f32 %v1452_v41  ;;  %v1462_v52 = vand.u32 2147483647, %v1452_v41 }
 0x362   : > { %v1197_v59 = vmul.f32 %v2896_v31, %v1196_v26 }
 0x363   : > { %v1465_v6 = vor.u32 1.1754944e-38, %v1464_v21  ;;  %vm1463_vm6 = vcmp.eq.f32.partialorder %v1462_v52, 8.507059e+37 }
 0x364   : > { %1233 = vperm.xlu0 %2865, %v2775_v51   ;;  %v1198_v1 = vadd.f32 %v2896_v31, %v1197_v59 }
 0x366   : > { %v1202_v9 = vsel %vm1201_vm0, %v2896_v31, %v1198_v1 }
 0x367   : > { %v1207_v11 = vsel %vm1204_vm2, %v1206_v10, %v1202_v9  ;;  %v2900_v48 = vpop.eup %2899  ;;  %v713_v9 = vmul.f32 %v3433_v15, %v3422_v62 }
 0x368   : > { %v1454_v5 = vmul.f32 %v2900_v48, %v1452_v41  ;;  %vm1459_vm3 = vweird.f32 %v2900_v48 }
 0x369   : > { %vm1460_vm5 = vmor %vm1458_vm4, %vm1459_vm3  ;;  %v719_v10 = vadd.f32 %v717_v8, %v713_v9 }
 0x36a   : > { %v1455_v54 = vsub.f32 1.0, %v1454_v5  ;;  %v982_v5 = vmul.f32 %v3440_v25, %v3418_v56 }
 0x36c   : > { %1492 = vperm.xlu0 %2865, %v2779_v55   ;;  %v1456_v20 = vmul.f32 %v2900_v48, %v1455_v54 }
 0x36e   : > { %v1457_v57 = vadd.f32 %v2900_v48, %v1456_v20 }
 0x370   : > { %v1461_v31 = vsel %vm1460_vm5, %v2900_v48, %v1457_v57 }
 0x371   : > { %v1466_v59 = vsel %vm1463_vm6, %v1465_v6, %v1461_v31 }
 0x39f   : > { %v1213_v40 = vpop.permute.xlu2 %1212 }
 0x3a0   : > { %v1215_v18 = vmul.f32 %v1213_v40, %v1207_v11  ;;  %v1210_v40 = vmul.f32 %v1207_v11, %v719_v10 }
 0x3a2   : > { %1217 = vrot.lane.b32.xlu2 %v1215_v18, %s3043_s23 }
 0x3c6   : > { %v1472_v26 = vpop.permute.xlu0 %1471 }
 0x3c7   : > { %v1474_v1 = vmul.f32 %v1472_v26, %v1466_v59 }
 0x3c9   : > { %1476 = vrot.lane.b32.xlu1 %v1474_v1, %s3043_s23 }
 0x3ce   : > { %v986_v48 = vpop.permute.xlu0 %985 }
 0x3cf   : > { %v3519_v51 = vadd.f32 %v986_v48, %v982_v5 }
 0x3d1   : > { %1240 = vperm.xlu1 %2866, %v1237_v43   ;;  %v1469_v55 = vmul.f32 %v1466_v59, %v3519_v51 }
 0x3d6   : > { %v3525_v62 = vpop.permute.xlu0 %1233 }
 0x3d9   : > { %1499 = vperm.xlu1 %2866, %v1496_v4  }
 0x3fc   : > { %v1218_v18 = vpop.permute.xlu2 %1217 }
 0x3fd   : > { %v1220_v16 = vadd.f32 %v1218_v18, %v1210_v40 }
 0x3ff   : > { %2901 = vtanh.f32 %v1220_v16  ;;  %v1245_v52 = vmul.f32 %v3525_v62, %v1220_v16 }
 0x405   : > { %v2902_v41 = vpop.eup %2901 }
 0x406   : > { %1223 = vrot.lane.b32.xlu2 %v2902_v41, %s3044_s20 }
 0x43b   : > { %v1477_v54 = vpop.permute.xlu1 %1476 }
 0x43c   : > { %v3522_v20 = vadd.f32 %v1477_v54, %v1469_v55 }
 0x43e   : > { %2903 = vtanh.f32 %v3522_v20 }
 0x443   : > { %v1241_v57 = vpop.permute.xlu1 %1240 }
 0x444   : > { %v2904_v21 = vpop.eup %2903  ;;  %v1246_v31 = vmul.f32 %v1241_v57, %v719_v10  ;;  %v1243_v1 = vmul.f32 %v1241_v57, %v3436_v19  ;;  %v3539_v10 = vpop.permute.xlu0 %1492 }
 0x445   : > { %1482 = vrot.lane.b32.xlu2 %v2904_v21, %s3044_s20 }
 0x446   : > { %v3529_v6 = vadd.f32 %v1246_v31, %v1245_v52 }
 0x44b   : > { %v3537_v8 = vpop.permute.xlu1 %1499 }
 0x44c   : > { %v1502_v18 = vmul.f32 %v3537_v8, %v3443_v47 }
 0x460   : > { %v1224_v56 = vpop.permute.xlu2 %1223 }
 0x461   : > { %v1226_v26 = vmul.f32 %v1224_v56, %v1207_v11 }
 0x463   : > { %v1236_v43 = vmul.f32 %v3525_v62, %v1226_v26 }
 0x465   : > { %v3533_v4 = vadd.f32 %v1243_v1, %v1236_v43 }
 0x467   : > { %1518 = vrot.lane.b32.xlu2 %v3533_v4, %s3043_s23 }
 0x49f   : > { %v1483_v9 = vpop.permute.xlu2 %1482 }
 0x4a0   : > { %v1485_v40 = vmul.f32 %v1483_v9, %v1466_v59 }
 0x4a2   : > { %v1495_v11 = vmul.f32 %v3539_v10, %v1485_v40 }
 0x4a4   : > { %v3544_v16 = vadd.f32 %v1502_v18, %v1495_v11 }
 0x4a6   : > { %1777 = vrot.lane.b32.xlu0 %v3544_v16, %s3043_s23 }
 0x4c1   : > { %v1519_v41 = vpop.permute.xlu2 %1518 }
 0x4c2   : > { %v1520_v48 = vsel %vm460_vm1, %v1519_v41, 0 }
 0x4c3   : > { %v1542_v5 = vand.u32 4294901760, %v1520_v48 }
 0x4c5   : > { %v1543_v55 = vsub.f32 %v1520_v48, %v1542_v5  ;;  %1588 = vmatmul.f32.vlgmr.msra.gmra.mxu1 %v1542_v5 }
 0x4c6   : > { %1894 = vmatpush.msra.mxu1 %v3230_v28 }
 0x4c7   : > { %v1544_v59 = vand.u32 4294901760, %v1543_v55  ;;  %1618 = vmatmul.f32.vlgmr.msra.gmra.mxu2 %v1543_v55 }
 0x4c8   : > { %1896 = vmatpush.msra.mxu1 %v3232_v29  ;;  %1923 = vmatpush.msra.mxu2 %v3277_v44 }
 0x4c9   : > { %v1545_v54 = vsub.f32 %v1543_v55, %v1544_v59  ;;  %1645 = vmatmul.f32.vlgmr.msra.gmra.mxu3 %v1544_v59  ;;  %v2785_v55 = vld [vmem:[%s3176_s10 + $0x2] sm:$0x3] }
 0x4ca   : > { %1898 = vmatpush.msra.mxu1 %v3234_v30  ;;  %1954 = vmatpush.msra.mxu3 %v3230_v28 }
 0x4cb   : > { %v1546_v57 = vand.u32 4294901760, %v1545_v54  ;;  %1927 = vmatpush.msra.mxu2 %v3280_v45 }
 0x4cc   : > { %1900 = vmatpush.msra.mxu1 %v3310_v58  ;;  %1956 = vmatpush.msra.mxu3 %v3232_v29 }
 0x4cd   : > { %1547 = vmatmul.f32.vlgmr.msra.gmra.mxu0 %v1546_v57  ;;  %1703 = vmatmul.f32.vlgmr.msrb.gmra.mxu1 %v1542_v5 }
 0x4ce   : > { %1865 = vmatpush.msra.mxu0 %v3254_v36  ;;  %1958 = vmatpush.msra.mxu3 %v3234_v30 }
 0x4cf   : > { %1931 = vmatpush.msra.mxu2 %v3283_v46  ;;  %2086 = vmatpush.msrb.mxu1 %v3290_v49 }
 0x4d0   : > { %1868 = vmatpush.msra.mxu0 %v3260_v38  ;;  %1960 = vmatpush.msra.mxu3 %v3310_v58 }
 0x4d1   : > { %1935 = vmatpush.msra.mxu2 %v3331_v3  ;;  %2092 = vmatpush.msrb.mxu1 %v3294_v50 }
 0x4d2   : > { %1871 = vmatpush.msra.mxu0 %v3263_v39 }
 0x4d3   : > { %2098 = vmatpush.msrb.mxu1 %v3299_v53 }
 0x4d4   : > { %1874 = vmatpush.msra.mxu0 %v3322_v0 }
 0x4d5   : > { %1678 = vmatmul.f32.vlgmr.msrb.gmra.mxu0 %v1542_v5  ;;  %2104 = vmatpush.msrb.mxu1 %v3319_v63 }
 0x4d6   : > { %2053 = vmatpush.msrb.mxu0 %v3188_v12 }
 0x4d8   : > { %2055 = vmatpush.msrb.mxu0 %v3190_v13 }
 0x4da   : > { %2057 = vmatpush.msrb.mxu0 %v3192_v14 }
 0x4dc   : > { %2059 = vmatpush.msrb.mxu0 %v3199_v17 }
 0x518   : > { %v1778_v49 = vpop.permute.xlu0 %1777 }
 0x519   : > { %v1779_v50 = vsel %vm460_vm1, %v1778_v49, 0 }
 0x51a   : > { %v1801_v21 = vand.u32 4294901760, %v1779_v50 }
 0x51c   : > { %v1802_v52 = vsub.f32 %v1779_v50, %v1801_v21  ;;  %1847 = vmatmul.f32.vlgmr.msrb.gmra.mxu3 %v1801_v21 }
 0x51d   : > { %2153 = vmatpush.msrb.mxu3 %v3188_v12 }
 0x51e   : > { %v1803_v53 = vand.u32 4294901760, %v1802_v52  ;;  %1877 = vmatmul.f32.vlgmr.msra.gmra.mxu0 %v1802_v52 }
 0x51f   : > { %2155 = vmatpush.msrb.mxu3 %v3190_v13  ;;  %2182 = vmatpush.msra.mxu0 %v3243_v32 }
 0x520   : > { %v1804_v63 = vsub.f32 %v1802_v52, %v1803_v53  ;;  %1904 = vmatmul.f32.vlgmr.msra.gmra.mxu1 %v1803_v53 }
 0x521   : > { %2157 = vmatpush.msrb.mxu3 %v3192_v14  ;;  %2213 = vmatpush.msra.mxu1 %v3188_v12 }
 0x522   : > { %v1805_v31 = vand.u32 4294901760, %v1804_v63  ;;  %2186 = vmatpush.msra.mxu0 %v3246_v33 }
 0x523   : > { %2159 = vmatpush.msrb.mxu3 %v3199_v17  ;;  %2215 = vmatpush.msra.mxu1 %v3190_v13 }
 0x524   : > { %1806 = vmatmul.f32.vlgmr.msrb.gmra.mxu2 %v1805_v31  ;;  %1962 = vmatmul.f32.vlgmr.msra.gmra.mxu3 %v1801_v21 }
 0x525   : > { %2124 = vmatpush.msrb.mxu2 %v3214_v22  ;;  %2217 = vmatpush.msra.mxu1 %v3192_v14 }
 0x526   : > { %2190 = vmatpush.msra.mxu0 %v3250_v35  ;;  %2344 = vmatpush.msra.mxu3 %v3314_v60  ;;  %v2781_v35 = vld [vmem:[%s3174_s18 + $0x4] sm:$0x3] }
 0x527   : > { %2127 = vmatpush.msrb.mxu2 %v3218_v23  ;;  %2219 = vmatpush.msra.mxu1 %v3199_v17 }
 0x528   : > { %2194 = vmatpush.msra.mxu0 %v3257_v37  ;;  %2350 = vmatpush.msra.mxu3 %v3316_v61 }
 0x529   : > { %2130 = vmatpush.msrb.mxu2 %v3221_v24 }
 0x52a   : > { %2356 = vmatpush.msra.mxu3 %v3328_v2 }
 0x52b   : > { %2133 = vmatpush.msrb.mxu2 %v3228_v27 }
 0x52c   : > { %1937 = vmatmul.f32.vlgmr.msra.gmra.mxu2 %v1801_v21  ;;  %2362 = vmatpush.msra.mxu3 %v3343_v7 }
 0x52d   : > { %2311 = vmatpush.msra.mxu2 %v3230_v28 }
 0x52f   : > { %2313 = vmatpush.msra.mxu2 %v3232_v29 }
 0x531   : > { %2315 = vmatpush.msra.mxu2 %v3234_v30 }
 0x533   : > { %2317 = vmatpush.msra.mxu2 %v3310_v58 }
 0x542   : > { %v1589_v12 = vpop.f32.mrf.mxu1 }
 0x54a   : > { %v1548_v13 = vpop.f32.mrf.mxu0  ;;  %v1619_v17 = vpop.f32.mrf.mxu2 }
 0x54b   : > { %v1590_v14 = vadd.f32 %v1589_v12, %v1548_v13  ;;  %v1704_v33 = vpop.f32.mrf.mxu1 }
 0x54c   : > { %v1646_v23 = vpop.f32.mrf.mxu3 }
 0x54d   : > { %v1620_v22 = vadd.f32 %v1619_v17, %v1590_v14 }
 0x54f   : > { %v1647_v24 = vadd.f32 %v1646_v23, %v1620_v22  ;;  %v1745_v23 = vstv %s1514_s16 }
 0x550   : > { %vm1746_vm11 = vcmp.lt.s32.totalorder %v1745_v23, %v3408_v34 }
 0x552   : > { %v1679_v27 = vpop.f32.mrf.mxu0 }
 0x553   : > { %v1680_v32 = vadd.f32 %v1679_v27, %v1647_v24  ;;  %v2783_v24 = vsel %vm1746_vm11, 1.0, %v3046_v42  ;;  %v2004_v27 = vstv %s1773_s22  ;;  %vm725_vm11 = vcmask 254976  }
 0x554   : > { %vm2005_vm12 = vcmp.lt.s32.totalorder %v2004_v27, %v3408_v34 }
 0x555   : > { %v1705_v37 = vadd.f32 %v1704_v33, %v1680_v32  ;;  %v2787_v32 = vsel %vm2005_vm12, 1.0, %v3046_v42 }
 0x557   : > { %v1707_v60 = vadd.f32 %v2781_v35, %v1705_v37 }
 0x559   : > { %2905 = vtanh.f32 %v1707_v60  ;;  %v2782_v2 = vmul.f32 -1.442695, %v1707_v60 }
 0x55b   : > { %2907 = vpow2.f32 %v2782_v2 }
 0x55f   : > { %v2906_v61 = vpop.eup %2905 }
 0x560   : > { %1730 = vrot.lane.b32.xlu1 %v2906_v61, %s3044_s20 }
 0x561   : > { %v2908_v40 = vpop.eup %2907 }
 0x562   : > { %v1711_v48 = vadd.f32 1.0, %v2908_v40 }
 0x564   : > { %2909 = vrcp.f32 %v1711_v48  ;;  %v1723_v63 = vand.u32 2147483648, %v1711_v48  ;;  %vm1717_vm8 = vweird.f32 %v1711_v48  ;;  %v1721_v31 = vand.u32 2147483647, %v1711_v48 }
 0x566   : > { %v1724_v13 = vor.u32 1.1754944e-38, %v1723_v63  ;;  %vm1722_vm10 = vcmp.eq.f32.partialorder %v1721_v31, 8.507059e+37 }
 0x56a   : > { %v2910_v57 = vpop.eup %2909 }
 0x56b   : > { %v1713_v50 = vmul.f32 %v2910_v57, %v1711_v48  ;;  %vm1718_vm7 = vweird.f32 %v2910_v57 }
 0x56c   : > { %vm1719_vm9 = vmor %vm1717_vm8, %vm1718_vm7 }
 0x56d   : > { %v1714_v21 = vsub.f32 1.0, %v1713_v50 }
 0x56f   : > { %v1715_v52 = vmul.f32 %v2910_v57, %v1714_v21 }
 0x571   : > { %v1716_v53 = vadd.f32 %v2910_v57, %v1715_v52 }
 0x573   : > { %v1720_v12 = vsel %vm1719_vm9, %v2910_v57, %v1716_v53  ;;  %v1504_v57 = vmul.f32 %v3539_v10, %v3522_v20 }
 0x574   : > { %v1725_v17 = vsel %vm1722_vm10, %v1724_v13, %v1720_v12 }
 0x575   : > { %v1728_v48 = vmul.f32 %v1725_v17, %v3529_v6 }
 0x59b   : > { %v1878_v1 = vpop.f32.mrf.mxu0 }
 0x59d   : > { %v1905_v9 = vpop.f32.mrf.mxu1 }
 0x59f   : > { %v1848_v7 = vpop.f32.mrf.mxu3 }
 0x5a7   : > { %v1807_v56 = vpop.f32.mrf.mxu2  ;;  %v1963_v5 = vpop.f32.mrf.mxu3 }
 0x5a8   : > { %v1849_v26 = vadd.f32 %v1848_v7, %v1807_v56 }
 0x5aa   : > { %v1879_v43 = vadd.f32 %v1878_v1, %v1849_v26 }
 0x5ac   : > { %v1906_v18 = vadd.f32 %v1905_v9, %v1879_v43 }
 0x5af   : > { %v1938_v11 = vpop.f32.mrf.mxu2 }
 0x5b0   : > { %v1939_v41 = vadd.f32 %v1938_v11, %v1906_v18  ;;  %v1755_v11 = vsub.f32 1.0, %v2783_v24 }
 0x5b2   : > { %v1964_v59 = vadd.f32 %v1963_v5, %v1939_v41  ;;  %v2014_v41 = vsub.f32 1.0, %v2787_v32 }
 0x5b4   : > { %v1966_v54 = vadd.f32 %v2785_v55, %v1964_v59 }
 0x5b6   : > { %2911 = vtanh.f32 %v1966_v54  ;;  %v2786_v33 = vmul.f32 -1.442695, %v1966_v54  ;;  %v1505_v54 = vmul.f32 %v3537_v8, %v3519_v51 }
 0x5b8   : > { %2913 = vpow2.f32 %v2786_v33 }
 0x5bc   : > { %v2912_v49 = vpop.eup %2911 }
 0x5bd   : > { %1989 = vrot.lane.b32.xlu2 %v2912_v49, %s3044_s20  ;;  %v3616_v49 = vadd.f32 %v1505_v54, %v1504_v57 }
 0x5be   : > { %v2914_v35 = vpop.eup %2913 }
 0x5bf   : > { %v1970_v37 = vadd.f32 1.0, %v2914_v35 }
 0x5c1   : > { %2915 = vrcp.f32 %v1970_v37  ;;  %v1982_v26 = vand.u32 2147483648, %v1970_v37  ;;  %vm1976_vm14 = vweird.f32 %v1970_v37  ;;  %v1980_v1 = vand.u32 2147483647, %v1970_v37 }
 0x5c3   : > { %v1983_v34 = vor.u32 1.1754944e-38, %v1982_v26  ;;  %vm1981_vm0 = vcmp.eq.f32.partialorder %v1980_v1, 8.507059e+37 }
 0x5c7   : > { %v2916_v60 = vpop.eup %2915 }
 0x5c8   : > { %v1972_v61 = vmul.f32 %v2916_v60, %v1970_v37  ;;  %vm1977_vm13 = vweird.f32 %v2916_v60 }
 0x5c9   : > { %vm1978_vm15 = vmor %vm1976_vm14, %vm1977_vm13 }
 0x5ca   : > { %v1973_v2 = vsub.f32 1.0, %v1972_v61 }
 0x5cc   : > { %v1974_v7 = vmul.f32 %v2916_v60, %v1973_v2 }
 0x5ce   : > { %v1975_v56 = vadd.f32 %v2916_v60, %v1974_v7 }
 0x5d0   : > { %v1979_v43 = vsel %vm1978_vm15, %v2916_v60, %v1975_v56 }
 0x5d1   : > { %v1984_v40 = vsel %vm1981_vm0, %v1983_v34, %v1979_v43 }
 0x5d2   : > { %v1731_v14 = vpop.permute.xlu1 %1730  ;;  %v1987_v50 = vmul.f32 %v1984_v40, %v3616_v49 }
 0x5d3   : > { %v1733_v22 = vmul.f32 %v1731_v14, %v1725_v17 }
 0x5d5   : > { %1735 = vrot.lane.b32.xlu0 %v1733_v22, %s3043_s23 }
 0x5dd   : > { %1751 = vperm.xlu0 %2865, %v2783_v24  }
 0x5e5   : > { %2010 = vperm.xlu0 %2865, %v2787_v32  }
 0x617   : > { %v1990_v9 = vpop.permute.xlu2 %1989 }
 0x618   : > { %v1992_v18 = vmul.f32 %v1990_v9, %v1984_v40 }
 0x61a   : > { %1994 = vrot.lane.b32.xlu1 %v1992_v18, %s3043_s23  ;;  %v2789_v18 = vld [vmem:[%s3174_s18 + $0x6] sm:$0x3]  ;;  %s2032_s18 = sadd.s32 3, %s3159_s21 }
 0x622   : > { %1758 = vperm.xlu1 %2866, %v1755_v11  }
 0x62a   : > { %2017 = vperm.xlu1 %2866, %v2014_v41  }
 0x647   : > { %v1736_v5 = vpop.permute.xlu0 %1735 }
 0x648   : > { %v1738_v55 = vadd.f32 %v1736_v5, %v1728_v48 }
 0x64a   : > { %2917 = vtanh.f32 %v1738_v55 }
 0x64f   : > { %v3622_v53 = vpop.permute.xlu0 %1751 }
 0x650   : > { %v2918_v59 = vpop.eup %2917  ;;  %v1763_v12 = vmul.f32 %v3622_v53, %v1738_v55 }
 0x651   : > { %1741 = vrot.lane.b32.xlu2 %v2918_v59, %s3044_s20 }
 0x68c   : > { %v1995_v21 = vpop.permute.xlu1 %1994 }
 0x68d   : > { %v3619_v52 = vadd.f32 %v1995_v21, %v1987_v50 }
 0x68f   : > { %2919 = vtanh.f32 %v3619_v52 }
 0x694   : > { %v1759_v63 = vpop.permute.xlu1 %1758 }
 0x695   : > { %v2920_v31 = vpop.eup %2919  ;;  %v1764_v51 = vmul.f32 %v1759_v63, %v3529_v6  ;;  %v1761_v14 = vmul.f32 %v1759_v63, %v3533_v4  ;;  %v3637_v6 = vpop.permute.xlu0 %2010 }
 0x696   : > { %2000 = vrot.lane.b32.xlu2 %v2920_v31, %s3044_s20 }
 0x697   : > { %v3627_v20 = vadd.f32 %v1764_v51, %v1763_v12 }
 0x69c   : > { %v3635_v24 = vpop.permute.xlu1 %2017 }
 0x69d   : > { %v2020_v33 = vmul.f32 %v3635_v24, %v3544_v16 }
 0x6ab   : > { %v1742_v8 = vpop.permute.xlu2 %1741 }
 0x6ac   : > { %v1744_v13 = vmul.f32 %v1742_v8, %v1725_v17 }
 0x6ae   : > { %v1754_v22 = vmul.f32 %v3622_v53, %v1744_v13 }
 0x6b0   : > { %v3631_v23 = vadd.f32 %v1761_v14, %v1754_v22  ;;  %v2292_v14 = vld [vmem:[%s3176_s10] sm:$0x3]  ;;  %s2291_s10 = ssub.s32 4, %s3159_s21 }
 0x6b2   : > { %2036 = vrot.lane.b32.xlu2 %v3631_v23, %s3043_s23 }
 0x6f0   : > { %v2001_v27 = vpop.permute.xlu2 %2000 }
 0x6f1   : > { %v2003_v32 = vmul.f32 %v2001_v27, %v1984_v40 }
 0x6f3   : > { %v2013_v17 = vmul.f32 %v3637_v6, %v2003_v32 }
 0x6f5   : > { %v3642_v35 = vadd.f32 %v2020_v33, %v2013_v17 }
 0x6f7   : > { %2294 = vrot.lane.b32.xlu0 %v3642_v35, %s3043_s23 }
 0x70c   : > { %v2037_v37 = vpop.permute.xlu2 %2036 }
 0x70d   : > { %v2038_v60 = vsel %vm460_vm1, %v2037_v37, 0 }
 0x70e   : > { %v2060_v61 = vand.u32 4294901760, %v2038_v60 }
 0x710   : > { %v2061_v2 = vsub.f32 %v2038_v60, %v2060_v61  ;;  %2106 = vmatmul.f32.vlgmr.msrb.gmra.mxu1 %v2060_v61 }
 0x711   : > { %2411 = vmatpush.msrb.mxu1 %v3230_v28 }
 0x712   : > { %v2062_v7 = vand.u32 4294901760, %v2061_v2  ;;  %2136 = vmatmul.f32.vlgmr.msrb.gmra.mxu2 %v2061_v2 }
 0x713   : > { %2413 = vmatpush.msrb.mxu1 %v3232_v29  ;;  %2440 = vmatpush.msrb.mxu2 %v3277_v44 }
 0x714   : > { %v2063_v56 = vsub.f32 %v2061_v2, %v2062_v7  ;;  %2163 = vmatmul.f32.vlgmr.msrb.gmra.mxu3 %v2062_v7 }
 0x715   : > { %2415 = vmatpush.msrb.mxu1 %v3234_v30  ;;  %2471 = vmatpush.msrb.mxu3 %v3230_v28 }
 0x716   : > { %v2064_v26 = vand.u32 4294901760, %v2063_v56  ;;  %2444 = vmatpush.msrb.mxu2 %v3280_v45 }
 0x717   : > { %2417 = vmatpush.msrb.mxu1 %v3310_v58  ;;  %2473 = vmatpush.msrb.mxu3 %v3232_v29 }
 0x718   : > { %2065 = vmatmul.f32.vlgmr.msrb.gmra.mxu0 %v2064_v26  ;;  %2221 = vmatmul.f32.vlgmr.msra.gmra.mxu1 %v2060_v61 }
 0x719   : > { %2382 = vmatpush.msrb.mxu0 %v3254_v36  ;;  %2475 = vmatpush.msrb.mxu3 %v3234_v30 }
 0x71a   : > { %2448 = vmatpush.msrb.mxu2 %v3283_v46 }
 0x71b   : > { %2385 = vmatpush.msrb.mxu0 %v3260_v38  ;;  %2477 = vmatpush.msrb.mxu3 %v3310_v58 }
 0x71c   : > { %2452 = vmatpush.msrb.mxu2 %v3331_v3 }
 0x71d   : > { %2388 = vmatpush.msrb.mxu0 %v3263_v39 }
 0x71f   : > { %2391 = vmatpush.msrb.mxu0 %v3322_v0 }
 0x720   : > { %2196 = vmatmul.f32.vlgmr.msra.gmra.mxu0 %v2060_v61 }
 0x769   : > { %v2295_v28 = vpop.permute.xlu0 %2294 }
 0x76a   : > { %v2296_v29 = vsel %vm460_vm1, %v2295_v28, 0 }
 0x76b   : > { %v2318_v44 = vand.u32 4294901760, %v2296_v29 }
 0x76d   : > { %v2319_v36 = vsub.f32 %v2296_v29, %v2318_v44  ;;  %2364 = vmatmul.f32.vlgmr.msra.gmra.mxu3 %v2318_v44 }
 0x76f   : > { %v2320_v30 = vand.u32 4294901760, %v2319_v36  ;;  %2394 = vmatmul.f32.vlgmr.msrb.gmra.mxu0 %v2319_v36 }
 0x771   : > { %v2321_v45 = vsub.f32 %v2319_v36, %v2320_v30  ;;  %2421 = vmatmul.f32.vlgmr.msrb.gmra.mxu1 %v2320_v30 }
 0x773   : > { %v2322_v38 = vand.u32 4294901760, %v2321_v45 }
 0x775   : > { %2323 = vmatmul.f32.vlgmr.msra.gmra.mxu2 %v2322_v38  ;;  %2479 = vmatmul.f32.vlgmr.msrb.gmra.mxu3 %v2318_v44 }
 0x77d   : > { %2454 = vmatmul.f32.vlgmr.msrb.gmra.mxu2 %v2318_v44 }
 0x78d   : > { %v2107_v46 = vpop.f32.mrf.mxu1 }
 0x795   : > { %v2066_v39 = vpop.f32.mrf.mxu0  ;;  %v2137_v0 = vpop.f32.mrf.mxu2 }
 0x796   : > { %v2108_v58 = vadd.f32 %v2107_v46, %v2066_v39  ;;  %v2222_v40 = vpop.f32.mrf.mxu1 }
 0x797   : > { %v2164_v1 = vpop.f32.mrf.mxu3 }
 0x798   : > { %v2138_v3 = vadd.f32 %v2137_v0, %v2108_v58 }
 0x79a   : > { %v2165_v43 = vadd.f32 %v2164_v1, %v2138_v3 }
 0x79d   : > { %v2197_v34 = vpop.f32.mrf.mxu0 }
 0x79e   : > { %v2198_v9 = vadd.f32 %v2197_v34, %v2165_v43 }
 0x7a0   : > { %v2223_v11 = vadd.f32 %v2222_v40, %v2198_v9  ;;  %v2263_v9 = vstv %s2032_s18  ;;  %v2521_v40 = vstv %s2291_s10 }
 0x7a2   : > { %v2225_v41 = vadd.f32 %v2789_v18, %v2223_v11 }
 0x7a4   : > { %2921 = vtanh.f32 %v2225_v41  ;;  %v2790_v5 = vmul.f32 -1.442695, %v2225_v41 }
 0x7a6   : > { %2923 = vpow2.f32 %v2790_v5 }
 0x7aa   : > { %v2922_v48 = vpop.eup %2921 }
 0x7ab   : > { %2248 = vrot.lane.b32.xlu1 %v2922_v48, %s3044_s20  ;;  %v2937_v48 = vld [vmem:[%s3782_s3] sm:$0x3] }
 0x7ac   : > { %v2924_v57 = vpop.eup %2923  ;;  %vm2264_vm9 = vcmp.lt.s32.totalorder %v2263_v9, %v2937_v48  ;;  %vm2522_vm10 = vcmp.lt.s32.totalorder %v2521_v40, %v2937_v48 }
 0x7ad   : > { %v2229_v63 = vadd.f32 1.0, %v2924_v57  ;;  %v2791_v5 = vsel %vm2264_vm9, 1.0, %v3046_v42  ;;  %v1507_v57 = vmul.f32 %v3544_v16, %v3539_v10  ;;  %v2023_v10 = vmul.f32 %v3635_v24, %v3616_v49 }
 0x7ae   : > { %v2022_v16 = vmul.f32 %v3637_v6, %v3619_v52  ;;  %v1248_v49 = vmul.f32 %v3533_v4, %v3525_v62 }
 0x7af   : > { %2925 = vrcp.f32 %v2229_v63  ;;  %v2241_v2 = vand.u32 2147483648, %v2229_v63  ;;  %vm2235_vm2 = vweird.f32 %v2229_v63  ;;  %v2239_v7 = vand.u32 2147483647, %v2229_v63 }
 0x7b1   : > { %v2242_v26 = vor.u32 1.1754944e-38, %v2241_v2  ;;  %vm2240_vm4 = vcmp.eq.f32.partialorder %v2239_v7, 8.507059e+37 }
 0x7b5   : > { %v2926_v32 = vpop.eup %2925 }
 0x7b6   : > { %v2231_v33 = vmul.f32 %v2926_v32, %v2229_v63  ;;  %vm2236_vm1 = vweird.f32 %v2926_v32 }
 0x7b7   : > { %vm2237_vm3 = vmor %vm2235_vm2, %vm2236_vm1 }
 0x7b8   : > { %v2232_v37 = vsub.f32 1.0, %v2231_v33  ;;  %v2025_v33 = vmul.f32 %v3642_v35, %v3637_v6 }
 0x7ba   : > { %v2233_v60 = vmul.f32 %v2926_v32, %v2232_v37 }
 0x7bc   : > { %v2234_v61 = vadd.f32 %v2926_v32, %v2233_v60 }
 0x7be   : > { %v2238_v56 = vsel %vm2237_vm3, %v2926_v32, %v2234_v61 }
 0x7bf   : > { %v3668_v29 = vsel %vm2240_vm4, %v2242_v26, %v2238_v56 }
 0x7ec   : > { %v2395_v50 = vpop.f32.mrf.mxu0 }
 0x7ee   : > { %v2422_v31 = vpop.f32.mrf.mxu1 }
 0x7f0   : > { %v2365_v55 = vpop.f32.mrf.mxu3 }
 0x7f8   : > { %v2324_v59 = vpop.f32.mrf.mxu2  ;;  %v2480_v13 = vpop.f32.mrf.mxu3 }
 0x7f9   : > { %v2366_v54 = vadd.f32 %v2365_v55, %v2324_v59  ;;  %v2794_v55 = vsel %vm2522_vm10, 1.0, %v3046_v42  ;;  %v2273_v42 = vsub.f32 1.0, %v2791_v5 }
 0x7fa   : > { %v2867_v59 = vpack.i.bf16 %v2794_v55, %v2791_v5 }
 0x7fb   : > { %v2396_v21 = vadd.f32 %v2395_v50, %v2366_v54  ;;  %v720_v54 = vmul.f32 %v3436_v19, %v3433_v15  ;;  %v2246_v50 = vmul.f32 %v3668_v29, %v3627_v20  ;;  %v989_v15 = vmul.f32 %v3443_v47, %v3440_v25 }
 0x7fc   : > { %v1766_v19 = vmul.f32 %v3631_v23, %v3622_v53 }
 0x7fd   : > { %v2423_v12 = vadd.f32 %v2422_v31, %v2396_v21 }
 0x800   : > { %v2455_v51 = vpop.f32.mrf.mxu2 }
 0x801   : > { %v2456_v8 = vadd.f32 %v2455_v51, %v2423_v12  ;;  %v2024_v12 = vadd.f32 %v2023_v10, %v2022_v16 }
 0x803   : > { %v2481_v22 = vadd.f32 %v2480_v13, %v2456_v8 }
 0x805   : > { %v2483_v27 = vadd.f32 %v2481_v22, %v2292_v14  ;;  %v2531_v22 = vsub.f32 1.0, %v2794_v55 }
 0x807   : > { %2927 = vtanh.f32 %v2483_v27  ;;  %v2793_v36 = vmul.f32 -1.442695, %v2483_v27 }
 0x809   : > { %2929 = vpow2.f32 %v2793_v36 }
 0x80d   : > { %v2928_v17 = vpop.eup %2927 }
 0x80e   : > { %2506 = vrot.lane.b32.xlu2 %v2928_v17, %s3044_s20 }
 0x80f   : > { %v2930_v30 = vpop.eup %2929 }
 0x810   : > { %v2487_v45 = vadd.f32 1.0, %v2930_v30 }
 0x812   : > { %2931 = vrcp.f32 %v2487_v45  ;;  %v2499_v3 = vand.u32 2147483648, %v2487_v45  ;;  %vm2493_vm6 = vweird.f32 %v2487_v45  ;;  %v2497_v1 = vand.u32 2147483647, %v2487_v45 }
 0x814   : > { %v2500_v34 = vor.u32 1.1754944e-38, %v2499_v3  ;;  %vm2498_vm8 = vcmp.eq.f32.partialorder %v2497_v1, 8.507059e+37 }
 0x818   : > { %v2932_v38 = vpop.eup %2931 }
 0x819   : > { %v2489_v46 = vmul.f32 %v2932_v38, %v2487_v45  ;;  %vm2494_vm5 = vweird.f32 %v2932_v38 }
 0x81a   : > { %vm2495_vm7 = vmor %vm2493_vm6, %vm2494_vm5 }
 0x81b   : > { %v2490_v39 = vsub.f32 1.0, %v2489_v46 }
 0x81d   : > { %v2249_v28 = vpop.permute.xlu1 %2248  ;;  %v2491_v58 = vmul.f32 %v2932_v38, %v2490_v39 }
 0x81e   : > { %v2251_v44 = vmul.f32 %v2249_v28, %v3668_v29 }
 0x81f   : > { %v2492_v0 = vadd.f32 %v2932_v38, %v2491_v58 }
 0x820   : > { %2253 = vrot.lane.b32.xlu0 %v2251_v44, %s3043_s23 }
 0x821   : > { %v2496_v43 = vsel %vm2495_vm7, %v2932_v38, %v2492_v0 }
 0x822   : > { %v3674_v11 = vsel %vm2498_vm8, %v2500_v34, %v2496_v43 }
 0x823   : > { %v2504_v51 = vmul.f32 %v3674_v11, %v2024_v12 }
 0x868   : > { %v2507_v18 = vpop.permute.xlu2 %2506 }
 0x869   : > { %v2509_v41 = vmul.f32 %v2507_v18, %v3674_v11 }
 0x86b   : > { %2511 = vrot.lane.b32.xlu1 %v2509_v41, %s3043_s23 }
 0x873   : > { %2868 = vperm.xlu1 %2866, %v2867_v59  }
 0x87b   : > { %722 = vrot.lane.b32.xlu1 %v720_v54, %s3043_s23 }
 0x883   : > { %1509 = vrot.lane.b32.xlu1 %v1507_v57, %s3043_s23 }
 0x892   : > { %v2254_v21 = vpop.permute.xlu0 %2253 }
 0x893   : > { %v2256_v63 = vadd.f32 %v2254_v21, %v2246_v50 }
 0x895   : > { %2933 = vtanh.f32 %v2256_v63 }
 0x89b   : > { %v2934_v31 = vpop.eup %2933 }
 0x89c   : > { %2259 = vrot.lane.b32.xlu2 %v2934_v31, %s3044_s20 }
 0x8a4   : > { %2276 = vperm.xlu2 %2872, %v2273_v42  }
 0x8ac   : > { %991 = vrot.lane.b32.xlu2 %v989_v15, %s3043_s23 }
 0x8b4   : > { %1768 = vrot.lane.b32.xlu2 %v1766_v19, %s3043_s23 }
 0x8dd   : > { %v2512_v8 = vpop.permute.xlu1 %2511 }
 0x8de   : > { %v2514_v13 = vadd.f32 %v2512_v8, %v2504_v51 }
 0x8e0   : > { %2935 = vtanh.f32 %v2514_v13 }
 0x8e5   : > { %v2869_v25 = vpop.permute.xlu1 %2868 }
 0x8e6   : > { %v2936_v47 = vpop.eup %2935  ;;  %v2871_v14 = vunpack.i.h.bf16 %v2869_v25  ;;  %v2870_v32 = vunpack.i.l.bf16 %v2869_v25 }
 0x8e7   : > { %2517 = vrot.lane.b32.xlu0 %v2936_v47, %s3044_s20 }
 0x8e8   : > { %v2539_v53 = vmul.f32 %v2871_v14, %v2514_v13  ;;  %v2281_v6 = vmul.f32 %v2870_v32, %v2256_v63 }
 0x8ed   : > { %v723_v27 = vpop.permute.xlu1 %722 }
 0x8ee   : > { %726 = vst.msk [vmem:[%s3167_s13] sm:$0x3] %vm725_vm11, %v723_v27 }
 0x8ef   : > { %2534 = vperm.xlu0 %2865, %v2531_v22  }
 0x8f5   : > { %v1510_v4 = vpop.permute.xlu1 %1509 }
 0x8f6   : > { %v2260_v52 = vpop.permute.xlu2 %2259  ;;  %2780 = vst.msk [vmem:[%s3172_s17 + $0x4] sm:$0x3] %vm725_vm11, %v1510_v4 }
 0x8f7   : > { %1250 = vrot.lane.b32.xlu0 %v1248_v49, %s3043_s23  ;;  %v2262_v24 = vmul.f32 %v2260_v52, %v3668_v29 }
 0x8f9   : > { %v2272_v37 = vmul.f32 %v2870_v32, %v2262_v24 }
 0x8fe   : > { %v2277_v17 = vpop.permute.xlu2 %2276 }
 0x8ff   : > { %2027 = vrot.lane.b32.xlu0 %v2025_v33, %s3043_s23  ;;  %v2279_v60 = vmul.f32 %v2277_v17, %v3631_v23  ;;  %v2282_v7 = vmul.f32 %v2277_v17, %v3627_v20 }
 0x901   : > { %v2280_v61 = vadd.f32 %v2279_v60, %v2272_v37  ;;  %v2283_v56 = vadd.f32 %v2282_v7, %v2281_v6 }
 0x903   : > { %v2284_v2 = vmul.f32 %v2870_v32, %v2280_v61 }
 0x905   : > { %2286 = vrot.lane.b32.xlu1 %v2284_v2, %s3043_s23 }
 0x906   : > { %v992_v62 = vpop.permute.xlu2 %991 }
 0x907   : > { %2549 = vrot.lane.b32.xlu0 %v2280_v61, %s3043_s23  ;;  %2772 = vst.msk [vmem:[%s3172_s17 + $0x6] sm:$0x3] %vm725_vm11, %v992_v62 }
 0x90d   : > { %2554 = vrot.lane.b32.xlu1 %v2283_v56, %s3047_s26 }
 0x90e   : > { %v1769_v46 = vpop.permute.xlu2 %1768 }
 0x90f   : > { %2784 = vst.msk [vmem:[%s3167_s13 + $0x4] sm:$0x3] %vm725_vm11, %v1769_v46 }
 0x959   : > { %v2518_v23 = vpop.permute.xlu0 %2517 }
 0x95a   : > { %v2520_v26 = vmul.f32 %v2518_v23, %v3674_v11 }
 0x95c   : > { %v2530_v29 = vmul.f32 %v2871_v14, %v2520_v26 }
 0x961   : > { %v2535_v28 = vpop.permute.xlu0 %2534 }
 0x962   : > { %v2537_v20 = vmul.f32 %v2535_v28, %v3642_v35  ;;  %v2540_v44 = vmul.f32 %v2535_v28, %v2024_v12 }
 0x964   : > { %v2538_v36 = vadd.f32 %v2537_v20, %v2530_v29  ;;  %v2541_v30 = vadd.f32 %v2540_v44, %v2539_v53 }
 0x966   : > { %2564 = vrot.lane.b32.xlu0 %v2541_v30, %s3047_s26  ;;  %v2542_v45 = vmul.f32 %v2871_v14, %v2538_v36 }
 0x968   : > { %2544 = vrot.lane.b32.xlu2 %v2542_v45, %s3043_s23 }
 0x969   : > { %v1251_v38 = vpop.permute.xlu0 %1250 }
 0x96a   : > { %2776 = vst.msk [vmem:[%s3167_s13 + $0x2] sm:$0x3] %vm725_vm11, %v1251_v38 }
 0x970   : > { %2559 = vrot.lane.b32.xlu2 %v2538_v36, %s3043_s23 }
 0x971   : > { %v2028_v39 = vpop.permute.xlu0 %2027 }
 0x972   : > { %2788 = vst.msk [vmem:[%s3172_s17 + $0x2] sm:$0x3] %vm725_vm11, %v2028_v39 }
 0x977   : > { %v2287_v35 = vpop.permute.xlu1 %2286 }
 0x978   : > { %2792 = vst.msk [vmem:[%s3167_s13 + $0x6] sm:$0x3] %vm725_vm11, %v2287_v35 }
 0x979   : > { %v2550_v58 = vpop.permute.xlu0 %2549 }
 0x97a   : > { %2552 = vst.msk [vmem:[#allocation2] sm:$0x3] %vm725_vm11, %v2550_v58 }
 0x97f   : > { %v2555_v0 = vpop.permute.xlu1 %2554 }
 0x980   : > { %2557 = vst.msk [vmem:[#allocation3] sm:$0x3] %vm725_vm11, %v2555_v0 }
 0x9c2   : > { %v2545_v3 = vpop.permute.xlu2 %2544 }
 0x9c3   : > { %2547 = vst.msk [vmem:[%s3172_s17] sm:$0x3] %vm725_vm11, %v2545_v3 }
 0x9ca   : > { %v2560_v1 = vpop.permute.xlu2 %2559 }
 0x9cb   : > { %2562 = vst.msk [vmem:[#allocation4] sm:$0x3] %vm725_vm11, %v2560_v1 }
 0x9d5   : > { %2571 = sbr.rel (%p2795_p0) target bundleno = 2524 (0x9dc), region = 126 }
 0x9d8   : > { %v2565_v43 = vpop.permute.xlu0 %2564 }
 0x9d9   : > { %2567 = vst.msk [vmem:[#allocation5] sm:$0x3] %vm725_vm11, %v2565_v43 }
 0x9da   : > { %2572 = vst.msk [vmem:[#allocation8] sm:$0x3] %vm725_vm11, %v2550_v58 }
 0x9db   : > { %2573 = vst.msk [vmem:[#allocation10] sm:$0x3] %vm725_vm11, %v2560_v1 }
 0x9dc PF: > { %p2813_p1 = scmp.eq.s32.totalorder %s3116_s29, 1  ;;  %s3048_s21 = smov [#allocation8]  }
 0x9dd   : > { %s2600_s13 = sshll.u32 %s3048_s21, 4  ;;  %s2602_s20 = sshll.u32 %s3785_s6, 4  ;;  %s2601_s13 = int_to_ptr.vmem [resolvable:$true] %s2600_s13  ;;  %s2603_s20 = int_to_ptr.hbm [resolvable:$true] %s2602_s20 }
 0x9de   : > { %2806 = dma.vmem_to_hbm [thread:$0]  (%p2813_p1), %s2601_s13, 32, %s2603_s20, [#allocation9]  }
 0x9df   : > { %s2614_s12 = sshll.u32 %s3786_s7, 4  ;;  %s3049_s26 = smov [#allocation10]   ;;  %s2615_s12 = int_to_ptr.hbm [resolvable:$true] %s2614_s12 }
 0x9e0   : > { %s2612_s24 = sshll.u32 %s3049_s26, 4  ;;  %s2613_s24 = int_to_ptr.vmem [resolvable:$true] %s2612_s24 }
 0x9e1   : > { %2808 = dma.vmem_to_hbm [thread:$0]  (%p2813_p1), %s2613_s24, 32, %s2615_s12, [#allocation11]  }
 0x9e2   : > { %3015 = dma.done.wait (%p2813_p1), [#allocation9], 32  }
 0x9e3   : > { %3017 = vsyncadd (%p2813_p1), [#allocation9], 4294967264 }
 0x9e4   : > { %3019 = dma.done.wait (%p2813_p1), [#allocation11], 32  }
 0x9e5   : > { %3021 = vsyncadd (%p2813_p1), [#allocation11], 4294967264 }
 0x9e6 PF: > { %p17_p2 = scmp.ge.s32.totalorder %s3119_s30, 4   ;;  %s3788_s24 = smov %s3028_s25 }
 0x9e7   : > { %s3789_s25 = smov %s3136_s15  ;;  %s3790_s26 = smov %s3036_s27 }
 0x9e8   : > { %s3791_s27 = smov %s3129_s11  ;;  %s3792_s28 = smov %s3119_s30 }
 0x9e9   :  { %19 = sbr.rel (!%p17_p2) target bundleno = 4 (0x4), region = 210 }
 0x9ee   :  { %2650 = vsyncpa [#allocation9], 1 }
 0x9ef   :  { %2652 = vsyncpa [#allocation9 + $0x1], 1 }
 0x9f0   :  { %2653 = vsyncpa [#allocation11], 1 }

// kernel: lstm_forward.3
= control target key start
LH: loop header
LB: loop body
LE: loop exit
PB: predicated region body
PF: predicated region fallthrough
CT: control target
= control target key end

     0   :  { %s3891_s0 = inlined_call_operand.vmem [shape: f32[8,2,256], index: 0, kind: input, shape index: {}, may-alias: {0,1}]   ;;  %s3892_s1 = inlined_call_operand.vmem [shape: f32[8,2,256], index: 1, kind: input, shape index: {}, may-alias: {0,1}]   ;;  %s3893_s2 = inlined_call_operand.vmem [shape: f32[32,256], index: 2, kind: input, shape index: {}]   ;;  %s3894_s3 = inlined_call_operand.vmem [shape: s32[2,1], index: 3, kind: input, shape index: {}]   ;;  %s3895_s4 = inlined_call_operand.hbm [shape: f32[8,2,32], index: 4, kind: output, shape index: {0}]   ;;  %s3896_s5 = inlined_call_operand.hbm [shape: f32[8,2,32], index: 5, kind: output, shape index: {1}]   ;;  %s3897_s6 = inlined_call_operand.vmem [shape: f32[2,32], index: 6, kind: output, shape index: {2}]   ;;  %s3898_s7 = inlined_call_operand.vmem [shape: f32[2,32], index: 7, kind: output, shape index: {3}]  }
   0x1   :  { %3905 = sst [smem:[#allocation16_spill]] %s3891_s0 }
   0x2   :  { %3906 = sst [smem:[#allocation17_spill]] %s3892_s1 }
   0x3   :  { %3907 = sst [smem:[#allocation18_spill]] %s3893_s2 }
   0x4   :  { %3908 = sst [smem:[#allocation19_spill]] %s3894_s3 }
   0x5   :  { %3909 = sst [smem:[#allocation20_spill]] %s3897_s6 }
   0x6   :  { %3910 = sst [smem:[#allocation21_spill]] %s3898_s7 }
   0x7   :  { %13 = vsyncpa [#allocation9], 0 }
   0x8   :  { %15 = vsyncpa [#allocation9 + $0x1], 0 }
   0x9   :  { %16 = vsyncpa [#allocation11], 0 }
   0xa   :  { %18 = vsyncpa [#allocation11 + $0x1], 0  ;;  %s3116_s24 = smov 0   ;;  %s3118_s25 = smov 0  }
   0xb   :  { %s3120_s26 = smov 0   ;;  %s3122_s27 = smov 0  }
   0xc   :  { %s3124_s28 = smov 0   ;;  %s3126_s29 = smov 0  }
   0xd   :  { %s3128_s30 = smov 0  }
   0xe LB: > { %3911 = sst [smem:[#allocation14_spill]] %s3063_s29  ;;  %s3152_s8 = sadd.s32 4294967295, %s3067_s30   ;;  %s3067_s30 = sphi %s3128_s30, %s3936_s30   ;;  %s3063_s29 = sphi %s3126_s29, %s3930_s29   ;;  %s3059_s28 = sphi %s3124_s28, %s3935_s28   ;;  %s3055_s27 = sphi %s3122_s27, %s3934_s27   ;;  %s3051_s26 = sphi %s3120_s26, %s3933_s26   ;;  %s3047_s25 = sphi %s3118_s25, %s3932_s25   ;;  %s3043_s24 = sphi %s3116_s24, %s3931_s24  }
   0xf   : > { %s2738_s9 = sadd.s32 4294967294, %s3067_s30   ;;  %s3156_s10 = sadd.s32 1, %s3067_s30  }
  0x10   : > { %s31_s11 = sadd.s32 1, %s3063_s29  ;;  %s28_s12 = ssub.s32 %s3067_s30, %s3156_s10 }
  0x11   : > { %p38_p0 = scmp.ne.s32.totalorder %s3063_s29, %s3059_s28  ;;  %p29_p1 = scmp.eq.s32.totalorder %s28_s12, 0 }
  0x12   : > { %p39_p2 = scmp.eq.s32.totalorder %s3067_s30, 0  ;;  %s3899_s13 = ssub.s32 1, %s3067_s30 }
  0x13   : > { %s55_s14 = ssub.s32 1, %s3156_s10  ;;  %s59_s18 = sadd.s32 1, %s3055_s27 }
  0x14   : > { %s3167_s15 = scalar_select %p29_p1, %s3063_s29, %s31_s11  }
  0x15   : > { %p3172_p3 = por %p39_p2, %p38_p0  ;;  %s56_s17 = ssub.s32 %s3899_s13, %s55_s14 }
  0x16   : > { %3912 = sst [smem:[#allocation15_spill]] %s3167_s15  ;;  %p57_p4 = scmp.eq.s32.totalorder %s56_s17, 0 }
  0x17   : > { %p66_p5 = scmp.ne.s32.totalorder %s3055_s27, %s3051_s26  ;;  %p138_p6 = scmp.eq.s32.totalorder %s3152_s8, 1 }
  0x18   : > { %s3183_s19 = scalar_select %p57_p4, %s3055_s27, %s59_s18  }
  0x19   : > { %p3185_p7 = por %p66_p5, %p39_p2  ;;  %p3192_p8 = por %p138_p6, %p38_p0 }
  0x1a   : > { %p143_p9 = scmp.ne.s32.totalorder %s3059_s28, %s3047_s25  ;;  %p144_p10 = scmp.eq.s32.totalorder %s2738_s9, 1 }
  0x1b   : > { %p3198_p11 = por %p138_p6, %p66_p5  ;;  %p171_p12 = scmp.ne.s32.totalorder %s3051_s26, %s3043_s24 }
  0x1c   : > { %p3204_p13 = por %p144_p10, %p143_p9  ;;  %p2740_p0 = scmp.ge.s32.totalorder %s3067_s30, 2 }
  0x1d   : > { %p3208_p1 = por %p171_p12, %p144_p10 }
  0x1e   : > { %236 = sbr.rel (%p2740_p0) target bundleno = 63 (0x3f), region = 24 }
  0x23   : > { %239 = sbr.rel (!%p3172_p3) target bundleno = 49 (0x31), region = 28  ;;  %s241_s9 = sand.u32 (%p3172_p3), 1, %s3063_s29  }
  0x24   : > { %s2797_s12 = sshll.u32 (%p3172_p3), %s3067_s30, 4  ;;  %s2741_s14 = sshll.u32 (%p3172_p3), %s241_s9, 3 }
  0x25   : > { %s3919_s0 = sld [smem:[#allocation16_spill]] (%p3172_p3)  ;;  %s243_s15 = scalar_lea.vmem (%p3172_p3), [#allocation6], %s2741_s14 }
  0x2b   : > { %s247_s13 = scalar_lea.vmem %s3919_s0, %s2797_s12 }
  0x2c   : > { %v264_v0 = vld [vmem:[%s247_s13] sm:$0x3]  ;;  %v266_v1 = vld [vmem:[%s247_s13 + $0x4] sm:$0x3]  ;;  %v268_v2 = vld [vmem:[%s247_s13 + $0x8] sm:$0x3] }
  0x2d   : > { %265 = vst [vmem:[%s243_s15] sm:$0x3] %v264_v0  ;;  %v270_v3 = vld [vmem:[%s247_s13 + $0xc] sm:$0x3] }
  0x2e   : > { %267 = vst [vmem:[%s243_s15 + $0x2] sm:$0x3] %v266_v1 }
  0x2f   : > { %269 = vst [vmem:[%s243_s15 + $0x4] sm:$0x3] %v268_v2 }
  0x30   : > { %271 = vst [vmem:[%s243_s15 + $0x6] sm:$0x3] %v270_v3 }
  0x31 PF: > { %303 = sbr.rel (!%p3185_p7) target bundleno = 63 (0x3f), region = 69  ;;  %s305_s16 = sand.u32 (%p3185_p7), 1, %s3055_s27  }
  0x32   : > { %s3920_s9 = ssub.s32 (%p3185_p7), 1, %s3067_s30  ;;  %s2745_s17 = sshll.u32 (%p3185_p7), %s305_s16, 3 }
  0x33   : > { %s2798_s29 = sshll.u32 (%p3185_p7), %s3920_s9, 4  ;;  %s3921_s1 = sld [smem:[#allocation17_spill]] (%p3185_p7) }
  0x34   : > { %s307_s13 = scalar_lea.vmem (%p3185_p7), [#allocation7], %s2745_s17 }
  0x39   : > { %s2662_s14 = scalar_lea.vmem %s3921_s1, %s2798_s29 }
  0x3a   : > { %v2748_v4 = vld [vmem:[%s2662_s14 + $0x2] sm:$0x3]  ;;  %v2749_v5 = vld [vmem:[%s2662_s14 + $0x6] sm:$0x3]  ;;  %v2750_v6 = vld [vmem:[%s2662_s14 + $0xa] sm:$0x3] }
  0x3b   : > { %331 = vst [vmem:[%s307_s13] sm:$0x3] %v2748_v4  ;;  %v2751_v7 = vld [vmem:[%s2662_s14 + $0xe] sm:$0x3] }
  0x3c   : > { %333 = vst [vmem:[%s307_s13 + $0x2] sm:$0x3] %v2749_v5 }
  0x3d   : > { %335 = vst [vmem:[%s307_s13 + $0x4] sm:$0x3] %v2750_v6 }
  0x3e   : > { %337 = vst [vmem:[%s307_s13 + $0x6] sm:$0x3] %v2751_v7 }
  0x3f PF: > { %p2752_p2 = scmp.ge.s32.totalorder %s3067_s30, 1  ;;  %p368_p3 = scmp.lt.s32.totalorder %s3067_s30, 3 }
  0x41   : > { %p369_p4 = pnand %p2752_p2, %p368_p3 }
  0x42   : > { %s3902_s29 = sand.u32 (!%p369_p4), 1, %s3059_s28   ;;  %s3901_s15 = sand.u32 (!%p369_p4), 1, %s3051_s26  }
  0x43   : > { %372 = sbr.rel (%p369_p4) target bundleno = 2586 (0xa1a), region = 110  ;;  %s2753_s20 = sshll.u32 (!%p369_p4), %s3902_s29, 3 }
  0x44   : > { %s2754_s16 = sshll.u32 (!%p369_p4), %s3901_s15, 3  ;;  %s3238_s9 = scalar_lea.vmem (!%p369_p4), [#allocation6], %s2753_s20 }
  0x45   : > { %s3240_s17 = scalar_lea.vmem (!%p369_p4), [#allocation7], %s2754_s16  ;;  %s3242_s12 = scalar_lea.vmem (!%p369_p4), [#allocation8], %s2753_s20 }
  0x46   : > { %s3244_s18 = scalar_lea.vmem (!%p369_p4), [#allocation10], %s2754_s16  ;;  %p2757_p5 = scmp.ne.s32.totalorder (!%p369_p4), %s3152_s8, 0 }
  0x48   : > { %431 = sbr.rel (%p2757_p5) target bundleno = 82 (0x52), region = 122 }
  0x4d   : > { %vm432_vm0 = vcmask 254976   ;;  %v3069_v8 = vmov 0.0  }
  0x4e   : > { %433 = vst.msk [vmem:[#allocation2] sm:$0x3] %vm432_vm0, %v3069_v8 }
  0x4f   : > { %434 = vst.msk [vmem:[#allocation3] sm:$0x3] %vm432_vm0, %v3069_v8 }
  0x50   : > { %435 = vst.msk [vmem:[#allocation4] sm:$0x3] %vm432_vm0, %v3069_v8 }
  0x51   : > { %436 = vst.msk [vmem:[#allocation5] sm:$0x3] %vm432_vm0, %v3069_v8 }
  0x52 PF: > { %s3922_s2 = sld [smem:[#allocation18_spill]]  ;;  %vm452_vm1 = vcmask 261120   ;;  %s3903_s0 = smov 32  }
  0x53   : > { %s3071_s15 = smov 64   ;;  %s3474_s14 = sshll.u32 %s3152_s8, 2 }
  0x54   : > { %s3923_s3 = sld [smem:[#allocation19_spill]]  ;;  %s719_s16 = ssub.s32 7, %s3474_s14 }
  0x55   : > { %v3265_v16 = vld [vmem:[#allocation2] sm:$0x3]  ;;  %s3074_s1 = smov 96   ;;  %s988_s29 = sadd.s32 1, %s3474_s14 }
  0x56   : > { %v454_v18 = vsel %vm452_vm1, %v3265_v16, 0  ;;  %v3293_v26 = vld [vmem:[#allocation3] sm:$0x3]  ;;  %s1247_s13 = ssub.s32 6, %s3474_s14  ;;  %s1506_s20 = sadd.s32 2, %s3474_s14 }
  0x57   : > { %v3291_v25 = vand.u32 4294901760, %v454_v18  ;;  %663 = vrot.lane.b32.xlu1 %v3293_v26, %s3903_s0  ;;  %v3356_v48 = vld [vmem:[#allocation4] sm:$0x3]  ;;  %p2787_p6 = scmp.ne.s32.totalorder %s3152_s8, 1 }
  0x58   : > { %v441_v9 = vld [vmem:[%s3922_s2 + $0x30] sm:$0xff]  ;;  %v440_v10 = vld [vmem:[%s3922_s2 + $0x20] sm:$0xff]  ;;  %v445_v19 = vld [vmem:[%s3922_s2 + $0x38] sm:$0xff]  ;;  %v723_v59 = vsel %vm452_vm1, %v3356_v48, 0  ;;  %s3924_s6 = sld [smem:[#allocation20_spill]] (!%p2787_p6) }
  0x59   : > { %v439_v11 = vld [vmem:[%s3922_s2 + $0x10] sm:$0xff]  ;;  %v3256_v12 = vand.u32 4294901760, %v441_v9  ;;  %v3258_v13 = vand.u32 4294901760, %v440_v10  ;;  %v438_v15 = vld [vmem:[%s3922_s2] sm:$0xff]  ;;  %v444_v20 = vld [vmem:[%s3922_s2 + $0x28] sm:$0xff]  ;;  %v3298_v28 = vand.u32 4294901760, %v445_v19  ;;  %v477_v34 = vsub.f32 %v454_v18, %v3291_v25 }
  0x5a   : > { %v3260_v14 = vand.u32 4294901760, %v439_v11  ;;  %v3267_v17 = vand.u32 4294901760, %v438_v15  ;;  %v443_v21 = vld [vmem:[%s3922_s2 + $0x18] sm:$0xff]  ;;  %v3300_v29 = vand.u32 4294901760, %v444_v20  ;;  %v3306_v31 = vld [vmem:[#allocation5] sm:$0x3] }
  0x5b   : > { %469 = vmatpush.msra.mxu0 %v3256_v12  ;;  %v3282_v22 = vsub.f32 %v441_v9, %v3256_v12  ;;  %569 = vmatpush.msra.mxu3 %v3256_v12  ;;  %v3286_v23 = vsub.f32 %v440_v10, %v3258_v13  ;;  %v3302_v30 = vand.u32 4294901760, %v443_v21  ;;  %v3322_v36 = vsub.f32 %v445_v19, %v3298_v28  ;;  %v442_v47 = vld [vmem:[%s3922_s2 + $0x8] sm:$0xff]  ;;  %s3925_s7 = sld [smem:[#allocation21_spill]] (!%p2787_p6) }
  0x5c   : > { %v3289_v24 = vsub.f32 %v439_v11, %v3260_v14  ;;  %v3296_v27 = vsub.f32 %v438_v15, %v3267_v17  ;;  %v3328_v38 = vsub.f32 %v444_v20, %v3300_v29  ;;  %932 = vrot.lane.b32.xlu2 %v3306_v31, %s3903_s0  ;;  %v478_v42 = vand.u32 4294901760, %v477_v34 }
  0x5d   : > { %540 = vmatpush.msra.mxu2 %v3282_v22  ;;  %471 = vmatpush.msra.mxu0 %v3258_v13  ;;  %v3311_v32 = vand.u32 4294901760, %v3282_v22  ;;  %v3314_v33 = vand.u32 4294901760, %v3286_v23  ;;  %v3331_v39 = vsub.f32 %v443_v21, %v3302_v30  ;;  %v3345_v44 = vand.u32 4294901760, %v3322_v36 }
  0x5e   : > { %v3318_v35 = vand.u32 4294901760, %v3289_v24  ;;  %571 = vmatpush.msra.mxu3 %v3258_v13  ;;  %v3325_v37 = vand.u32 4294901760, %v3296_v27  ;;  %v3348_v45 = vand.u32 4294901760, %v3328_v38  ;;  %v479_v51 = vsub.f32 %v477_v34, %v478_v42 }
  0x5f   : > { %543 = vmatpush.msra.mxu2 %v3286_v23  ;;  %473 = vmatpush.msra.mxu0 %v3260_v14  ;;  %v500_v40 = vsub.f32 %v3282_v22, %v3311_v32  ;;  %v506_v41 = vsub.f32 %v3286_v23, %v3314_v33  ;;  %v3351_v46 = vand.u32 4294901760, %v3331_v39  ;;  %v769_v54 = vsub.f32 %v3322_v36, %v3345_v44 }
  0x60   : > { %v512_v43 = vsub.f32 %v3289_v24, %v3318_v35  ;;  %573 = vmatpush.msra.mxu3 %v3260_v14  ;;  %v518_v52 = vsub.f32 %v3296_v27, %v3325_v37  ;;  %v775_v55 = vsub.f32 %v3328_v38, %v3348_v45  ;;  %v480_v56 = vand.u32 4294901760, %v479_v51 }
  0x61   : > { %v3358_v49 = vand.u32 4294901760, %v500_v40  ;;  %546 = vmatpush.msra.mxu2 %v3289_v24  ;;  %475 = vmatpush.msra.mxu0 %v3267_v17  ;;  %v3362_v50 = vand.u32 4294901760, %v506_v41  ;;  %v781_v57 = vsub.f32 %v3331_v39, %v3351_v46  ;;  %v3378_v58 = vand.u32 4294901760, %v442_v47 }
  0x62   : > { %575 = vmatpush.msra.mxu3 %v3267_v17  ;;  %v3367_v53 = vand.u32 4294901760, %v512_v43  ;;  %v3382_v60 = vand.u32 4294901760, %v769_v54  ;;  %v3384_v61 = vand.u32 4294901760, %v775_v55  ;;  %v745_v62 = vand.u32 4294901760, %v723_v59  ;;  %481 = vmatmul.f32.vlgmr.msra.gmra.mxu0 %v480_v56 }
  0x63   : > { %598 = vmatpush.msrb.mxu0 %v3311_v32  ;;  %502 = vmatpush.msra.mxu1 %v3358_v49  ;;  %v3387_v63 = vand.u32 4294901760, %v518_v52  ;;  %v3390_v0 = vsub.f32 %v442_v47, %v3378_v58  ;;  %v3396_v2 = vand.u32 4294901760, %v781_v57 }
  0x64   : > { %549 = vmatpush.msra.mxu2 %v3296_v27  ;;  %579 = vmatmul.f32.vlgmr.msra.gmra.mxu3 %v478_v42  ;;  %v746_v1 = vsub.f32 %v723_v59, %v745_v62 }
  0x65   : > { %552 = vmatmul.f32.vlgmr.msra.gmra.mxu2 %v477_v34  ;;  %508 = vmatpush.msra.mxu1 %v3362_v50  ;;  %v3399_v3 = vand.u32 4294901760, %v3390_v0  ;;  %v451_v34 = vld [vmem:[%s3238_s9] sm:$0x3] }
  0x66   : > { %738 = vmatpush.msrb.mxu2 %v3298_v28  ;;  %771 = vmatpush.msrb.mxu3 %v3382_v60  ;;  %v747_v4 = vand.u32 4294901760, %v746_v1 }
  0x67   : > { %514 = vmatpush.msra.mxu1 %v3367_v53  ;;  %602 = vmatpush.msrb.mxu0 %v3314_v33  ;;  %v787_v5 = vsub.f32 %v3390_v0, %v3399_v3 }
  0x68   : > { %740 = vmatpush.msrb.mxu2 %v3300_v29  ;;  %777 = vmatpush.msrb.mxu3 %v3384_v61  ;;  %v748_v6 = vsub.f32 %v746_v1, %v747_v4 }
  0x69   : > { %520 = vmatpush.msra.mxu1 %v3387_v63  ;;  %606 = vmatpush.msrb.mxu0 %v3318_v35  ;;  %v3411_v7 = vand.u32 4294901760, %v787_v5 }
  0x6a   : > { %522 = vmatmul.f32.vlgmr.msra.gmra.mxu1 %v3291_v25  ;;  %742 = vmatpush.msrb.mxu2 %v3302_v30  ;;  %v749_v8 = vand.u32 4294901760, %v748_v6 }
  0x6b   : > { %629 = vmatpush.msrb.mxu1 %v3256_v12  ;;  %783 = vmatpush.msrb.mxu3 %v3396_v2 }
  0x6c   : > { %744 = vmatpush.msrb.mxu2 %v3378_v58  ;;  %610 = vmatpush.msrb.mxu0 %v3325_v37 }
  0x6d   : > { %631 = vmatpush.msrb.mxu1 %v3258_v13  ;;  %789 = vmatpush.msrb.mxu3 %v3411_v7 }
  0x6e   : > { %612 = vmatmul.f32.vlgmr.msrb.gmra.mxu0 %v3291_v25  ;;  %750 = vmatmul.f32.vlgmr.msrb.gmra.mxu2 %v749_v8 }
  0x6f   : > { %633 = vmatpush.msrb.mxu1 %v3260_v14  ;;  %791 = vmatmul.f32.vlgmr.msrb.gmra.mxu3 %v745_v62 }
  0x70   : > { %867 = vmatpush.msra.mxu2 %v3345_v44  ;;  %809 = vmatpush.msra.mxu0 %v3322_v36 }
  0x71   : > { %635 = vmatpush.msrb.mxu1 %v3267_v17  ;;  %898 = vmatpush.msra.mxu3 %v3298_v28 }
  0x72   : > { %871 = vmatpush.msra.mxu2 %v3348_v45  ;;  %812 = vmatpush.msra.mxu0 %v3328_v38 }
  0x73   : > { %637 = vmatmul.f32.vlgmr.msrb.gmra.mxu1 %v3291_v25  ;;  %900 = vmatpush.msra.mxu3 %v3300_v29 }
  0x74   : > { %838 = vmatpush.msra.mxu1 %v3298_v28  ;;  %875 = vmatpush.msra.mxu2 %v3351_v46 }
  0x75   : > { %815 = vmatpush.msra.mxu0 %v3331_v39  ;;  %902 = vmatpush.msra.mxu3 %v3302_v30 }
  0x76   : > { %840 = vmatpush.msra.mxu1 %v3300_v29  ;;  %879 = vmatpush.msra.mxu2 %v3399_v3 }
  0x77   : > { %818 = vmatpush.msra.mxu0 %v3390_v0  ;;  %881 = vmatmul.f32.vlgmr.msra.gmra.mxu2 %v745_v62 }
  0x78   : > { %821 = vmatmul.f32.vlgmr.msra.gmra.mxu0 %v746_v1  ;;  %842 = vmatpush.msra.mxu1 %v3302_v30  ;;  %v2761_v1 = vld [vmem:[%s3240_s17 + $0x6] sm:$0x3] }
  0x79   : > { %904 = vmatpush.msra.mxu3 %v3378_v58  ;;  %1080 = vmatpush.msrb.mxu2 %v3282_v22 }
  0x7a   : > { %844 = vmatpush.msra.mxu1 %v3378_v58  ;;  %906 = vmatmul.f32.vlgmr.msra.gmra.mxu3 %v745_v62 }
  0x7b   : > { %848 = vmatmul.f32.vlgmr.msra.gmra.mxu1 %v747_v4  ;;  %1083 = vmatpush.msrb.mxu2 %v3286_v23 }
  0x7c   : > { %1042 = vmatpush.msrb.mxu1 %v3358_v49  ;;  %1109 = vmatpush.msrb.mxu3 %v3256_v12 }
  0x7d   : > { %1086 = vmatpush.msrb.mxu2 %v3289_v24  ;;  %1009 = vmatpush.msrb.mxu0 %v3256_v12 }
  0x7e   : > { %1048 = vmatpush.msrb.mxu1 %v3362_v50  ;;  %1111 = vmatpush.msrb.mxu3 %v3258_v13 }
  0x7f   : > { %1089 = vmatpush.msrb.mxu2 %v3296_v27  ;;  %1011 = vmatpush.msrb.mxu0 %v3258_v13 }
  0x80   : > { %1054 = vmatpush.msrb.mxu1 %v3367_v53  ;;  %1113 = vmatpush.msrb.mxu3 %v3260_v14 }
  0x81   : > { %1013 = vmatpush.msrb.mxu0 %v3260_v14  ;;  %1268 = vmatpush.msra.mxu2 %v3298_v28 }
  0x82   : > { %1060 = vmatpush.msrb.mxu1 %v3387_v63  ;;  %1115 = vmatpush.msrb.mxu3 %v3267_v17 }
  0x83   : > { %1015 = vmatpush.msrb.mxu0 %v3267_v17  ;;  %1270 = vmatpush.msra.mxu2 %v3300_v29 }
  0x84   : > { %1169 = vmatpush.msra.mxu1 %v3256_v12  ;;  %1301 = vmatpush.msra.mxu3 %v3382_v60 }
  0x85   : > { %1138 = vmatpush.msra.mxu0 %v3311_v32  ;;  %1272 = vmatpush.msra.mxu2 %v3302_v30 }
  0x86   : > { %1171 = vmatpush.msra.mxu1 %v3258_v13  ;;  %1307 = vmatpush.msra.mxu3 %v3384_v61 }
  0x87   : > { %1142 = vmatpush.msra.mxu0 %v3314_v33  ;;  %1274 = vmatpush.msra.mxu2 %v3378_v58 }
  0x88   : > { %1173 = vmatpush.msra.mxu1 %v3260_v14  ;;  %1313 = vmatpush.msra.mxu3 %v3396_v2 }
  0x89   : > { %1146 = vmatpush.msra.mxu0 %v3318_v35 }
  0x8a   : > { %1175 = vmatpush.msra.mxu1 %v3267_v17  ;;  %1319 = vmatpush.msra.mxu3 %v3411_v7 }
  0x8b   : > { %1150 = vmatpush.msra.mxu0 %v3325_v37 }
  0xdf   : > { %v482_v9 = vpop.f32.mrf.mxu0 }
  0xe7   : > { %v523_v10 = vpop.f32.mrf.mxu1  ;;  %v580_v18 = vpop.f32.mrf.mxu3 }
  0xe8   : > { %v553_v11 = vpop.f32.mrf.mxu2  ;;  %v524_v15 = vadd.f32 %v523_v10, %v482_v9 }
  0xea   : > { %v554_v19 = vadd.f32 %v553_v11, %v524_v15 }
  0xeb   : > { %v613_v20 = vpop.f32.mrf.mxu0 }
  0xec   : > { %v581_v21 = vadd.f32 %v580_v18, %v554_v19  ;;  %v3072_v18 = vmov 0  }
  0xed   : > { %2877 = vset.pattern.permute.xlu1 %v3072_v18  ;;  %2876 = vset.pattern.permute.xlu0 %v3072_v18 }
  0xee   : > { %v614_v25 = vadd.f32 %v613_v20, %v581_v21  ;;  %2883 = vset.pattern.permute.xlu2 %v3072_v18 }
  0xf0   : > { %v638_v40 = vpop.f32.mrf.mxu1 }
  0xf1   : > { %v639_v41 = vadd.f32 %v638_v40, %v614_v25  ;;  %v751_v42 = vpop.f32.mrf.mxu2  ;;  %v683_v40 = vstv %s3474_s14 }
  0xf2   : > { %v792_v43 = vpop.f32.mrf.mxu3 }
  0xf3   : > { %v641_v47 = vadd.f32 %v639_v41, %v451_v34  ;;  %v793_v51 = vadd.f32 %v792_v43, %v751_v42  ;;  %v3479_v34 = vld [vmem:[%s3923_s3] sm:$0x3]  ;;  %v3073_v42 = vmov 0.0  }
  0xf4   : > { %vm684_vm2 = vcmp.lt.s32.totalorder %v683_v40, %v3479_v34 }
  0xf5   : > { %2884 = vtanh.f32 %v641_v47  ;;  %v822_v52 = vpop.f32.mrf.mxu0  ;;  %v2759_v9 = vmul.f32 -1.442695, %v641_v47  ;;  %v2760_v43 = vsel %vm684_vm2, 1.0, %v3073_v42 }
  0xf6   : > { %v823_v54 = vadd.f32 %v822_v52, %v793_v51  ;;  %v693_v47 = vsub.f32 1.0, %v2760_v43 }
  0xf8   : > { %v849_v55 = vpop.f32.mrf.mxu1 }
  0xf9   : > { %v850_v56 = vadd.f32 %v849_v55, %v823_v54 }
  0xfa   : > { %v882_v57 = vpop.f32.mrf.mxu2 }
  0xfb   : > { %v2885_v59 = vpop.eup %2884  ;;  %v883_v62 = vadd.f32 %v882_v57, %v850_v56 }
  0xfc   : > { %668 = vrot.lane.b32.xlu0 %v2885_v59, %s3071_s15 }
  0xfd   : > { %v907_v4 = vpop.f32.mrf.mxu3 }
  0xfe   : > { %v908_v5 = vadd.f32 %v907_v4, %v883_v62  ;;  %v952_v4 = vstv %s719_s16  ;;  %s1765_s16 = ssub.s32 5, %s3474_s14 }
  0xff   : > { %vm953_vm7 = vcmp.lt.s32.totalorder %v952_v4, %v3479_v34 }
 0x100   : > { %v910_v6 = vadd.f32 %v2761_v1, %v908_v5 }
 0x102   : > { %2886 = vtanh.f32 %v910_v6  ;;  %v2762_v15 = vmul.f32 -1.442695, %v910_v6 }
 0x103   : > { %2888 = vpow2.f32 %v2759_v9 }
 0x108   : > { %v2887_v8 = vpop.eup %2886 }
 0x109   : > { %937 = vrot.lane.b32.xlu0 %v2887_v8, %s3071_s15  ;;  %v2889_v10 = vpop.eup %2888 }
 0x10a   : > { %v645_v11 = vadd.f32 1.0, %v2889_v10  ;;  %v2763_v10 = vsel %vm953_vm7, 1.0, %v3073_v42 }
 0x10b   : > { %v962_v18 = vsub.f32 1.0, %v2763_v10 }
 0x10c   : > { %2890 = vrcp.f32 %v645_v11  ;;  %v657_v55 = vand.u32 2147483648, %v645_v11  ;;  %vm651_vm4 = vweird.f32 %v645_v11  ;;  %v655_v57 = vand.u32 2147483647, %v645_v11 }
 0x10d   : > { %2892 = vpow2.f32 %v2762_v15 }
 0x10e   : > { %v658_v62 = vor.u32 1.1754944e-38, %v657_v55  ;;  %vm656_vm6 = vcmp.eq.f32.partialorder %v655_v57, 8.507059e+37  ;;  %v664_v57 = vpop.permute.xlu1 %663 }
 0x111   : > { %696 = vperm.xlu0 %2876, %v693_v47  }
 0x112   : > { %v2891_v19 = vpop.eup %2890 }
 0x113   : > { %v2893_v20 = vpop.eup %2892  ;;  %v647_v25 = vmul.f32 %v2891_v19, %v645_v11  ;;  %vm652_vm3 = vweird.f32 %v2891_v19 }
 0x114   : > { %v914_v21 = vadd.f32 1.0, %v2893_v20  ;;  %vm653_vm5 = vmor %vm651_vm4, %vm652_vm3 }
 0x115   : > { %v648_v41 = vsub.f32 1.0, %v647_v25 }
 0x116   : > { %2894 = vrcp.f32 %v914_v21  ;;  %v926_v11 = vand.u32 2147483648, %v914_v21  ;;  %vm920_vm9 = vweird.f32 %v914_v21 }
 0x117   : > { %v649_v51 = vmul.f32 %v2891_v19, %v648_v41 }
 0x118   : > { %v927_v25 = vor.u32 1.1754944e-38, %v926_v11 }
 0x119   : > { %v650_v54 = vadd.f32 %v2891_v19, %v649_v51  ;;  %v933_v51 = vpop.permute.xlu2 %932 }
 0x11b   : > { %v654_v59 = vsel %vm653_vm5, %v2891_v19, %v650_v54  ;;  %v924_v19 = vand.u32 2147483647, %v914_v21 }
 0x11c   : > { %v2895_v52 = vpop.eup %2894  ;;  %v659_v5 = vsel %vm656_vm6, %v658_v62, %v654_v59 }
 0x11d   : > { %v916_v56 = vmul.f32 %v2895_v52, %v914_v21  ;;  %vm921_vm8 = vweird.f32 %v2895_v52  ;;  %vm925_vm11 = vcmp.eq.f32.partialorder %v924_v19, 8.507059e+37 }
 0x11e   : > { %vm922_vm10 = vmor %vm920_vm9, %vm921_vm8 }
 0x11f   : > { %v917_v1 = vsub.f32 1.0, %v916_v56 }
 0x121   : > { %v918_v9 = vmul.f32 %v2895_v52, %v917_v1 }
 0x123   : > { %v919_v15 = vadd.f32 %v2895_v52, %v918_v9 }
 0x125   : > { %v923_v20 = vsel %vm922_vm10, %v2895_v52, %v919_v15  ;;  %v666_v52 = vmul.f32 %v664_v57, %v659_v5 }
 0x126   : > { %v928_v40 = vsel %vm925_vm11, %v927_v25, %v923_v20 }
 0x127   : > { %v935_v54 = vmul.f32 %v933_v51, %v928_v40 }
 0x16e   : > { %v669_v6 = vpop.permute.xlu0 %668 }
 0x16f   : > { %v671_v8 = vmul.f32 %v669_v6, %v659_v5 }
 0x171   : > { %673 = vrot.lane.b32.xlu1 %v671_v8, %s3903_s0 }
 0x179   : > { %965 = vperm.xlu1 %2877, %v962_v18  }
 0x17b   : > { %v938_v41 = vpop.permute.xlu0 %937 }
 0x17c   : > { %v940_v47 = vmul.f32 %v938_v41, %v928_v40 }
 0x17e   : > { %942 = vrot.lane.b32.xlu2 %v940_v47, %s3903_s0 }
 0x181   : > { %689 = vperm.xlu1 %2877, %v2760_v43  }
 0x183   : > { %v697_v43 = vpop.permute.xlu0 %696 }
 0x184   : > { %v699_v4 = vmul.f32 %v697_v43, %v3265_v16 }
 0x189   : > { %958 = vperm.xlu1 %2877, %v2763_v10  }
 0x1d8   : > { %v943_v55 = vpop.permute.xlu2 %942 }
 0x1d9   : > { %v3489_v56 = vadd.f32 %v943_v55, %v935_v54 }
 0x1db   : > { %2896 = vtanh.f32 %v3489_v56 }
 0x1e1   : > { %v2897_v21 = vpop.eup %2896 }
 0x1e2   : > { %948 = vrot.lane.b32.xlu0 %v2897_v21, %s3071_s15 }
 0x1e3   : > { %v674_v59 = vpop.permute.xlu1 %673 }
 0x1e4   : > { %v3493_v62 = vadd.f32 %v674_v59, %v666_v52 }
 0x1e6   : > { %2898 = vtanh.f32 %v3493_v62 }
 0x1eb   : > { %v3499_v6 = vpop.permute.xlu1 %965 }
 0x1ec   : > { %v2899_v1 = vpop.eup %2898  ;;  %v968_v8 = vmul.f32 %v3499_v6, %v3356_v48 }
 0x1ed   : > { %679 = vrot.lane.b32.xlu2 %v2899_v1, %s3071_s15 }
 0x1f3   : > { %v3504_v15 = vpop.permute.xlu1 %689 }
 0x1f5   : > { %701 = vrot.lane.b32.xlu2 %v699_v4, %s3074_s1 }
 0x1fb   : > { %v3511_v25 = vpop.permute.xlu1 %958 }
 0x1fd   : > { %970 = vrot.lane.b32.xlu2 %v968_v8, %s3074_s1 }
 0x247   : > { %v680_v9 = vpop.permute.xlu2 %679 }
 0x248   : > { %v682_v10 = vmul.f32 %v680_v9, %v659_v5  ;;  %v706_v5 = vmul.f32 %v697_v43, %v3293_v26 }
 0x24a   : > { %v692_v11 = vmul.f32 %v3504_v15, %v682_v10 }
 0x24f   : > { %v702_v18 = vpop.permute.xlu2 %701 }
 0x250   : > { %v3507_v19 = vadd.f32 %v702_v18, %v692_v11 }
 0x252   : > { %992 = vrot.lane.b32.xlu0 %v3507_v19, %s3903_s0 }
 0x254   : > { %v949_v16 = vpop.permute.xlu0 %948 }
 0x255   : > { %v951_v20 = vmul.f32 %v949_v16, %v928_v40 }
 0x257   : > { %v971_v41 = vpop.permute.xlu2 %970  ;;  %v961_v48 = vmul.f32 %v3511_v25, %v951_v20 }
 0x259   : > { %v3514_v47 = vadd.f32 %v971_v41, %v961_v48 }
 0x25b   : > { %1251 = vrot.lane.b32.xlu1 %v3514_v47, %s3903_s0 }
 0x263   : > { %708 = vrot.lane.b32.xlu1 %v706_v5, %s3903_s0 }
 0x2c4   : > { %v993_v51 = vpop.permute.xlu0 %992 }
 0x2c5   : > { %v994_v54 = vsel %vm452_vm1, %v993_v51, 0 }
 0x2c6   : > { %v1016_v55 = vand.u32 4294901760, %v994_v54 }
 0x2c8   : > { %v1017_v57 = vsub.f32 %v994_v54, %v1016_v55  ;;  %1062 = vmatmul.f32.vlgmr.msrb.gmra.mxu1 %v1016_v55 }
 0x2c9   : > { %1368 = vmatpush.msrb.mxu1 %v3298_v28 }
 0x2ca   : > { %v1018_v40 = vand.u32 4294901760, %v1017_v57  ;;  %1092 = vmatmul.f32.vlgmr.msrb.gmra.mxu2 %v1017_v57 }
 0x2cb   : > { %1370 = vmatpush.msrb.mxu1 %v3300_v29  ;;  %1397 = vmatpush.msrb.mxu2 %v3345_v44 }
 0x2cc   : > { %v1019_v21 = vsub.f32 %v1017_v57, %v1018_v40  ;;  %1119 = vmatmul.f32.vlgmr.msrb.gmra.mxu3 %v1018_v40 }
 0x2cd   : > { %v1252_v52 = vpop.permute.xlu1 %1251  ;;  %1372 = vmatpush.msrb.mxu1 %v3302_v30  ;;  %1428 = vmatpush.msrb.mxu3 %v3298_v28 }
 0x2ce   : > { %v1020_v26 = vand.u32 4294901760, %v1019_v21  ;;  %v1253_v59 = vsel %vm452_vm1, %v1252_v52, 0  ;;  %1401 = vmatpush.msrb.mxu2 %v3348_v45 }
 0x2cf   : > { %v1275_v1 = vand.u32 4294901760, %v1253_v59  ;;  %1374 = vmatpush.msrb.mxu1 %v3378_v58  ;;  %1430 = vmatpush.msrb.mxu3 %v3300_v29 }
 0x2d0   : > { %1021 = vmatmul.f32.vlgmr.msrb.gmra.mxu0 %v1020_v26  ;;  %1177 = vmatmul.f32.vlgmr.msra.gmra.mxu1 %v1016_v55 }
 0x2d1   : > { %v1276_v43 = vsub.f32 %v1253_v59, %v1275_v1  ;;  %1339 = vmatpush.msrb.mxu0 %v3322_v36  ;;  %1432 = vmatpush.msrb.mxu3 %v3302_v30 }
 0x2d2   : > { %1405 = vmatpush.msrb.mxu2 %v3351_v46  ;;  %1560 = vmatpush.msra.mxu1 %v3358_v49 }
 0x2d3   : > { %v1277_v4 = vand.u32 4294901760, %v1276_v43  ;;  %1342 = vmatpush.msrb.mxu0 %v3328_v38  ;;  %1434 = vmatpush.msrb.mxu3 %v3378_v58 }
 0x2d4   : > { %1321 = vmatmul.f32.vlgmr.msra.gmra.mxu3 %v1275_v1  ;;  %1409 = vmatpush.msrb.mxu2 %v3399_v3 }
 0x2d5   : > { %v1278_v8 = vsub.f32 %v1276_v43, %v1277_v4  ;;  %1345 = vmatpush.msrb.mxu0 %v3331_v39  ;;  %1566 = vmatpush.msra.mxu1 %v3362_v50 }
 0x2d6   : > { %1627 = vmatpush.msra.mxu3 %v3256_v12 }
 0x2d7   : > { %v1279_v9 = vand.u32 4294901760, %v1278_v8  ;;  %1348 = vmatpush.msrb.mxu0 %v3390_v0  ;;  %1572 = vmatpush.msra.mxu1 %v3367_v53 }
 0x2d8   : > { %1152 = vmatmul.f32.vlgmr.msra.gmra.mxu0 %v1016_v55  ;;  %1378 = vmatmul.f32.vlgmr.msrb.gmra.mxu1 %v1277_v4  ;;  %v2765_v55 = vld [vmem:[%s3238_s9 + $0x2] sm:$0x3] }
 0x2d9   : > { %1280 = vmatmul.f32.vlgmr.msra.gmra.mxu2 %v1279_v9  ;;  %1578 = vmatpush.msra.mxu1 %v3387_v63 }
 0x2da   : > { %1598 = vmatpush.msra.mxu2 %v3282_v22  ;;  %1629 = vmatpush.msra.mxu3 %v3258_v13 }
 0x2db   : > { %1527 = vmatpush.msra.mxu0 %v3256_v12  ;;  %1687 = vmatpush.msrb.mxu1 %v3256_v12 }
 0x2dc   : > { %1436 = vmatmul.f32.vlgmr.msrb.gmra.mxu3 %v1275_v1  ;;  %1601 = vmatpush.msra.mxu2 %v3286_v23 }
 0x2dd   : > { %1631 = vmatpush.msra.mxu3 %v3260_v14  ;;  %1529 = vmatpush.msra.mxu0 %v3258_v13 }
 0x2de   : > { %1604 = vmatpush.msra.mxu2 %v3289_v24  ;;  %1689 = vmatpush.msrb.mxu1 %v3258_v13 }
 0x2df   : > { %1633 = vmatpush.msra.mxu3 %v3267_v17  ;;  %1531 = vmatpush.msra.mxu0 %v3260_v14 }
 0x2e0   : > { %1351 = vmatmul.f32.vlgmr.msrb.gmra.mxu0 %v1276_v43  ;;  %1607 = vmatpush.msra.mxu2 %v3296_v27 }
 0x2e1   : > { %1411 = vmatmul.f32.vlgmr.msrb.gmra.mxu2 %v1275_v1  ;;  %1691 = vmatpush.msrb.mxu1 %v3260_v14 }
 0x2e2   : > { %1533 = vmatpush.msra.mxu0 %v3267_v17  ;;  %1819 = vmatpush.msrb.mxu3 %v3382_v60 }
 0x2e3   : > { %1693 = vmatpush.msrb.mxu1 %v3267_v17  ;;  %1786 = vmatpush.msrb.mxu2 %v3298_v28 }
 0x2e4   : > { %1656 = vmatpush.msrb.mxu0 %v3311_v32  ;;  %1825 = vmatpush.msrb.mxu3 %v3384_v61 }
 0x2e5   : > { %1788 = vmatpush.msrb.mxu2 %v3300_v29 }
 0x2e6   : > { %1660 = vmatpush.msrb.mxu0 %v3314_v33  ;;  %1831 = vmatpush.msrb.mxu3 %v3396_v2 }
 0x2e7   : > { %1790 = vmatpush.msrb.mxu2 %v3302_v30 }
 0x2e8   : > { %1664 = vmatpush.msrb.mxu0 %v3318_v35  ;;  %1837 = vmatpush.msrb.mxu3 %v3411_v7 }
 0x2e9   : > { %1792 = vmatpush.msrb.mxu2 %v3378_v58 }
 0x2ea   : > { %1668 = vmatpush.msrb.mxu0 %v3325_v37 }
 0x345   : > { %v1063_v10 = vpop.f32.mrf.mxu1 }
 0x34d   : > { %v1022_v11 = vpop.f32.mrf.mxu0  ;;  %v1093_v16 = vpop.f32.mrf.mxu2 }
 0x34e   : > { %v1064_v18 = vadd.f32 %v1063_v10, %v1022_v11  ;;  %v1178_v54 = vpop.f32.mrf.mxu1 }
 0x34f   : > { %v1120_v41 = vpop.f32.mrf.mxu3 }
 0x350   : > { %v1094_v20 = vadd.f32 %v1093_v16, %v1064_v18  ;;  %v2769_v18 = vld [vmem:[%s3240_s17 + $0x4] sm:$0x3] }
 0x352   : > { %v1121_v48 = vadd.f32 %v1120_v41, %v1094_v20 }
 0x355   : > { %v1153_v5 = vpop.f32.mrf.mxu0 }
 0x356   : > { %v1154_v51 = vadd.f32 %v1153_v5, %v1121_v48  ;;  %v1379_v4 = vpop.f32.mrf.mxu1  ;;  %v975_v48 = vmul.f32 %v3499_v6, %v3306_v31  ;;  %v1219_v5 = vstv %s988_s29 }
 0x357   : > { %v1322_v21 = vpop.f32.mrf.mxu3  ;;  %vm1220_vm12 = vcmp.lt.s32.totalorder %v1219_v5, %v3479_v34 }
 0x358   : > { %v1179_v57 = vadd.f32 %v1178_v54, %v1154_v51  ;;  %v2767_v51 = vsel %vm1220_vm12, 1.0, %v3073_v42  ;;  %v1478_v54 = vstv %s1247_s13 }
 0x359   : > { %vm1479_vm13 = vcmp.lt.s32.totalorder %v1478_v54, %v3479_v34 }
 0x35a   : > { %v1181_v40 = vadd.f32 %v2765_v55, %v1179_v57  ;;  %v2771_v55 = vsel %vm1479_vm13, 1.0, %v3073_v42 }
 0x35c   : > { %2900 = vtanh.f32 %v1181_v40  ;;  %v1281_v52 = vpop.f32.mrf.mxu2  ;;  %v2766_v57 = vmul.f32 -1.442695, %v1181_v40 }
 0x35d   : > { %v1323_v26 = vadd.f32 %v1322_v21, %v1281_v52  ;;  %v1352_v59 = vpop.f32.mrf.mxu0 }
 0x35f   : > { %v1353_v1 = vadd.f32 %v1352_v59, %v1323_v26  ;;  %v1437_v11 = vpop.f32.mrf.mxu3 }
 0x361   : > { %v1380_v8 = vadd.f32 %v1379_v4, %v1353_v1 }
 0x362   : > { %v2901_v43 = vpop.eup %2900 }
 0x363   : > { %1204 = vrot.lane.b32.xlu2 %v2901_v43, %s3071_s15 }
 0x364   : > { %v1412_v9 = vpop.f32.mrf.mxu2 }
 0x365   : > { %v1413_v10 = vadd.f32 %v1412_v9, %v1380_v8 }
 0x367   : > { %v1438_v16 = vadd.f32 %v1437_v11, %v1413_v10 }
 0x369   : > { %v1440_v20 = vadd.f32 %v2769_v18, %v1438_v16 }
 0x36b   : > { %2902 = vtanh.f32 %v1440_v20  ;;  %v2770_v43 = vmul.f32 -1.442695, %v1440_v20 }
 0x36c   : > { %2904 = vpow2.f32 %v2766_v57 }
 0x371   : > { %v2903_v41 = vpop.eup %2902 }
 0x372   : > { %1463 = vrot.lane.b32.xlu0 %v2903_v41, %s3071_s15  ;;  %v2905_v21 = vpop.eup %2904 }
 0x373   : > { %v1185_v52 = vadd.f32 1.0, %v2905_v21 }
 0x375   : > { %2906 = vrcp.f32 %v1185_v52  ;;  %v1197_v4 = vand.u32 2147483648, %v1185_v52  ;;  %vm1191_vm15 = vweird.f32 %v1185_v52  ;;  %v1195_v8 = vand.u32 2147483647, %v1185_v52 }
 0x376   : > { %2908 = vpow2.f32 %v2770_v43  ;;  %v1229_v43 = vsub.f32 1.0, %v2767_v51 }
 0x377   : > { %v1198_v10 = vor.u32 1.1754944e-38, %v1197_v4  ;;  %vm1196_vm2 = vcmp.eq.f32.partialorder %v1195_v8, 8.507059e+37  ;;  %v1488_v4 = vsub.f32 1.0, %v2771_v55  ;;  %v709_v8 = vpop.permute.xlu1 %708 }
 0x37a   : > { %977 = vrot.lane.b32.xlu0 %v975_v48, %s3903_s0 }
 0x37b   : > { %v2907_v31 = vpop.eup %2906 }
 0x37c   : > { %v1187_v6 = vmul.f32 %v2907_v31, %v1185_v52  ;;  %vm1192_vm14 = vweird.f32 %v2907_v31  ;;  %v2909_v16 = vpop.eup %2908 }
 0x37d   : > { %vm1193_vm0 = vmor %vm1191_vm15, %vm1192_vm14  ;;  %v1444_v41 = vadd.f32 1.0, %v2909_v16 }
 0x37e   : > { %v1188_v26 = vsub.f32 1.0, %v1187_v6 }
 0x37f   : > { %2910 = vrcp.f32 %v1444_v41  ;;  %v1456_v21 = vand.u32 2147483648, %v1444_v41  ;;  %vm1450_vm4 = vweird.f32 %v1444_v41  ;;  %v1454_v52 = vand.u32 2147483647, %v1444_v41 }
 0x380   : > { %v1189_v59 = vmul.f32 %v2907_v31, %v1188_v26 }
 0x381   : > { %v1457_v6 = vor.u32 1.1754944e-38, %v1456_v21  ;;  %vm1455_vm6 = vcmp.eq.f32.partialorder %v1454_v52, 8.507059e+37 }
 0x382   : > { %1225 = vperm.xlu0 %2876, %v2767_v51   ;;  %v1190_v1 = vadd.f32 %v2907_v31, %v1189_v59 }
 0x384   : > { %v1194_v9 = vsel %vm1193_vm0, %v2907_v31, %v1190_v1 }
 0x385   : > { %v1199_v11 = vsel %vm1196_vm2, %v1198_v10, %v1194_v9  ;;  %v2911_v48 = vpop.eup %2910  ;;  %v705_v9 = vmul.f32 %v3504_v15, %v3493_v62 }
 0x386   : > { %v1446_v5 = vmul.f32 %v2911_v48, %v1444_v41  ;;  %vm1451_vm3 = vweird.f32 %v2911_v48 }
 0x387   : > { %vm1452_vm5 = vmor %vm1450_vm4, %vm1451_vm3  ;;  %v711_v10 = vadd.f32 %v709_v8, %v705_v9 }
 0x388   : > { %v1447_v54 = vsub.f32 1.0, %v1446_v5  ;;  %v974_v5 = vmul.f32 %v3511_v25, %v3489_v56 }
 0x38a   : > { %1484 = vperm.xlu0 %2876, %v2771_v55   ;;  %v1448_v20 = vmul.f32 %v2911_v48, %v1447_v54 }
 0x38c   : > { %v1449_v57 = vadd.f32 %v2911_v48, %v1448_v20 }
 0x38e   : > { %v1453_v31 = vsel %vm1452_vm5, %v2911_v48, %v1449_v57 }
 0x38f   : > { %v1458_v59 = vsel %vm1455_vm6, %v1457_v6, %v1453_v31 }
 0x3bd   : > { %v1205_v40 = vpop.permute.xlu2 %1204 }
 0x3be   : > { %v1207_v18 = vmul.f32 %v1205_v40, %v1199_v11  ;;  %v1202_v40 = vmul.f32 %v1199_v11, %v711_v10 }
 0x3c0   : > { %1209 = vrot.lane.b32.xlu2 %v1207_v18, %s3903_s0 }
 0x3e4   : > { %v1464_v26 = vpop.permute.xlu0 %1463 }
 0x3e5   : > { %v1466_v1 = vmul.f32 %v1464_v26, %v1458_v59 }
 0x3e7   : > { %1468 = vrot.lane.b32.xlu1 %v1466_v1, %s3903_s0 }
 0x3ec   : > { %v978_v48 = vpop.permute.xlu0 %977 }
 0x3ed   : > { %v3590_v51 = vadd.f32 %v978_v48, %v974_v5 }
 0x3ef   : > { %1232 = vperm.xlu1 %2877, %v1229_v43   ;;  %v1461_v55 = vmul.f32 %v1458_v59, %v3590_v51 }
 0x3f4   : > { %v3596_v62 = vpop.permute.xlu0 %1225 }
 0x3f7   : > { %1491 = vperm.xlu1 %2877, %v1488_v4  }
 0x41a   : > { %v1210_v18 = vpop.permute.xlu2 %1209 }
 0x41b   : > { %v1212_v16 = vadd.f32 %v1210_v18, %v1202_v40 }
 0x41d   : > { %2912 = vtanh.f32 %v1212_v16  ;;  %v1237_v52 = vmul.f32 %v3596_v62, %v1212_v16 }
 0x423   : > { %v2913_v41 = vpop.eup %2912 }
 0x424   : > { %1215 = vrot.lane.b32.xlu2 %v2913_v41, %s3071_s15 }
 0x459   : > { %v1469_v54 = vpop.permute.xlu1 %1468 }
 0x45a   : > { %v3593_v20 = vadd.f32 %v1469_v54, %v1461_v55 }
 0x45c   : > { %2914 = vtanh.f32 %v3593_v20 }
 0x461   : > { %v1233_v57 = vpop.permute.xlu1 %1232 }
 0x462   : > { %v2915_v21 = vpop.eup %2914  ;;  %v1238_v31 = vmul.f32 %v1233_v57, %v711_v10  ;;  %v1235_v1 = vmul.f32 %v1233_v57, %v3507_v19  ;;  %v3610_v10 = vpop.permute.xlu0 %1484 }
 0x463   : > { %1474 = vrot.lane.b32.xlu2 %v2915_v21, %s3071_s15 }
 0x464   : > { %v3600_v6 = vadd.f32 %v1238_v31, %v1237_v52 }
 0x469   : > { %v3608_v8 = vpop.permute.xlu1 %1491 }
 0x46a   : > { %v1494_v18 = vmul.f32 %v3608_v8, %v3514_v47 }
 0x47e   : > { %v1216_v56 = vpop.permute.xlu2 %1215 }
 0x47f   : > { %v1218_v26 = vmul.f32 %v1216_v56, %v1199_v11 }
 0x481   : > { %v1228_v43 = vmul.f32 %v3596_v62, %v1218_v26 }
 0x483   : > { %v3604_v4 = vadd.f32 %v1235_v1, %v1228_v43 }
 0x485   : > { %1510 = vrot.lane.b32.xlu2 %v3604_v4, %s3903_s0 }
 0x4bd   : > { %v1475_v9 = vpop.permute.xlu2 %1474 }
 0x4be   : > { %v1477_v40 = vmul.f32 %v1475_v9, %v1458_v59 }
 0x4c0   : > { %v1487_v11 = vmul.f32 %v3610_v10, %v1477_v40 }
 0x4c2   : > { %v3615_v16 = vadd.f32 %v1494_v18, %v1487_v11 }
 0x4c4   : > { %1769 = vrot.lane.b32.xlu0 %v3615_v16, %s3903_s0 }
 0x4df   : > { %v1511_v41 = vpop.permute.xlu2 %1510 }
 0x4e0   : > { %v1512_v48 = vsel %vm452_vm1, %v1511_v41, 0 }
 0x4e1   : > { %v1534_v5 = vand.u32 4294901760, %v1512_v48 }
 0x4e3   : > { %v1535_v55 = vsub.f32 %v1512_v48, %v1534_v5  ;;  %1580 = vmatmul.f32.vlgmr.msra.gmra.mxu1 %v1534_v5 }
 0x4e4   : > { %1886 = vmatpush.msra.mxu1 %v3298_v28 }
 0x4e5   : > { %v1536_v59 = vand.u32 4294901760, %v1535_v55  ;;  %1610 = vmatmul.f32.vlgmr.msra.gmra.mxu2 %v1535_v55 }
 0x4e6   : > { %1888 = vmatpush.msra.mxu1 %v3300_v29  ;;  %1915 = vmatpush.msra.mxu2 %v3345_v44 }
 0x4e7   : > { %v1537_v54 = vsub.f32 %v1535_v55, %v1536_v59  ;;  %1637 = vmatmul.f32.vlgmr.msra.gmra.mxu3 %v1536_v59  ;;  %v2777_v55 = vld [vmem:[%s3240_s17 + $0x2] sm:$0x3] }
 0x4e8   : > { %1890 = vmatpush.msra.mxu1 %v3302_v30  ;;  %1946 = vmatpush.msra.mxu3 %v3298_v28 }
 0x4e9   : > { %v1538_v57 = vand.u32 4294901760, %v1537_v54  ;;  %1919 = vmatpush.msra.mxu2 %v3348_v45 }
 0x4ea   : > { %1892 = vmatpush.msra.mxu1 %v3378_v58  ;;  %1948 = vmatpush.msra.mxu3 %v3300_v29 }
 0x4eb   : > { %1539 = vmatmul.f32.vlgmr.msra.gmra.mxu0 %v1538_v57  ;;  %1695 = vmatmul.f32.vlgmr.msrb.gmra.mxu1 %v1534_v5 }
 0x4ec   : > { %1857 = vmatpush.msra.mxu0 %v3322_v36  ;;  %1950 = vmatpush.msra.mxu3 %v3302_v30 }
 0x4ed   : > { %1923 = vmatpush.msra.mxu2 %v3351_v46  ;;  %2078 = vmatpush.msrb.mxu1 %v3358_v49 }
 0x4ee   : > { %1860 = vmatpush.msra.mxu0 %v3328_v38  ;;  %1952 = vmatpush.msra.mxu3 %v3378_v58 }
 0x4ef   : > { %1927 = vmatpush.msra.mxu2 %v3399_v3  ;;  %2084 = vmatpush.msrb.mxu1 %v3362_v50 }
 0x4f0   : > { %1863 = vmatpush.msra.mxu0 %v3331_v39 }
 0x4f1   : > { %2090 = vmatpush.msrb.mxu1 %v3367_v53 }
 0x4f2   : > { %1866 = vmatpush.msra.mxu0 %v3390_v0 }
 0x4f3   : > { %1670 = vmatmul.f32.vlgmr.msrb.gmra.mxu0 %v1534_v5  ;;  %2096 = vmatpush.msrb.mxu1 %v3387_v63 }
 0x4f4   : > { %2045 = vmatpush.msrb.mxu0 %v3256_v12 }
 0x4f6   : > { %2047 = vmatpush.msrb.mxu0 %v3258_v13 }
 0x4f8   : > { %2049 = vmatpush.msrb.mxu0 %v3260_v14 }
 0x4fa   : > { %2051 = vmatpush.msrb.mxu0 %v3267_v17 }
 0x536   : > { %v1770_v49 = vpop.permute.xlu0 %1769 }
 0x537   : > { %v1771_v50 = vsel %vm452_vm1, %v1770_v49, 0 }
 0x538   : > { %v1793_v21 = vand.u32 4294901760, %v1771_v50 }
 0x53a   : > { %v1794_v52 = vsub.f32 %v1771_v50, %v1793_v21  ;;  %1839 = vmatmul.f32.vlgmr.msrb.gmra.mxu3 %v1793_v21 }
 0x53b   : > { %2145 = vmatpush.msrb.mxu3 %v3256_v12 }
 0x53c   : > { %v1795_v53 = vand.u32 4294901760, %v1794_v52  ;;  %1869 = vmatmul.f32.vlgmr.msra.gmra.mxu0 %v1794_v52 }
 0x53d   : > { %2147 = vmatpush.msrb.mxu3 %v3258_v13  ;;  %2174 = vmatpush.msra.mxu0 %v3311_v32 }
 0x53e   : > { %v1796_v63 = vsub.f32 %v1794_v52, %v1795_v53  ;;  %1896 = vmatmul.f32.vlgmr.msra.gmra.mxu1 %v1795_v53 }
 0x53f   : > { %2149 = vmatpush.msrb.mxu3 %v3260_v14  ;;  %2205 = vmatpush.msra.mxu1 %v3256_v12 }
 0x540   : > { %v1797_v31 = vand.u32 4294901760, %v1796_v63  ;;  %2178 = vmatpush.msra.mxu0 %v3314_v33 }
 0x541   : > { %2151 = vmatpush.msrb.mxu3 %v3267_v17  ;;  %2207 = vmatpush.msra.mxu1 %v3258_v13 }
 0x542   : > { %1798 = vmatmul.f32.vlgmr.msrb.gmra.mxu2 %v1797_v31  ;;  %1954 = vmatmul.f32.vlgmr.msra.gmra.mxu3 %v1793_v21 }
 0x543   : > { %2116 = vmatpush.msrb.mxu2 %v3282_v22  ;;  %2209 = vmatpush.msra.mxu1 %v3260_v14 }
 0x544   : > { %2182 = vmatpush.msra.mxu0 %v3318_v35  ;;  %2336 = vmatpush.msra.mxu3 %v3382_v60  ;;  %v2773_v35 = vld [vmem:[%s3238_s9 + $0x4] sm:$0x3] }
 0x545   : > { %2119 = vmatpush.msrb.mxu2 %v3286_v23  ;;  %2211 = vmatpush.msra.mxu1 %v3267_v17 }
 0x546   : > { %2186 = vmatpush.msra.mxu0 %v3325_v37  ;;  %2342 = vmatpush.msra.mxu3 %v3384_v61 }
 0x547   : > { %2122 = vmatpush.msrb.mxu2 %v3289_v24 }
 0x548   : > { %2348 = vmatpush.msra.mxu3 %v3396_v2 }
 0x549   : > { %2125 = vmatpush.msrb.mxu2 %v3296_v27 }
 0x54a   : > { %1929 = vmatmul.f32.vlgmr.msra.gmra.mxu2 %v1793_v21  ;;  %2354 = vmatpush.msra.mxu3 %v3411_v7 }
 0x54b   : > { %2303 = vmatpush.msra.mxu2 %v3298_v28 }
 0x54d   : > { %2305 = vmatpush.msra.mxu2 %v3300_v29 }
 0x54f   : > { %2307 = vmatpush.msra.mxu2 %v3302_v30 }
 0x551   : > { %2309 = vmatpush.msra.mxu2 %v3378_v58 }
 0x560   : > { %v1581_v12 = vpop.f32.mrf.mxu1 }
 0x568   : > { %v1540_v13 = vpop.f32.mrf.mxu0  ;;  %v1611_v17 = vpop.f32.mrf.mxu2 }
 0x569   : > { %v1582_v14 = vadd.f32 %v1581_v12, %v1540_v13  ;;  %v1696_v33 = vpop.f32.mrf.mxu1 }
 0x56a   : > { %v1638_v23 = vpop.f32.mrf.mxu3 }
 0x56b   : > { %v1612_v22 = vadd.f32 %v1611_v17, %v1582_v14 }
 0x56d   : > { %v1639_v24 = vadd.f32 %v1638_v23, %v1612_v22  ;;  %v1737_v23 = vstv %s1506_s20 }
 0x56e   : > { %vm1738_vm11 = vcmp.lt.s32.totalorder %v1737_v23, %v3479_v34 }
 0x570   : > { %v1671_v27 = vpop.f32.mrf.mxu0 }
 0x571   : > { %v1672_v32 = vadd.f32 %v1671_v27, %v1639_v24  ;;  %v2775_v24 = vsel %vm1738_vm11, 1.0, %v3073_v42  ;;  %v1996_v27 = vstv %s1765_s16  ;;  %vm717_vm11 = vcmask 254976  }
 0x572   : > { %vm1997_vm12 = vcmp.lt.s32.totalorder %v1996_v27, %v3479_v34 }
 0x573   : > { %v1697_v37 = vadd.f32 %v1696_v33, %v1672_v32  ;;  %v2779_v32 = vsel %vm1997_vm12, 1.0, %v3073_v42 }
 0x575   : > { %v1699_v60 = vadd.f32 %v2773_v35, %v1697_v37 }
 0x577   : > { %2916 = vtanh.f32 %v1699_v60  ;;  %v2774_v2 = vmul.f32 -1.442695, %v1699_v60 }
 0x579   : > { %2918 = vpow2.f32 %v2774_v2 }
 0x57d   : > { %v2917_v61 = vpop.eup %2916 }
 0x57e   : > { %1722 = vrot.lane.b32.xlu1 %v2917_v61, %s3071_s15 }
 0x57f   : > { %v2919_v40 = vpop.eup %2918 }
 0x580   : > { %v1703_v48 = vadd.f32 1.0, %v2919_v40 }
 0x582   : > { %2920 = vrcp.f32 %v1703_v48  ;;  %v1715_v63 = vand.u32 2147483648, %v1703_v48  ;;  %vm1709_vm8 = vweird.f32 %v1703_v48  ;;  %v1713_v31 = vand.u32 2147483647, %v1703_v48 }
 0x584   : > { %v1716_v13 = vor.u32 1.1754944e-38, %v1715_v63  ;;  %vm1714_vm10 = vcmp.eq.f32.partialorder %v1713_v31, 8.507059e+37 }
 0x588   : > { %v2921_v57 = vpop.eup %2920 }
 0x589   : > { %v1705_v50 = vmul.f32 %v2921_v57, %v1703_v48  ;;  %vm1710_vm7 = vweird.f32 %v2921_v57 }
 0x58a   : > { %vm1711_vm9 = vmor %vm1709_vm8, %vm1710_vm7 }
 0x58b   : > { %v1706_v21 = vsub.f32 1.0, %v1705_v50 }
 0x58d   : > { %v1707_v52 = vmul.f32 %v2921_v57, %v1706_v21 }
 0x58f   : > { %v1708_v53 = vadd.f32 %v2921_v57, %v1707_v52 }
 0x591   : > { %v1712_v12 = vsel %vm1711_vm9, %v2921_v57, %v1708_v53  ;;  %v1496_v57 = vmul.f32 %v3610_v10, %v3593_v20 }
 0x592   : > { %v1717_v17 = vsel %vm1714_vm10, %v1716_v13, %v1712_v12 }
 0x593   : > { %v1720_v48 = vmul.f32 %v1717_v17, %v3600_v6 }
 0x5b9   : > { %v1870_v1 = vpop.f32.mrf.mxu0 }
 0x5bb   : > { %v1897_v9 = vpop.f32.mrf.mxu1 }
 0x5bd   : > { %v1840_v7 = vpop.f32.mrf.mxu3 }
 0x5c5   : > { %v1799_v56 = vpop.f32.mrf.mxu2  ;;  %v1955_v5 = vpop.f32.mrf.mxu3 }
 0x5c6   : > { %v1841_v26 = vadd.f32 %v1840_v7, %v1799_v56 }
 0x5c8   : > { %v1871_v43 = vadd.f32 %v1870_v1, %v1841_v26 }
 0x5ca   : > { %v1898_v18 = vadd.f32 %v1897_v9, %v1871_v43 }
 0x5cd   : > { %v1930_v11 = vpop.f32.mrf.mxu2 }
 0x5ce   : > { %v1931_v41 = vadd.f32 %v1930_v11, %v1898_v18  ;;  %v1747_v11 = vsub.f32 1.0, %v2775_v24 }
 0x5d0   : > { %v1956_v59 = vadd.f32 %v1955_v5, %v1931_v41  ;;  %v2006_v41 = vsub.f32 1.0, %v2779_v32 }
 0x5d2   : > { %v1958_v54 = vadd.f32 %v2777_v55, %v1956_v59 }
 0x5d4   : > { %2922 = vtanh.f32 %v1958_v54  ;;  %v2778_v33 = vmul.f32 -1.442695, %v1958_v54  ;;  %v1497_v54 = vmul.f32 %v3608_v8, %v3590_v51 }
 0x5d6   : > { %2924 = vpow2.f32 %v2778_v33 }
 0x5da   : > { %v2923_v49 = vpop.eup %2922 }
 0x5db   : > { %1981 = vrot.lane.b32.xlu2 %v2923_v49, %s3071_s15  ;;  %v3687_v49 = vadd.f32 %v1497_v54, %v1496_v57 }
 0x5dc   : > { %v2925_v35 = vpop.eup %2924 }
 0x5dd   : > { %v1962_v37 = vadd.f32 1.0, %v2925_v35 }
 0x5df   : > { %2926 = vrcp.f32 %v1962_v37  ;;  %v1974_v26 = vand.u32 2147483648, %v1962_v37  ;;  %vm1968_vm14 = vweird.f32 %v1962_v37  ;;  %v1972_v1 = vand.u32 2147483647, %v1962_v37 }
 0x5e1   : > { %v1975_v34 = vor.u32 1.1754944e-38, %v1974_v26  ;;  %vm1973_vm0 = vcmp.eq.f32.partialorder %v1972_v1, 8.507059e+37 }
 0x5e5   : > { %v2927_v60 = vpop.eup %2926 }
 0x5e6   : > { %v1964_v61 = vmul.f32 %v2927_v60, %v1962_v37  ;;  %vm1969_vm13 = vweird.f32 %v2927_v60 }
 0x5e7   : > { %vm1970_vm15 = vmor %vm1968_vm14, %vm1969_vm13 }
 0x5e8   : > { %v1965_v2 = vsub.f32 1.0, %v1964_v61 }
 0x5ea   : > { %v1966_v7 = vmul.f32 %v2927_v60, %v1965_v2 }
 0x5ec   : > { %v1967_v56 = vadd.f32 %v2927_v60, %v1966_v7 }
 0x5ee   : > { %v1971_v43 = vsel %vm1970_vm15, %v2927_v60, %v1967_v56 }
 0x5ef   : > { %v1976_v40 = vsel %vm1973_vm0, %v1975_v34, %v1971_v43 }
 0x5f0   : > { %v1723_v14 = vpop.permute.xlu1 %1722  ;;  %v1979_v50 = vmul.f32 %v1976_v40, %v3687_v49 }
 0x5f1   : > { %v1725_v22 = vmul.f32 %v1723_v14, %v1717_v17 }
 0x5f3   : > { %1727 = vrot.lane.b32.xlu0 %v1725_v22, %s3903_s0 }
 0x5fb   : > { %1743 = vperm.xlu0 %2876, %v2775_v24  }
 0x603   : > { %2002 = vperm.xlu0 %2876, %v2779_v32  }
 0x635   : > { %v1982_v9 = vpop.permute.xlu2 %1981 }
 0x636   : > { %v1984_v18 = vmul.f32 %v1982_v9, %v1976_v40 }
 0x638   : > { %1986 = vrot.lane.b32.xlu1 %v1984_v18, %s3903_s0  ;;  %v2781_v18 = vld [vmem:[%s3238_s9 + $0x6] sm:$0x3]  ;;  %s2024_s9 = sadd.s32 3, %s3474_s14 }
 0x640   : > { %1750 = vperm.xlu1 %2877, %v1747_v11  }
 0x648   : > { %2009 = vperm.xlu1 %2877, %v2006_v41  }
 0x665   : > { %v1728_v5 = vpop.permute.xlu0 %1727 }
 0x666   : > { %v1730_v55 = vadd.f32 %v1728_v5, %v1720_v48 }
 0x668   : > { %2928 = vtanh.f32 %v1730_v55 }
 0x66d   : > { %v3693_v53 = vpop.permute.xlu0 %1743 }
 0x66e   : > { %v2929_v59 = vpop.eup %2928  ;;  %v1755_v12 = vmul.f32 %v3693_v53, %v1730_v55 }
 0x66f   : > { %1733 = vrot.lane.b32.xlu2 %v2929_v59, %s3071_s15 }
 0x6aa   : > { %v1987_v21 = vpop.permute.xlu1 %1986 }
 0x6ab   : > { %v3690_v52 = vadd.f32 %v1987_v21, %v1979_v50 }
 0x6ad   : > { %2930 = vtanh.f32 %v3690_v52 }
 0x6b2   : > { %v1751_v63 = vpop.permute.xlu1 %1750 }
 0x6b3   : > { %v2931_v31 = vpop.eup %2930  ;;  %v1756_v51 = vmul.f32 %v1751_v63, %v3600_v6  ;;  %v1753_v14 = vmul.f32 %v1751_v63, %v3604_v4  ;;  %v3708_v6 = vpop.permute.xlu0 %2002 }
 0x6b4   : > { %1992 = vrot.lane.b32.xlu2 %v2931_v31, %s3071_s15 }
 0x6b5   : > { %v3698_v20 = vadd.f32 %v1756_v51, %v1755_v12 }
 0x6ba   : > { %v3706_v24 = vpop.permute.xlu1 %2009 }
 0x6bb   : > { %v2012_v33 = vmul.f32 %v3706_v24, %v3615_v16 }
 0x6c9   : > { %v1734_v8 = vpop.permute.xlu2 %1733 }
 0x6ca   : > { %v1736_v13 = vmul.f32 %v1734_v8, %v1717_v17 }
 0x6cc   : > { %v1746_v22 = vmul.f32 %v3693_v53, %v1736_v13 }
 0x6ce   : > { %v3702_v23 = vadd.f32 %v1753_v14, %v1746_v22  ;;  %v2284_v14 = vld [vmem:[%s3240_s17] sm:$0x3]  ;;  %s2283_s17 = ssub.s32 4, %s3474_s14 }
 0x6d0   : > { %2028 = vrot.lane.b32.xlu2 %v3702_v23, %s3903_s0 }
 0x70e   : > { %v1993_v27 = vpop.permute.xlu2 %1992 }
 0x70f   : > { %v1995_v32 = vmul.f32 %v1993_v27, %v1976_v40 }
 0x711   : > { %v2005_v17 = vmul.f32 %v3708_v6, %v1995_v32 }
 0x713   : > { %v3713_v35 = vadd.f32 %v2012_v33, %v2005_v17 }
 0x715   : > { %2286 = vrot.lane.b32.xlu0 %v3713_v35, %s3903_s0 }
 0x72a   : > { %v2029_v37 = vpop.permute.xlu2 %2028 }
 0x72b   : > { %v2030_v60 = vsel %vm452_vm1, %v2029_v37, 0 }
 0x72c   : > { %v2052_v61 = vand.u32 4294901760, %v2030_v60 }
 0x72e   : > { %v2053_v2 = vsub.f32 %v2030_v60, %v2052_v61  ;;  %2098 = vmatmul.f32.vlgmr.msrb.gmra.mxu1 %v2052_v61 }
 0x72f   : > { %2403 = vmatpush.msrb.mxu1 %v3298_v28 }
 0x730   : > { %v2054_v7 = vand.u32 4294901760, %v2053_v2  ;;  %2128 = vmatmul.f32.vlgmr.msrb.gmra.mxu2 %v2053_v2 }
 0x731   : > { %2405 = vmatpush.msrb.mxu1 %v3300_v29  ;;  %2432 = vmatpush.msrb.mxu2 %v3345_v44 }
 0x732   : > { %v2055_v56 = vsub.f32 %v2053_v2, %v2054_v7  ;;  %2155 = vmatmul.f32.vlgmr.msrb.gmra.mxu3 %v2054_v7 }
 0x733   : > { %2407 = vmatpush.msrb.mxu1 %v3302_v30  ;;  %2463 = vmatpush.msrb.mxu3 %v3298_v28 }
 0x734   : > { %v2056_v26 = vand.u32 4294901760, %v2055_v56  ;;  %2436 = vmatpush.msrb.mxu2 %v3348_v45 }
 0x735   : > { %2409 = vmatpush.msrb.mxu1 %v3378_v58  ;;  %2465 = vmatpush.msrb.mxu3 %v3300_v29 }
 0x736   : > { %2057 = vmatmul.f32.vlgmr.msrb.gmra.mxu0 %v2056_v26  ;;  %2213 = vmatmul.f32.vlgmr.msra.gmra.mxu1 %v2052_v61 }
 0x737   : > { %2374 = vmatpush.msrb.mxu0 %v3322_v36  ;;  %2467 = vmatpush.msrb.mxu3 %v3302_v30 }
 0x738   : > { %2440 = vmatpush.msrb.mxu2 %v3351_v46 }
 0x739   : > { %2377 = vmatpush.msrb.mxu0 %v3328_v38  ;;  %2469 = vmatpush.msrb.mxu3 %v3378_v58 }
 0x73a   : > { %2444 = vmatpush.msrb.mxu2 %v3399_v3 }
 0x73b   : > { %2380 = vmatpush.msrb.mxu0 %v3331_v39 }
 0x73d   : > { %2383 = vmatpush.msrb.mxu0 %v3390_v0 }
 0x73e   : > { %2188 = vmatmul.f32.vlgmr.msra.gmra.mxu0 %v2052_v61 }
 0x787   : > { %v2287_v28 = vpop.permute.xlu0 %2286 }
 0x788   : > { %v2288_v29 = vsel %vm452_vm1, %v2287_v28, 0 }
 0x789   : > { %v2310_v44 = vand.u32 4294901760, %v2288_v29 }
 0x78b   : > { %v2311_v36 = vsub.f32 %v2288_v29, %v2310_v44  ;;  %2356 = vmatmul.f32.vlgmr.msra.gmra.mxu3 %v2310_v44 }
 0x78d   : > { %v2312_v30 = vand.u32 4294901760, %v2311_v36  ;;  %2386 = vmatmul.f32.vlgmr.msrb.gmra.mxu0 %v2311_v36 }
 0x78f   : > { %v2313_v45 = vsub.f32 %v2311_v36, %v2312_v30  ;;  %2413 = vmatmul.f32.vlgmr.msrb.gmra.mxu1 %v2312_v30 }
 0x791   : > { %v2314_v38 = vand.u32 4294901760, %v2313_v45 }
 0x793   : > { %2315 = vmatmul.f32.vlgmr.msra.gmra.mxu2 %v2314_v38  ;;  %2471 = vmatmul.f32.vlgmr.msrb.gmra.mxu3 %v2310_v44 }
 0x79b   : > { %2446 = vmatmul.f32.vlgmr.msrb.gmra.mxu2 %v2310_v44 }
 0x7ab   : > { %v2099_v46 = vpop.f32.mrf.mxu1 }
 0x7b3   : > { %v2058_v39 = vpop.f32.mrf.mxu0  ;;  %v2129_v0 = vpop.f32.mrf.mxu2 }
 0x7b4   : > { %v2100_v58 = vadd.f32 %v2099_v46, %v2058_v39  ;;  %v2214_v40 = vpop.f32.mrf.mxu1 }
 0x7b5   : > { %v2156_v1 = vpop.f32.mrf.mxu3 }
 0x7b6   : > { %v2130_v3 = vadd.f32 %v2129_v0, %v2100_v58 }
 0x7b8   : > { %v2157_v43 = vadd.f32 %v2156_v1, %v2130_v3 }
 0x7bb   : > { %v2189_v34 = vpop.f32.mrf.mxu0 }
 0x7bc   : > { %v2190_v9 = vadd.f32 %v2189_v34, %v2157_v43 }
 0x7be   : > { %v2215_v11 = vadd.f32 %v2214_v40, %v2190_v9  ;;  %v2255_v9 = vstv %s2024_s9  ;;  %v2513_v40 = vstv %s2283_s17 }
 0x7c0   : > { %v2217_v41 = vadd.f32 %v2781_v18, %v2215_v11 }
 0x7c2   : > { %2932 = vtanh.f32 %v2217_v41  ;;  %v2782_v5 = vmul.f32 -1.442695, %v2217_v41 }
 0x7c4   : > { %2934 = vpow2.f32 %v2782_v5 }
 0x7c8   : > { %v2933_v48 = vpop.eup %2932 }
 0x7c9   : > { %2240 = vrot.lane.b32.xlu1 %v2933_v48, %s3071_s15  ;;  %v2948_v48 = vld [vmem:[%s3923_s3] sm:$0x3] }
 0x7ca   : > { %v2935_v57 = vpop.eup %2934  ;;  %vm2256_vm9 = vcmp.lt.s32.totalorder %v2255_v9, %v2948_v48  ;;  %vm2514_vm10 = vcmp.lt.s32.totalorder %v2513_v40, %v2948_v48 }
 0x7cb   : > { %v2221_v63 = vadd.f32 1.0, %v2935_v57  ;;  %v2783_v5 = vsel %vm2256_vm9, 1.0, %v3073_v42  ;;  %v1499_v57 = vmul.f32 %v3615_v16, %v3610_v10  ;;  %v2015_v10 = vmul.f32 %v3706_v24, %v3687_v49 }
 0x7cc   : > { %v2014_v16 = vmul.f32 %v3708_v6, %v3690_v52  ;;  %v1240_v52 = vmul.f32 %v3604_v4, %v3596_v62 }
 0x7cd   : > { %2936 = vrcp.f32 %v2221_v63  ;;  %v2233_v2 = vand.u32 2147483648, %v2221_v63  ;;  %vm2227_vm2 = vweird.f32 %v2221_v63  ;;  %v2231_v7 = vand.u32 2147483647, %v2221_v63 }
 0x7cf   : > { %v2234_v26 = vor.u32 1.1754944e-38, %v2233_v2  ;;  %vm2232_vm4 = vcmp.eq.f32.partialorder %v2231_v7, 8.507059e+37 }
 0x7d3   : > { %v2937_v32 = vpop.eup %2936 }
 0x7d4   : > { %v2223_v33 = vmul.f32 %v2937_v32, %v2221_v63  ;;  %vm2228_vm1 = vweird.f32 %v2937_v32 }
 0x7d5   : > { %vm2229_vm3 = vmor %vm2227_vm2, %vm2228_vm1 }
 0x7d6   : > { %v2224_v37 = vsub.f32 1.0, %v2223_v33 }
 0x7d8   : > { %v2225_v60 = vmul.f32 %v2937_v32, %v2224_v37 }
 0x7da   : > { %v2226_v61 = vadd.f32 %v2937_v32, %v2225_v60 }
 0x7dc   : > { %v2230_v56 = vsel %vm2229_vm3, %v2937_v32, %v2226_v61 }
 0x7dd   : > { %v3739_v29 = vsel %vm2232_vm4, %v2234_v26, %v2230_v56 }
 0x80a   : > { %v2387_v50 = vpop.f32.mrf.mxu0 }
 0x80c   : > { %v2414_v31 = vpop.f32.mrf.mxu1 }
 0x80e   : > { %v2357_v55 = vpop.f32.mrf.mxu3 }
 0x816   : > { %v2316_v59 = vpop.f32.mrf.mxu2  ;;  %v2472_v13 = vpop.f32.mrf.mxu3 }
 0x817   : > { %v2358_v54 = vadd.f32 %v2357_v55, %v2316_v59  ;;  %v2786_v55 = vsel %vm2514_vm10, 1.0, %v3073_v42  ;;  %v2265_v42 = vsub.f32 1.0, %v2783_v5 }
 0x818   : > { %v2878_v59 = vpack.i.bf16 %v2786_v55, %v2783_v5 }
 0x819   : > { %v2388_v21 = vadd.f32 %v2387_v50, %v2358_v54  ;;  %v712_v54 = vmul.f32 %v3507_v19, %v3504_v15  ;;  %v2238_v50 = vmul.f32 %v3739_v29, %v3698_v20  ;;  %v981_v15 = vmul.f32 %v3514_v47, %v3511_v25 }
 0x81a   : > { %v1758_v19 = vmul.f32 %v3702_v23, %v3693_v53 }
 0x81b   : > { %v2415_v12 = vadd.f32 %v2414_v31, %v2388_v21 }
 0x81e   : > { %v2447_v51 = vpop.f32.mrf.mxu2 }
 0x81f   : > { %v2448_v8 = vadd.f32 %v2447_v51, %v2415_v12  ;;  %v2016_v12 = vadd.f32 %v2015_v10, %v2014_v16 }
 0x821   : > { %v2473_v22 = vadd.f32 %v2472_v13, %v2448_v8 }
 0x823   : > { %v2475_v27 = vadd.f32 %v2473_v22, %v2284_v14  ;;  %v2523_v22 = vsub.f32 1.0, %v2786_v55 }
 0x825   : > { %2938 = vtanh.f32 %v2475_v27  ;;  %v2785_v36 = vmul.f32 -1.442695, %v2475_v27 }
 0x827   : > { %2940 = vpow2.f32 %v2785_v36 }
 0x82b   : > { %v2939_v17 = vpop.eup %2938 }
 0x82c   : > { %2498 = vrot.lane.b32.xlu2 %v2939_v17, %s3071_s15  ;;  %v2017_v17 = vmul.f32 %v3713_v35, %v3708_v6 }
 0x82d   : > { %v2941_v30 = vpop.eup %2940 }
 0x82e   : > { %v2479_v45 = vadd.f32 1.0, %v2941_v30 }
 0x830   : > { %2942 = vrcp.f32 %v2479_v45  ;;  %v2491_v3 = vand.u32 2147483648, %v2479_v45  ;;  %vm2485_vm6 = vweird.f32 %v2479_v45  ;;  %v2489_v1 = vand.u32 2147483647, %v2479_v45 }
 0x832   : > { %v2492_v34 = vor.u32 1.1754944e-38, %v2491_v3  ;;  %vm2490_vm8 = vcmp.eq.f32.partialorder %v2489_v1, 8.507059e+37 }
 0x836   : > { %v2943_v38 = vpop.eup %2942 }
 0x837   : > { %v2481_v46 = vmul.f32 %v2943_v38, %v2479_v45  ;;  %vm2486_vm5 = vweird.f32 %v2943_v38 }
 0x838   : > { %vm2487_vm7 = vmor %vm2485_vm6, %vm2486_vm5 }
 0x839   : > { %v2482_v39 = vsub.f32 1.0, %v2481_v46 }
 0x83b   : > { %v2241_v28 = vpop.permute.xlu1 %2240  ;;  %v2483_v58 = vmul.f32 %v2943_v38, %v2482_v39 }
 0x83c   : > { %v2243_v44 = vmul.f32 %v2241_v28, %v3739_v29 }
 0x83d   : > { %v2484_v0 = vadd.f32 %v2943_v38, %v2483_v58 }
 0x83e   : > { %2245 = vrot.lane.b32.xlu0 %v2243_v44, %s3903_s0 }
 0x83f   : > { %v2488_v43 = vsel %vm2487_vm7, %v2943_v38, %v2484_v0 }
 0x840   : > { %v3745_v11 = vsel %vm2490_vm8, %v2492_v34, %v2488_v43 }
 0x841   : > { %v2496_v51 = vmul.f32 %v3745_v11, %v2016_v12 }
 0x886   : > { %v2499_v18 = vpop.permute.xlu2 %2498 }
 0x887   : > { %v2501_v41 = vmul.f32 %v2499_v18, %v3745_v11 }
 0x889   : > { %2503 = vrot.lane.b32.xlu1 %v2501_v41, %s3903_s0 }
 0x891   : > { %2879 = vperm.xlu1 %2877, %v2878_v59  }
 0x899   : > { %714 = vrot.lane.b32.xlu1 %v712_v54, %s3903_s0 }
 0x8a1   : > { %1501 = vrot.lane.b32.xlu1 %v1499_v57, %s3903_s0 }
 0x8b0   : > { %v2246_v21 = vpop.permute.xlu0 %2245 }
 0x8b1   : > { %v2248_v63 = vadd.f32 %v2246_v21, %v2238_v50 }
 0x8b3   : > { %2944 = vtanh.f32 %v2248_v63 }
 0x8b9   : > { %v2945_v31 = vpop.eup %2944 }
 0x8ba   : > { %2251 = vrot.lane.b32.xlu2 %v2945_v31, %s3071_s15 }
 0x8c2   : > { %2268 = vperm.xlu2 %2883, %v2265_v42  }
 0x8ca   : > { %983 = vrot.lane.b32.xlu2 %v981_v15, %s3903_s0 }
 0x8d2   : > { %1760 = vrot.lane.b32.xlu2 %v1758_v19, %s3903_s0 }
 0x8fb   : > { %v2504_v8 = vpop.permute.xlu1 %2503 }
 0x8fc   : > { %v2506_v25 = vadd.f32 %v2504_v8, %v2496_v51 }
 0x8fe   : > { %2946 = vtanh.f32 %v2506_v25 }
 0x903   : > { %v2880_v47 = vpop.permute.xlu1 %2879 }
 0x904   : > { %v2947_v13 = vpop.eup %2946  ;;  %v2882_v14 = vunpack.i.h.bf16 %v2880_v47  ;;  %v2881_v33 = vunpack.i.l.bf16 %v2880_v47 }
 0x905   : > { %2509 = vrot.lane.b32.xlu0 %v2947_v13, %s3071_s15 }
 0x906   : > { %v2531_v53 = vmul.f32 %v2882_v14, %v2506_v25  ;;  %v2273_v56 = vmul.f32 %v2881_v33, %v2248_v63 }
 0x90b   : > { %v715_v27 = vpop.permute.xlu1 %714 }
 0x90c   : > { %718 = vst.msk [vmem:[%s3242_s12] sm:$0x3] %vm717_vm11, %v715_v27 }
 0x90d   : > { %2526 = vperm.xlu0 %2876, %v2523_v22  }
 0x913   : > { %v1502_v49 = vpop.permute.xlu1 %1501 }
 0x914   : > { %2772 = vst.msk [vmem:[%s3244_s18 + $0x4] sm:$0x3] %vm717_vm11, %v1502_v49  ;;  %v2252_v24 = vpop.permute.xlu2 %2251 }
 0x915   : > { %1242 = vrot.lane.b32.xlu0 %v1240_v52, %s3903_s0  ;;  %v2254_v32 = vmul.f32 %v2252_v24, %v3739_v29 }
 0x917   : > { %v2264_v60 = vmul.f32 %v2881_v33, %v2254_v32 }
 0x91c   : > { %v2269_v37 = vpop.permute.xlu2 %2268 }
 0x91d   : > { %2019 = vrot.lane.b32.xlu0 %v2017_v17, %s3903_s0  ;;  %v2271_v61 = vmul.f32 %v2269_v37, %v3702_v23  ;;  %v2274_v7 = vmul.f32 %v2269_v37, %v3698_v20 }
 0x91f   : > { %v2272_v62 = vadd.f32 %v2271_v61, %v2264_v60  ;;  %v2275_v6 = vadd.f32 %v2274_v7, %v2273_v56 }
 0x921   : > { %v2276_v4 = vmul.f32 %v2881_v33, %v2272_v62 }
 0x923   : > { %2278 = vrot.lane.b32.xlu1 %v2276_v4, %s3903_s0 }
 0x924   : > { %v984_v2 = vpop.permute.xlu2 %983 }
 0x925   : > { %2541 = vrot.lane.b32.xlu0 %v2272_v62, %s3903_s0  ;;  %2764 = vst.msk [vmem:[%s3244_s18 + $0x6] sm:$0x3] %vm717_vm11, %v984_v2 }
 0x92b   : > { %2546 = vrot.lane.b32.xlu1 %v2275_v6, %s3074_s1 }
 0x92c   : > { %v1761_v26 = vpop.permute.xlu2 %1760 }
 0x92d   : > { %2776 = vst.msk [vmem:[%s3242_s12 + $0x4] sm:$0x3] %vm717_vm11, %v1761_v26 }
 0x977   : > { %v2510_v23 = vpop.permute.xlu0 %2509 }
 0x978   : > { %v2512_v28 = vmul.f32 %v2510_v23, %v3745_v11 }
 0x97a   : > { %v2522_v44 = vmul.f32 %v2882_v14, %v2512_v28 }
 0x97f   : > { %v2527_v29 = vpop.permute.xlu0 %2526 }
 0x980   : > { %v2529_v20 = vmul.f32 %v2527_v29, %v3713_v35  ;;  %v2532_v36 = vmul.f32 %v2527_v29, %v2016_v12 }
 0x982   : > { %v2530_v30 = vadd.f32 %v2529_v20, %v2522_v44  ;;  %v2533_v45 = vadd.f32 %v2532_v36, %v2531_v53 }
 0x984   : > { %2556 = vrot.lane.b32.xlu0 %v2533_v45, %s3074_s1  ;;  %v2534_v38 = vmul.f32 %v2882_v14, %v2530_v30 }
 0x986   : > { %2536 = vrot.lane.b32.xlu2 %v2534_v38, %s3903_s0 }
 0x987   : > { %v1243_v46 = vpop.permute.xlu0 %1242 }
 0x988   : > { %2768 = vst.msk [vmem:[%s3242_s12 + $0x2] sm:$0x3] %vm717_vm11, %v1243_v46 }
 0x98e   : > { %2551 = vrot.lane.b32.xlu2 %v2530_v30, %s3903_s0 }
 0x98f   : > { %v2020_v39 = vpop.permute.xlu0 %2019 }
 0x990   : > { %2780 = vst.msk [vmem:[%s3244_s18 + $0x2] sm:$0x3] %vm717_vm11, %v2020_v39 }
 0x995   : > { %v2279_v58 = vpop.permute.xlu1 %2278 }
 0x996   : > { %2784 = vst.msk [vmem:[%s3242_s12 + $0x6] sm:$0x3] %vm717_vm11, %v2279_v58 }
 0x997   : > { %v2542_v35 = vpop.permute.xlu0 %2541 }
 0x998   : > { %2544 = vst.msk [vmem:[#allocation2] sm:$0x3] %vm717_vm11, %v2542_v35 }
 0x99d   : > { %v2547_v0 = vpop.permute.xlu1 %2546 }
 0x99e   : > { %2549 = vst.msk [vmem:[#allocation3] sm:$0x3] %vm717_vm11, %v2547_v0 }
 0x9e0   : > { %v2537_v3 = vpop.permute.xlu2 %2536 }
 0x9e1   : > { %2539 = vst.msk [vmem:[%s3244_s18] sm:$0x3] %vm717_vm11, %v2537_v3 }
 0x9e8   : > { %v2552_v1 = vpop.permute.xlu2 %2551 }
 0x9e9   : > { %2554 = vst.msk [vmem:[#allocation4] sm:$0x3] %vm717_vm11, %v2552_v1 }
 0x9f3   : > { %2563 = sbr.rel (%p2787_p6) target bundleno = 2554 (0x9fa), region = 126 }
 0x9f6   : > { %v2557_v43 = vpop.permute.xlu0 %2556 }
 0x9f7   : > { %2559 = vst.msk [vmem:[#allocation5] sm:$0x3] %vm717_vm11, %v2557_v43 }
 0x9f8   : > { %2564 = vst.msk [vmem:[%s3924_s6] sm:$0x3] %vm717_vm11, %v2542_v35 }
 0x9f9   : > { %2565 = vst.msk [vmem:[%s3925_s7] sm:$0x3] %vm717_vm11, %v2552_v1 }
 0x9fa PF: > { %s2799_s16 = sshll.u32 %s3152_s8, 3  ;;  %s2584_s13 = sshll.u32 %s3242_s12, 4  ;;  %s2585_s13 = int_to_ptr.vmem [resolvable:$true] %s2584_s13 }
 0x9fb   : > { %s2583_s29 = scalar_lea.hbm %s3895_s4, %s2799_s16  ;;  %s3926_s15 = sand.u32 1, %s3059_s28  }
 0x9fc   : > { %s2586_s0 = sshll.u32 %s2583_s29, 4  ;;  %s2567_s14 = scalar_lea.sflag [#allocation9], %s3926_s15  ;;  %s2587_s0 = int_to_ptr.hbm [resolvable:$true] %s2586_s0 }
 0x9fd   : > { %s2963_s2 = sshra.s32 %s2587_s0, 4  ;;  %s2969_s6 = scalar_lea.hbm %s3895_s4, 16  ;;  %s2964_s2 = int_to_ptr.hbm [resolvable:$true] %s2963_s2 }
 0x9fe   : > { %s2965_s1 = scalar_lea.hbm %s2964_s2, 8  ;;  %p2970_p12 = scmp.lt.s32.totalorder %s2964_s2, %s3895_s4 }
 0x9ff   : > { %p2966_p7 = scmp.ne.s32.totalorder %s2964_s2, %s2965_s1  ;;  %p2971_p2 = scmp.lt.s32.totalorder %s2969_s6, %s2965_s1 }
 0xa01   : > { %p2967_p9 = pnand %p2966_p7, %p3192_p8  ;;  %p2972_p3 = por %p2971_p2, %p2970_p12 }
 0xa03   : > { %p2968_p10 = pneg %p2967_p9 }
 0xa05   : > { %p2973_p4 = pnand %p2972_p3, %p2968_p10 }
 0xa07   : > { %2976 = shalt.err (!%p2973_p4)
}
 0xa08   : > { %s3075_s12 = smov 2   ;;  %s3927_s16 = smov 32  }
 0xa09   : > { %2801 = dma.vmem_to_hbm [thread:$0]  (%p3192_p8), %s2585_s13, 128, %s2587_s0, %s2567_s14, %s3927_s16, %s3927_s16, %s3075_s12  }
 0xa0a   : > { %s2596_s3 = ssub.s32 1, %s3152_s8  ;;  %s2602_s29 = sshll.u32 %s3244_s18, 4  ;;  %s2603_s29 = int_to_ptr.vmem [resolvable:$true] %s2602_s29 }
 0xa0b   : > { %s2800_s17 = sshll.u32 %s2596_s3, 3  ;;  %s3928_s1 = sand.u32 1, %s3051_s26  }
 0xa0c   : > { %s2601_s2 = scalar_lea.hbm %s3896_s5, %s2800_s17  ;;  %s2572_s20 = scalar_lea.sflag [#allocation11], %s3928_s1 }
 0xa0d   : > { %s2604_s6 = sshll.u32 %s2601_s2, 4  ;;  %s2997_s18 = scalar_lea.hbm %s3896_s5, 16  ;;  %s2605_s6 = int_to_ptr.hbm [resolvable:$true] %s2604_s6 }
 0xa0e   : > { %s2991_s21 = sshra.s32 %s2605_s6, 4  ;;  %s2992_s21 = int_to_ptr.hbm [resolvable:$true] %s2991_s21 }
 0xa0f   : > { %s2993_s9 = scalar_lea.hbm %s2992_s21, 8  ;;  %p2998_p8 = scmp.lt.s32.totalorder %s2992_s21, %s3896_s5 }
 0xa10   : > { %p2994_p5 = scmp.ne.s32.totalorder %s2992_s21, %s2993_s9  ;;  %p2999_p9 = scmp.lt.s32.totalorder %s2997_s18, %s2993_s9 }
 0xa12   : > { %p2995_p6 = pnand %p2994_p5, %p3198_p11  ;;  %p3000_p10 = por %p2999_p9, %p2998_p8 }
 0xa14   : > { %p2996_p7 = pneg %p2995_p6 }
 0xa16   : > { %p3001_p12 = pnand %p3000_p10, %p2996_p7 }
 0xa18   : > { %3004 = shalt.err (!%p3001_p12)
}
 0xa19   : > { %2802 = dma.vmem_to_hbm [thread:$0]  (%p3198_p11), %s2603_s29, 128, %s2605_s6, %s2572_s20, %s3927_s16, %s3927_s16, %s3075_s12  }
 0xa1a PF: > { %s2631_s3 = sand.u32 1, %s3047_s25   ;;  %p2806_p2 = pnand %p2740_p0, %p3204_p13 }
 0xa1b   : > { %s2632_s17 = scalar_lea.sflag [#allocation9], %s2631_s3 }
 0xa1c   : > { %p2807_p3 = pneg %p2806_p2 }
 0xa1e   : > { %3034 = dma.done.wait (%p2807_p3), %s2632_s17, 128  }
 0xa1f   : > { %3036 = vsyncadd (%p2807_p3), %s2632_s17, 4294967168  ;;  %s2641_s15 = sand.u32 1, %s3043_s24   ;;  %p2809_p4 = pnand %p2740_p0, %p3208_p1 }
 0xa20   : > { %s2642_s22 = scalar_lea.sflag [#allocation11], %s2641_s15 }
 0xa21   : > { %p2810_p11 = pneg %p2809_p4 }
 0xa23   : > { %3038 = dma.done.wait (%p2810_p11), %s2642_s22, 128  }
 0xa24   : > { %3040 = vsyncadd (%p2810_p11), %s2642_s22, 4294967168  ;;  %s3929_s23 = sld [smem:[#allocation14_spill]]  ;;  %p21_p13 = scmp.ge.s32.totalorder %s3156_s10, 4  }
 0xa25   : > { %s3930_s29 = sld [smem:[#allocation15_spill]]  ;;  %s3931_s24 = smov %s3051_s26 }
 0xa26   : > { %s3932_s25 = smov %s3059_s28  ;;  %s3933_s26 = smov %s3055_s27 }
 0xa27   : > { %s3934_s27 = smov %s3183_s19  ;;  %s3936_s30 = smov %s3156_s10 }
 0xa28   :  { %23 = sbr.rel (!%p21_p13) target bundleno = 14 (0xe), region = 219 }
 0xa2a   : > { %s3935_s28 = smov %s3929_s23 }
 0xa2d   :  { %2648 = vsyncpa [#allocation9], 1 }
 0xa2e   :  { %2650 = vsyncpa [#allocation9 + $0x1], 1 }
 0xa2f   :  { %2651 = vsyncpa [#allocation11], 1 }
 0xa30   :  { %2653 = vsyncpa [#allocation11 + $0x1], 1 }

</bundles_post_ra>
